<compile_context>
chip_gen: v7x
topology: tpu7x:2x2x1
jax: 0.10.0
libtpu: 0.0.40
codegen_flags: <defaults>
</compile_context>

<pallas_src>
import functools

import jax
import jax.numpy as jnp
from jax import lax
from jax.experimental import pallas as pl
from jax.experimental.pallas import tpu as pltpu


def poker_deepsets_kernel(
    cards_ref,                      # (TB, 2*S) f32: [:, :S]=suits, [:, S:]=nums
    we_ref, be_ref,                 # emb:  (2, H) f32, (1, H) f32
    w1_ref, b1_ref,                 # enc1: (H, H) mm_dtype, (1, H) f32
    w2_ref, b2_ref,                 # enc2
    w3_ref, b3_ref,                 # enc3
    d1_ref, db1_ref,                # dec1
    d2_ref, db2_ref,                # dec2
    d3t_ref, db3t_ref,              # dec3 TRANSPOSED: (O_pad, H) mm_dtype, (O_pad, 1) f32
    out_ref,                        # (O_pad, TB) f32  -- transposed output tile
    e_ref,                          # scratch: (S*TB, H) f32 embedding slab
    *, set_size, tile_b, matmul_dtype,
):
    S, TB = set_size, tile_b

    cards = cards_ref[...]          # (TB, 2S) f32
    we0 = we_ref[0:1, :]            # (1, H)
    we1 = we_ref[1:2, :]
    be = be_ref[...]

    # --- Build the (S*TB, H) per-card embedding slab on the VPU. -------------
    # All column-extracts / lane-broadcasts happen here, off the matmul path.
    for s in range(S):
        su = cards[:, s:s + 1]              # (TB, 1)
        nu = cards[:, S + s:S + s + 1]      # (TB, 1)
        e_ref[s * TB:(s + 1) * TB, :] = su * we0 + nu * we1 + be

    E = e_ref[...]                          # (S*TB, H) f32

    def dot_f32(x, w_ref):
        return jnp.dot(x.astype(matmul_dtype), w_ref[...],
                       preferred_element_type=jnp.float32)

    # --- Encoder MLP: ONE matmul per layer with M = S*TB (cards folded). -----
    h = jnp.maximum(dot_f32(E, w1_ref) + b1_ref[...], 0.0)
    h = jnp.maximum(dot_f32(h, w2_ref) + b2_ref[...], 0.0)
    h = dot_f32(h, w3_ref) + b3_ref[...]

    # --- Residual + set-sum: add the S sublane-aligned row slices (f32). -----
    y = E + h                                # (S*TB, H)
    pooled = y[0:TB, :]
    for s in range(1, S):
        pooled = pooled + y[s * TB:(s + 1) * TB, :]

    # --- Decoder MLP on the pooled (TB, H) representation. -------------------
    z = jnp.maximum(dot_f32(pooled, d1_ref) + db1_ref[...], 0.0)
    z = jnp.maximum(dot_f32(z, d2_ref) + db2_ref[...], 0.0)

    # Final layer computed transposed on the MXU (A @ B^T pattern):
    #   zt[o, t] = sum_h d3T[o, h] * z[t, h]   -> (O_pad, TB)
    # Batch ends up on the lane dimension -> lane-dense, unmasked stores.
    zt = lax.dot_general(
        d3t_ref[...], z.astype(matmul_dtype),
        dimension_numbers=(((1,), (1,)), ((), ())),
        preferred_element_type=jnp.float32)
    out_ref[...] = zt + db3t_ref[...]


def _round_up(x, m):
    return pl.cdiv(x, m) * m


def poker_deepsets_forward(suits, nums, params, *, tile_b=512,
                           matmul_dtype=jnp.bfloat16):
    """suits, nums: (B, S) int arrays. Returns (B, out_dim) float32.

    tile_b: hands per grid step (clamped to a multiple of 128 so the
    transposed output tile is lane-dense). Defaults to 512 so each step moves
    plenty of rows and the per-step overhead (~0.35us) is amortized; re-derive
    TB for v7x's 64 MiB physical / 32 MiB scoped VMEM at large H.

    matmul_dtype: bf16 by default on ALL generations (v5e/v6e/v7x) -- f32 MXU
    operands are emulated via multiple bf16 passes everywhere, so bf16
    operands + f32 accumulation is both faster and halves weight VMEM/DMA.
    Elementwise math (embedding, biases, ReLU, residual, set-sum) stays f32.
    """
    B, S = suits.shape
    (we, be, w1, b1, w2, b2, w3, b3, d1, db1, d2, db2, d3, db3) = params
    H = we.shape[1]
    O = d3.shape[1]
    O_pad = _round_up(O, 8)         # output stored transposed: pad only to 8 sublanes

    # Batch tile: multiple of 128 (lane-dense transposed output stores) and no
    # larger than the (padded) batch.  Force >= 2 grid steps so the "parallel"
    # batch axis can shard across both v7x TensorCores.
    TB = max(128, min((max(tile_b, 128) // 128) * 128, _round_up(B, 128)))
    if pl.cdiv(B, TB) < 2 and TB > 128:
        TB = max(128, _round_up(pl.cdiv(B, 2), 128))
    n_steps = max(2, pl.cdiv(B, TB))
    B_pad = n_steps * TB
    # NOTE: padded batch rows flow through the network with embedding == be and
    # are sliced off below; this is wasted work only when B << TB.

    # Fuse suits/nums into one (B_pad, 2S) f32 activation array (single DMA).
    cards = jnp.concatenate(
        [suits.astype(jnp.float32), nums.astype(jnp.float32)], axis=1)
    if B_pad != B:
        cards = jnp.pad(cards, ((0, B_pad - B), (0, 0)))

    # MXU weights in matmul_dtype; embedding weights & all biases stay f32.
    w1c, w2c, w3c, d1c, d2c = (w.astype(matmul_dtype)
                               for w in (w1, w2, w3, d1, d2))
    # Final decoder layer pre-transposed (and sublane-padded) for the
    # transposed output path.
    d3t = jnp.pad(d3.T, ((0, O_pad - O), (0, 0))).astype(matmul_dtype)   # (O_pad, H)
    db3t = jnp.pad(db3.T, ((0, O_pad - O), (0, 0)))                      # (O_pad, 1) f32

    weight_args = (we, be, w1c, b1, w2c, b2, w3c, b3,
                   d1c, db1, d2c, db2, d3t, db3t)

    in_specs = [
        pl.BlockSpec((TB, 2 * S), lambda i: (i, 0)),     # fused activation tile
    ] + [
        # Whole weight, constant block index -> stays VMEM-resident across the
        # grid.  (On VMEM-tight v7x configs one could additionally single-
        # buffer these via pipeline_mode=pl.Buffered(1).)
        pl.BlockSpec(w.shape, lambda i: (0, 0)) for w in weight_args
    ]

    # Explicit scoped-VMEM budget: resident weights (x2 buffers), in/out tiles
    # (x2), the (S*TB, H) embedding slab and headroom for layer temporaries.
    def _nbytes(a):
        return int(a.size) * a.dtype.itemsize
    slab_bytes = S * TB * H * 4
    io_bytes = TB * 2 * S * 4 + O_pad * TB * 4
    est = (2 * sum(_nbytes(w) for w in weight_args)
           + 2 * io_bytes + 7 * slab_bytes)
    vmem_limit = int(min(max(est, 32 * 1024 * 1024), 64 * 1024 * 1024))

    kernel = functools.partial(poker_deepsets_kernel, set_size=S, tile_b=TB,
                               matmul_dtype=matmul_dtype)

    out_t = pl.pallas_call(
        kernel,
        out_shape=jax.ShapeDtypeStruct((O_pad, B_pad), jnp.float32),
        grid=(n_steps,),
        in_specs=in_specs,
        out_specs=pl.BlockSpec((O_pad, TB), lambda i: (0, i)),
        scratch_shapes=[pltpu.VMEM((S * TB, H), jnp.float32)],
        compiler_params=pltpu.CompilerParams(
            dimension_semantics=("parallel",),       # batch tiles independent
            vmem_limit_bytes=vmem_limit),
    )(cards, *weight_args)

    return out_t[:O, :B].T


def init_params(key, hid_dim, out_dim):
    """Deterministic PyTorch-Linear-style init; weights stored (in, out)."""
    def linear(k, fan_in, fan_out):
        kw, kb = jax.random.split(k)
        bound = 1.0 / jnp.sqrt(fan_in)
        w = jax.random.uniform(kw, (fan_in, fan_out), jnp.float32, -bound, bound)
        b = jax.random.uniform(kb, (1, fan_out), jnp.float32, -bound, bound)
        return w, b

    keys = jax.random.split(key, 7)
    we, be = linear(keys[0], 2, hid_dim)
    w1, b1 = linear(keys[1], hid_dim, hid_dim)
    w2, b2 = linear(keys[2], hid_dim, hid_dim)
    w3, b3 = linear(keys[3], hid_dim, hid_dim)
    d1, db1 = linear(keys[4], hid_dim, hid_dim)
    d2, db2 = linear(keys[5], hid_dim, hid_dim)
    d3, db3 = linear(keys[6], hid_dim, out_dim)
    return (we, be, w1, b1, w2, b2, w3, b3, d1, db1, d2, db2, d3, db3)


def reference_forward(suits, nums, params, matmul_dtype=jnp.float32):
    """Pure-JAX reference mirroring the PyTorch module.

    matmul_dtype lets the six MLP matmuls use the same operand precision as
    the kernel (f32 accumulation), so the bf16 path can be checked tightly.
    """
    (we, be, w1, b1, w2, b2, w3, b3, d1, db1, d2, db2, d3, db3) = params

    def mm(x, w):
        return jnp.dot(x.astype(matmul_dtype), w.astype(matmul_dtype),
                       preferred_element_type=jnp.float32)

    x = jnp.stack([suits, nums], axis=-1).astype(jnp.float32)   # (B, S, 2)
    e = x @ we + be                                             # f32 embedding
    h = jnp.maximum(mm(e, w1) + b1, 0.0)
    h = jnp.maximum(mm(h, w2) + b2, 0.0)
    h = mm(h, w3) + b3
    y = e + h
    s = jnp.sum(y, axis=1)                                      # (B, H)
    z = jnp.maximum(mm(s, d1) + db1, 0.0)
    z = jnp.maximum(mm(z, d2) + db2, 0.0)
    z = mm(z, d3) + db3
    return z


if __name__ == "__main__":
    B, S = 64, 5          # 64 hands of 5 cards
    HID, OUT = 32, 4

    key = jax.random.PRNGKey(0)
    k_params, k_suits, k_nums = jax.random.split(key, 3)

    params = init_params(k_params, HID, OUT)
    suits = jax.random.randint(k_suits, (B, S), 0, 4, dtype=jnp.int32)
    nums = jax.random.randint(k_nums, (B, S), 1, 14, dtype=jnp.int32)

    # f32 MXU path: tight check against the f32 reference.
    out_f32 = poker_deepsets_forward(suits, nums, params,
                                     matmul_dtype=jnp.float32)
    out_f32 = jax.block_until_ready(out_f32)
    ref_f32 = reference_forward(suits, nums, params, matmul_dtype=jnp.float32)
    assert out_f32.shape == (B, OUT)
    assert jnp.allclose(out_f32, ref_f32, rtol=1e-3, atol=1e-3), (out_f32, ref_f32)

    # Default path (bf16 operands, f32 accumulation) checked tightly against a
    # matched-precision reference so real regressions aren't masked.
    out_bf16 = poker_deepsets_forward(suits, nums, params)
    out_bf16 = jax.block_until_ready(out_bf16)
    ref_bf16 = reference_forward(suits, nums, params,
                                 matmul_dtype=jnp.bfloat16)
    assert out_bf16.shape == (B, OUT)
    assert jnp.allclose(out_bf16, ref_bf16, rtol=1e-2, atol=1e-2), (out_bf16, ref_bf16)

    print("KERNEL_OK")
</pallas_src>

<mosaic_0001>
module attributes {stable_mosaic.version = 11 : i64} {
  func.func @poker_deepsets_kernel(%arg0: i32, %arg1: memref<128x10xf32, #tpu.memory_space<vmem>>, %arg2: memref<2x32xf32, #tpu.memory_space<vmem>>, %arg3: memref<1x32xf32, #tpu.memory_space<vmem>>, %arg4: memref<32x32xf32, #tpu.memory_space<vmem>>, %arg5: memref<1x32xf32, #tpu.memory_space<vmem>>, %arg6: memref<32x32xf32, #tpu.memory_space<vmem>>, %arg7: memref<1x32xf32, #tpu.memory_space<vmem>>, %arg8: memref<32x32xf32, #tpu.memory_space<vmem>>, %arg9: memref<1x32xf32, #tpu.memory_space<vmem>>, %arg10: memref<32x32xf32, #tpu.memory_space<vmem>>, %arg11: memref<1x32xf32, #tpu.memory_space<vmem>>, %arg12: memref<32x32xf32, #tpu.memory_space<vmem>>, %arg13: memref<1x32xf32, #tpu.memory_space<vmem>>, %arg14: memref<8x32xf32, #tpu.memory_space<vmem>>, %arg15: memref<8x1xf32, #tpu.memory_space<vmem>>, %arg16: memref<8x128xf32, #tpu.memory_space<vmem>>, %arg17: memref<640x32xf32, #tpu.memory_space<vmem>>) attributes {dimension_semantics = [#tpu.dimension_semantics<parallel>], iteration_bounds = array<i64: 2>, scalar_prefetch = 0 : i64, scratch_operands = 1 : i64, tpu.core_type = #tpu.core_type<tc>, window_params = [{transform_indices = @transform_0, window_bounds = array<i64: 128, 10>}, {pipeline_mode = #tpu.pipeline_mode<synchronous>, transform_indices = @transform_1, window_bounds = array<i64: 2, 32>}, {pipeline_mode = #tpu.pipeline_mode<synchronous>, transform_indices = @transform_2, window_bounds = array<i64: 1, 32>}, {pipeline_mode = #tpu.pipeline_mode<synchronous>, transform_indices = @transform_3, window_bounds = array<i64: 32, 32>}, {pipeline_mode = #tpu.pipeline_mode<synchronous>, transform_indices = @transform_4, window_bounds = array<i64: 1, 32>}, {pipeline_mode = #tpu.pipeline_mode<synchronous>, transform_indices = @transform_5, window_bounds = array<i64: 32, 32>}, {pipeline_mode = #tpu.pipeline_mode<synchronous>, transform_indices = @transform_6, window_bounds = array<i64: 1, 32>}, {pipeline_mode = #tpu.pipeline_mode<synchronous>, transform_indices = @transform_7, window_bounds = array<i64: 32, 32>}, {pipeline_mode = #tpu.pipeline_mode<synchronous>, transform_indices = @transform_8, window_bounds = array<i64: 1, 32>}, {pipeline_mode = #tpu.pipeline_mode<synchronous>, transform_indices = @transform_9, window_bounds = array<i64: 32, 32>}, {pipeline_mode = #tpu.pipeline_mode<synchronous>, transform_indices = @transform_10, window_bounds = array<i64: 1, 32>}, {pipeline_mode = #tpu.pipeline_mode<synchronous>, transform_indices = @transform_11, window_bounds = array<i64: 32, 32>}, {pipeline_mode = #tpu.pipeline_mode<synchronous>, transform_indices = @transform_12, window_bounds = array<i64: 1, 32>}, {pipeline_mode = #tpu.pipeline_mode<synchronous>, transform_indices = @transform_13, window_bounds = array<i64: 8, 32>}, {pipeline_mode = #tpu.pipeline_mode<synchronous>, transform_indices = @transform_14, window_bounds = array<i64: 8, 1>}, {transform_indices = @transform_15, window_bounds = array<i64: 8, 128>}]} {
    %c0 = arith.constant 0 : index
    %c0_0 = arith.constant 0 : index
    %0 = vector.load %arg1[%c0, %c0_0] : memref<128x10xf32, #tpu.memory_space<vmem>>, vector<128x10xf32>
    %c0_1 = arith.constant 0 : index
    %c0_2 = arith.constant 0 : index
    %1 = vector.load %arg2[%c0_1, %c0_2] : memref<2x32xf32, #tpu.memory_space<vmem>>, vector<1x32xf32>
    %c1 = arith.constant 1 : index
    %c0_3 = arith.constant 0 : index
    %2 = vector.load %arg2[%c1, %c0_3] : memref<2x32xf32, #tpu.memory_space<vmem>>, vector<1x32xf32>
    %c0_4 = arith.constant 0 : index
    %c0_5 = arith.constant 0 : index
    %3 = vector.load %arg3[%c0_4, %c0_5] : memref<1x32xf32, #tpu.memory_space<vmem>>, vector<1x32xf32>
    %4 = vector.extract_strided_slice %0 {offsets = [0, 0], sizes = [128, 1], strides = [1, 1]} : vector<128x10xf32> to vector<128x1xf32>
    %5 = vector.extract_strided_slice %0 {offsets = [0, 5], sizes = [128, 1], strides = [1, 1]} : vector<128x10xf32> to vector<128x1xf32>
    %6 = vector.broadcast %4 : vector<128x1xf32> to vector<128x32xf32>
    %7 = vector.broadcast %1 : vector<1x32xf32> to vector<128x32xf32>
    %8 = arith.mulf %6, %7 : vector<128x32xf32>
    %9 = vector.broadcast %5 : vector<128x1xf32> to vector<128x32xf32>
    %10 = vector.broadcast %2 : vector<1x32xf32> to vector<128x32xf32>
    %11 = arith.mulf %9, %10 : vector<128x32xf32>
    %12 = arith.addf %8, %11 : vector<128x32xf32>
    %13 = vector.broadcast %3 : vector<1x32xf32> to vector<128x32xf32>
    %14 = arith.addf %12, %13 : vector<128x32xf32>
    %c0_6 = arith.constant 0 : index
    %c0_7 = arith.constant 0 : index
    %15 = vector.load %arg17[%c0_6, %c0_7] : memref<640x32xf32, #tpu.memory_space<vmem>>, vector<128x32xf32>
    tpu.vector_store %arg17[%c0_6, %c0_7], %14 {strides = array<i32>} : memref<640x32xf32, #tpu.memory_space<vmem>>, vector<128x32xf32>,
    %16 = vector.extract_strided_slice %0 {offsets = [0, 1], sizes = [128, 1], strides = [1, 1]} : vector<128x10xf32> to vector<128x1xf32>
    %17 = vector.extract_strided_slice %0 {offsets = [0, 6], sizes = [128, 1], strides = [1, 1]} : vector<128x10xf32> to vector<128x1xf32>
    %18 = vector.broadcast %16 : vector<128x1xf32> to vector<128x32xf32>
    %19 = vector.broadcast %1 : vector<1x32xf32> to vector<128x32xf32>
    %20 = arith.mulf %18, %19 : vector<128x32xf32>
    %21 = vector.broadcast %17 : vector<128x1xf32> to vector<128x32xf32>
    %22 = vector.broadcast %2 : vector<1x32xf32> to vector<128x32xf32>
    %23 = arith.mulf %21, %22 : vector<128x32xf32>
    %24 = arith.addf %20, %23 : vector<128x32xf32>
    %25 = vector.broadcast %3 : vector<1x32xf32> to vector<128x32xf32>
    %26 = arith.addf %24, %25 : vector<128x32xf32>
    %c128 = arith.constant 128 : index
    %c0_8 = arith.constant 0 : index
    %27 = vector.load %arg17[%c128, %c0_8] : memref<640x32xf32, #tpu.memory_space<vmem>>, vector<128x32xf32>
    tpu.vector_store %arg17[%c128, %c0_8], %26 {strides = array<i32>} : memref<640x32xf32, #tpu.memory_space<vmem>>, vector<128x32xf32>,
    %28 = vector.extract_strided_slice %0 {offsets = [0, 2], sizes = [128, 1], strides = [1, 1]} : vector<128x10xf32> to vector<128x1xf32>
    %29 = vector.extract_strided_slice %0 {offsets = [0, 7], sizes = [128, 1], strides = [1, 1]} : vector<128x10xf32> to vector<128x1xf32>
    %30 = vector.broadcast %28 : vector<128x1xf32> to vector<128x32xf32>
    %31 = vector.broadcast %1 : vector<1x32xf32> to vector<128x32xf32>
    %32 = arith.mulf %30, %31 : vector<128x32xf32>
    %33 = vector.broadcast %29 : vector<128x1xf32> to vector<128x32xf32>
    %34 = vector.broadcast %2 : vector<1x32xf32> to vector<128x32xf32>
    %35 = arith.mulf %33, %34 : vector<128x32xf32>
    %36 = arith.addf %32, %35 : vector<128x32xf32>
    %37 = vector.broadcast %3 : vector<1x32xf32> to vector<128x32xf32>
    %38 = arith.addf %36, %37 : vector<128x32xf32>
    %c256 = arith.constant 256 : index
    %c0_9 = arith.constant 0 : index
    %39 = vector.load %arg17[%c256, %c0_9] : memref<640x32xf32, #tpu.memory_space<vmem>>, vector<128x32xf32>
    tpu.vector_store %arg17[%c256, %c0_9], %38 {strides = array<i32>} : memref<640x32xf32, #tpu.memory_space<vmem>>, vector<128x32xf32>,
    %40 = vector.extract_strided_slice %0 {offsets = [0, 3], sizes = [128, 1], strides = [1, 1]} : vector<128x10xf32> to vector<128x1xf32>
    %41 = vector.extract_strided_slice %0 {offsets = [0, 8], sizes = [128, 1], strides = [1, 1]} : vector<128x10xf32> to vector<128x1xf32>
    %42 = vector.broadcast %40 : vector<128x1xf32> to vector<128x32xf32>
    %43 = vector.broadcast %1 : vector<1x32xf32> to vector<128x32xf32>
    %44 = arith.mulf %42, %43 : vector<128x32xf32>
    %45 = vector.broadcast %41 : vector<128x1xf32> to vector<128x32xf32>
    %46 = vector.broadcast %2 : vector<1x32xf32> to vector<128x32xf32>
    %47 = arith.mulf %45, %46 : vector<128x32xf32>
    %48 = arith.addf %44, %47 : vector<128x32xf32>
    %49 = vector.broadcast %3 : vector<1x32xf32> to vector<128x32xf32>
    %50 = arith.addf %48, %49 : vector<128x32xf32>
    %c384 = arith.constant 384 : index
    %c0_10 = arith.constant 0 : index
    %51 = vector.load %arg17[%c384, %c0_10] : memref<640x32xf32, #tpu.memory_space<vmem>>, vector<128x32xf32>
    tpu.vector_store %arg17[%c384, %c0_10], %50 {strides = array<i32>} : memref<640x32xf32, #tpu.memory_space<vmem>>, vector<128x32xf32>,
    %52 = vector.extract_strided_slice %0 {offsets = [0, 4], sizes = [128, 1], strides = [1, 1]} : vector<128x10xf32> to vector<128x1xf32>
    %53 = vector.extract_strided_slice %0 {offsets = [0, 9], sizes = [128, 1], strides = [1, 1]} : vector<128x10xf32> to vector<128x1xf32>
    %54 = vector.broadcast %52 : vector<128x1xf32> to vector<128x32xf32>
    %55 = vector.broadcast %1 : vector<1x32xf32> to vector<128x32xf32>
    %56 = arith.mulf %54, %55 : vector<128x32xf32>
    %57 = vector.broadcast %53 : vector<128x1xf32> to vector<128x32xf32>
    %58 = vector.broadcast %2 : vector<1x32xf32> to vector<128x32xf32>
    %59 = arith.mulf %57, %58 : vector<128x32xf32>
    %60 = arith.addf %56, %59 : vector<128x32xf32>
    %61 = vector.broadcast %3 : vector<1x32xf32> to vector<128x32xf32>
    %62 = arith.addf %60, %61 : vector<128x32xf32>
    %c512 = arith.constant 512 : index
    %c0_11 = arith.constant 0 : index
    %63 = vector.load %arg17[%c512, %c0_11] : memref<640x32xf32, #tpu.memory_space<vmem>>, vector<128x32xf32>
    tpu.vector_store %arg17[%c512, %c0_11], %62 {strides = array<i32>} : memref<640x32xf32, #tpu.memory_space<vmem>>, vector<128x32xf32>,
    %c0_12 = arith.constant 0 : index
    %c0_13 = arith.constant 0 : index
    %64 = vector.load %arg17[%c0_12, %c0_13] : memref<640x32xf32, #tpu.memory_space<vmem>>, vector<640x32xf32>
    %c0_14 = arith.constant 0 : index
    %c0_15 = arith.constant 0 : index
    %65 = vector.load %arg4[%c0_14, %c0_15] : memref<32x32xf32, #tpu.memory_space<vmem>>, vector<32x32xf32>
    %cst = arith.constant dense<0.000000e+00> : vector<640x32xf32>
    %66 = tpu.matmul %64, %65, %cst {dimension_numbers = #tpu.dot_dimension_numbers<[1], [0], [0], [1], [0, 0, 1, 1], [], []>} : vector<640x32xf32>, vector<32x32xf32>, vector<640x32xf32> -> vector<640x32xf32>
    %c0_16 = arith.constant 0 : index
    %c0_17 = arith.constant 0 : index
    %67 = vector.load %arg5[%c0_16, %c0_17] : memref<1x32xf32, #tpu.memory_space<vmem>>, vector<1x32xf32>
    %68 = vector.broadcast %67 : vector<1x32xf32> to vector<640x32xf32>
    %69 = arith.addf %66, %68 : vector<640x32xf32>
    %cst_18 = arith.constant 0.000000e+00 : f32
    %70 = vector.broadcast %cst_18 : f32 to vector<640x32xf32>
    %71 = arith.maximumf %69, %70 : vector<640x32xf32>
    %c0_19 = arith.constant 0 : index
    %c0_20 = arith.constant 0 : index
    %72 = vector.load %arg6[%c0_19, %c0_20] : memref<32x32xf32, #tpu.memory_space<vmem>>, vector<32x32xf32>
    %cst_21 = arith.constant dense<0.000000e+00> : vector<640x32xf32>
    %73 = tpu.matmul %71, %72, %cst_21 {dimension_numbers = #tpu.dot_dimension_numbers<[1], [0], [0], [1], [0, 0, 1, 1], [], []>} : vector<640x32xf32>, vector<32x32xf32>, vector<640x32xf32> -> vector<640x32xf32>
    %c0_22 = arith.constant 0 : index
    %c0_23 = arith.constant 0 : index
    %74 = vector.load %arg7[%c0_22, %c0_23] : memref<1x32xf32, #tpu.memory_space<vmem>>, vector<1x32xf32>
    %75 = vector.broadcast %74 : vector<1x32xf32> to vector<640x32xf32>
    %76 = arith.addf %73, %75 : vector<640x32xf32>
    %cst_24 = arith.constant 0.000000e+00 : f32
    %77 = vector.broadcast %cst_24 : f32 to vector<640x32xf32>
    %78 = arith.maximumf %76, %77 : vector<640x32xf32>
    %c0_25 = arith.constant 0 : index
    %c0_26 = arith.constant 0 : index
    %79 = vector.load %arg8[%c0_25, %c0_26] : memref<32x32xf32, #tpu.memory_space<vmem>>, vector<32x32xf32>
    %cst_27 = arith.constant dense<0.000000e+00> : vector<640x32xf32>
    %80 = tpu.matmul %78, %79, %cst_27 {dimension_numbers = #tpu.dot_dimension_numbers<[1], [0], [0], [1], [0, 0, 1, 1], [], []>} : vector<640x32xf32>, vector<32x32xf32>, vector<640x32xf32> -> vector<640x32xf32>
    %c0_28 = arith.constant 0 : index
    %c0_29 = arith.constant 0 : index
    %81 = vector.load %arg9[%c0_28, %c0_29] : memref<1x32xf32, #tpu.memory_space<vmem>>, vector<1x32xf32>
    %82 = vector.broadcast %81 : vector<1x32xf32> to vector<640x32xf32>
    %83 = arith.addf %80, %82 : vector<640x32xf32>
    %84 = arith.addf %64, %83 : vector<640x32xf32>
    %85 = vector.extract_strided_slice %84 {offsets = [0, 0], sizes = [128, 32], strides = [1, 1]} : vector<640x32xf32> to vector<128x32xf32>
    %86 = vector.extract_strided_slice %84 {offsets = [128, 0], sizes = [128, 32], strides = [1, 1]} : vector<640x32xf32> to vector<128x32xf32>
    %87 = arith.addf %85, %86 : vector<128x32xf32>
    %88 = vector.extract_strided_slice %84 {offsets = [256, 0], sizes = [128, 32], strides = [1, 1]} : vector<640x32xf32> to vector<128x32xf32>
    %89 = arith.addf %87, %88 : vector<128x32xf32>
    %90 = vector.extract_strided_slice %84 {offsets = [384, 0], sizes = [128, 32], strides = [1, 1]} : vector<640x32xf32> to vector<128x32xf32>
    %91 = arith.addf %89, %90 : vector<128x32xf32>
    %92 = vector.extract_strided_slice %84 {offsets = [512, 0], sizes = [128, 32], strides = [1, 1]} : vector<640x32xf32> to vector<128x32xf32>
    %93 = arith.addf %91, %92 : vector<128x32xf32>
    %c0_30 = arith.constant 0 : index
    %c0_31 = arith.constant 0 : index
    %94 = vector.load %arg10[%c0_30, %c0_31] : memref<32x32xf32, #tpu.memory_space<vmem>>, vector<32x32xf32>
    %cst_32 = arith.constant dense<0.000000e+00> : vector<128x32xf32>
    %95 = tpu.matmul %93, %94, %cst_32 {dimension_numbers = #tpu.dot_dimension_numbers<[1], [0], [0], [1], [0, 0, 1, 1], [], []>} : vector<128x32xf32>, vector<32x32xf32>, vector<128x32xf32> -> vector<128x32xf32>
    %c0_33 = arith.constant 0 : index
    %c0_34 = arith.constant 0 : index
    %96 = vector.load %arg11[%c0_33, %c0_34] : memref<1x32xf32, #tpu.memory_space<vmem>>, vector<1x32xf32>
    %97 = vector.broadcast %96 : vector<1x32xf32> to vector<128x32xf32>
    %98 = arith.addf %95, %97 : vector<128x32xf32>
    %cst_35 = arith.constant 0.000000e+00 : f32
    %99 = vector.broadcast %cst_35 : f32 to vector<128x32xf32>
    %100 = arith.maximumf %98, %99 : vector<128x32xf32>
    %c0_36 = arith.constant 0 : index
    %c0_37 = arith.constant 0 : index
    %101 = vector.load %arg12[%c0_36, %c0_37] : memref<32x32xf32, #tpu.memory_space<vmem>>, vector<32x32xf32>
    %cst_38 = arith.constant dense<0.000000e+00> : vector<128x32xf32>
    %102 = tpu.matmul %100, %101, %cst_38 {dimension_numbers = #tpu.dot_dimension_numbers<[1], [0], [0], [1], [0, 0, 1, 1], [], []>} : vector<128x32xf32>, vector<32x32xf32>, vector<128x32xf32> -> vector<128x32xf32>
    %c0_39 = arith.constant 0 : index
    %c0_40 = arith.constant 0 : index
    %103 = vector.load %arg13[%c0_39, %c0_40] : memref<1x32xf32, #tpu.memory_space<vmem>>, vector<1x32xf32>
    %104 = vector.broadcast %103 : vector<1x32xf32> to vector<128x32xf32>
    %105 = arith.addf %102, %104 : vector<128x32xf32>
    %cst_41 = arith.constant 0.000000e+00 : f32
    %106 = vector.broadcast %cst_41 : f32 to vector<128x32xf32>
    %107 = arith.maximumf %105, %106 : vector<128x32xf32>
    %c0_42 = arith.constant 0 : index
    %c0_43 = arith.constant 0 : index
    %108 = vector.load %arg14[%c0_42, %c0_43] : memref<8x32xf32, #tpu.memory_space<vmem>>, vector<8x32xf32>
    %cst_44 = arith.constant dense<0.000000e+00> : vector<8x128xf32>
    %109 = tpu.matmul %108, %107, %cst_44 {dimension_numbers = #tpu.dot_dimension_numbers<[1], [1], [0], [0], [0, 0, 1, 0], [], []>} : vector<8x32xf32>, vector<128x32xf32>, vector<8x128xf32> -> vector<8x128xf32>
    %c0_45 = arith.constant 0 : index
    %c0_46 = arith.constant 0 : index
    %110 = vector.load %arg15[%c0_45, %c0_46] : memref<8x1xf32, #tpu.memory_space<vmem>>, vector<8x1xf32>
    %111 = vector.broadcast %110 : vector<8x1xf32> to vector<8x128xf32>
    %112 = arith.addf %109, %111 : vector<8x128xf32>
    %c0_47 = arith.constant 0 : index
    %c0_48 = arith.constant 0 : index
    %113 = vector.load %arg16[%c0_47, %c0_48] : memref<8x128xf32, #tpu.memory_space<vmem>>, vector<8x128xf32>
    tpu.vector_store %arg16[%c0_47, %c0_48], %112 {strides = array<i32>} : memref<8x128xf32, #tpu.memory_space<vmem>>, vector<8x128xf32>,
    return
  }
  func.func @transform_0(%arg0: i32) -> (i32, i32) {
    %c0_i32 = arith.constant 0 : i32
    %c0_i32_0 = arith.constant 0 : i32
    return %arg0, %c0_i32 : i32, i32
  }
  func.func @transform_1(%arg0: i32) -> (i32, i32) {
    %c0_i32 = arith.constant 0 : i32
    %c0_i32_0 = arith.constant 0 : i32
    %c0_i32_1 = arith.constant 0 : i32
    return %c0_i32, %c0_i32_0 : i32, i32
  }
  func.func @transform_2(%arg0: i32) -> (i32, i32) {
    %c0_i32 = arith.constant 0 : i32
    %c0_i32_0 = arith.constant 0 : i32
    %c0_i32_1 = arith.constant 0 : i32
    return %c0_i32, %c0_i32_0 : i32, i32
  }
  func.func @transform_3(%arg0: i32) -> (i32, i32) {
    %c0_i32 = arith.constant 0 : i32
    %c0_i32_0 = arith.constant 0 : i32
    %c0_i32_1 = arith.constant 0 : i32
    return %c0_i32, %c0_i32_0 : i32, i32
  }
  func.func @transform_4(%arg0: i32) -> (i32, i32) {
    %c0_i32 = arith.constant 0 : i32
    %c0_i32_0 = arith.constant 0 : i32
    %c0_i32_1 = arith.constant 0 : i32
    return %c0_i32, %c0_i32_0 : i32, i32
  }
  func.func @transform_5(%arg0: i32) -> (i32, i32) {
    %c0_i32 = arith.constant 0 : i32
    %c0_i32_0 = arith.constant 0 : i32
    %c0_i32_1 = arith.constant 0 : i32
    return %c0_i32, %c0_i32_0 : i32, i32
  }
  func.func @transform_6(%arg0: i32) -> (i32, i32) {
    %c0_i32 = arith.constant 0 : i32
    %c0_i32_0 = arith.constant 0 : i32
    %c0_i32_1 = arith.constant 0 : i32
    return %c0_i32, %c0_i32_0 : i32, i32
  }
  func.func @transform_7(%arg0: i32) -> (i32, i32) {
    %c0_i32 = arith.constant 0 : i32
    %c0_i32_0 = arith.constant 0 : i32
    %c0_i32_1 = arith.constant 0 : i32
    return %c0_i32, %c0_i32_0 : i32, i32
  }
  func.func @transform_8(%arg0: i32) -> (i32, i32) {
    %c0_i32 = arith.constant 0 : i32
    %c0_i32_0 = arith.constant 0 : i32
    %c0_i32_1 = arith.constant 0 : i32
    return %c0_i32, %c0_i32_0 : i32, i32
  }
  func.func @transform_9(%arg0: i32) -> (i32, i32) {
    %c0_i32 = arith.constant 0 : i32
    %c0_i32_0 = arith.constant 0 : i32
    %c0_i32_1 = arith.constant 0 : i32
    return %c0_i32, %c0_i32_0 : i32, i32
  }
  func.func @transform_10(%arg0: i32) -> (i32, i32) {
    %c0_i32 = arith.constant 0 : i32
    %c0_i32_0 = arith.constant 0 : i32
    %c0_i32_1 = arith.constant 0 : i32
    return %c0_i32, %c0_i32_0 : i32, i32
  }
  func.func @transform_11(%arg0: i32) -> (i32, i32) {
    %c0_i32 = arith.constant 0 : i32
    %c0_i32_0 = arith.constant 0 : i32
    %c0_i32_1 = arith.constant 0 : i32
    return %c0_i32, %c0_i32_0 : i32, i32
  }
  func.func @transform_12(%arg0: i32) -> (i32, i32) {
    %c0_i32 = arith.constant 0 : i32
    %c0_i32_0 = arith.constant 0 : i32
    %c0_i32_1 = arith.constant 0 : i32
    return %c0_i32, %c0_i32_0 : i32, i32
  }
  func.func @transform_13(%arg0: i32) -> (i32, i32) {
    %c0_i32 = arith.constant 0 : i32
    %c0_i32_0 = arith.constant 0 : i32
    %c0_i32_1 = arith.constant 0 : i32
    return %c0_i32, %c0_i32_0 : i32, i32
  }
  func.func @transform_14(%arg0: i32) -> (i32, i32) {
    %c0_i32 = arith.constant 0 : i32
    %c0_i32_0 = arith.constant 0 : i32
    %c0_i32_1 = arith.constant 0 : i32
    return %c0_i32, %c0_i32_0 : i32, i32
  }
  func.func @transform_15(%arg0: i32) -> (i32, i32) {
    %c0_i32 = arith.constant 0 : i32
    %c0_i32_0 = arith.constant 0 : i32
    return %c0_i32, %arg0 : i32, i32
  }
}

</mosaic_0001>

<bundles_post_ra>
// kernel: tpu_custom_call.1
= control target key start
LH: loop header
LB: loop body
LE: loop exit
PB: predicated region body
PF: predicated region fallthrough
CT: control target
= control target key end

     0   :  { %s8318_s0 = inlined_call_operand.vmem [shape: f32[256,10], index: 0, kind: input, shape index: {}]   ;;  %s8319_s1 = inlined_call_operand.vmem [shape: f32[2,32], index: 1, kind: input, shape index: {}]   ;;  %s8320_s2 = inlined_call_operand.vmem [shape: f32[1,32], index: 2, kind: input, shape index: {}]   ;;  %s8321_s3 = inlined_call_operand.vmem [shape: f32[32,32], index: 3, kind: input, shape index: {}]   ;;  %s8322_s4 = inlined_call_operand.vmem [shape: f32[1,32], index: 4, kind: input, shape index: {}]   ;;  %s8323_s5 = inlined_call_operand.vmem [shape: f32[32,32], index: 5, kind: input, shape index: {}]   ;;  %s8324_s6 = inlined_call_operand.vmem [shape: f32[1,32], index: 6, kind: input, shape index: {}]   ;;  %s8325_s7 = inlined_call_operand.vmem [shape: f32[32,32], index: 7, kind: input, shape index: {}]   ;;  %s8326_s8 = inlined_call_operand.vmem [shape: f32[1,32], index: 8, kind: input, shape index: {}]   ;;  %s8327_s9 = inlined_call_operand.vmem [shape: f32[32,32], index: 9, kind: input, shape index: {}]   ;;  %s8328_s10 = inlined_call_operand.vmem [shape: f32[1,32], index: 10, kind: input, shape index: {}]   ;;  %s8329_s11 = inlined_call_operand.vmem [shape: f32[32,32], index: 11, kind: input, shape index: {}]   ;;  %s8330_s12 = inlined_call_operand.vmem [shape: f32[1,32], index: 12, kind: input, shape index: {}]   ;;  %s8331_s13 = inlined_call_operand.vmem [shape: f32[8,32], index: 13, kind: input, shape index: {}]   ;;  %s8332_s14 = inlined_call_operand.vmem [shape: f32[8,1], index: 14, kind: input, shape index: {}]   ;;  %s8333_s15 = inlined_call_operand.hbm [shape: f32[8,256], index: 15, kind: output, shape index: {}]  }
   0x1   :  { %8334 = sst [smem:[#allocation15_spill]] %s8318_s0 }
   0x2   :  { %8335 = sst [smem:[#allocation16_spill]] %s8319_s1 }
   0x3   :  { %8336 = sst [smem:[#allocation17_spill]] %s8320_s2 }
   0x4   :  { %8337 = sst [smem:[#allocation18_spill]] %s8321_s3 }
   0x5   :  { %8338 = sst [smem:[#allocation19_spill]] %s8322_s4 }
   0x6   :  { %20 = vsyncpa [#allocation4], 0 }
   0x7   :  { %22 = vsyncpa [#allocation4 + $0x1], 0  ;;  %s6453_s18 = smov 0   ;;  %s6455_s19 = smov 0  }
   0x8   :  { %s6457_s20 = smov 0   ;;  %s6459_s21 = smov 0  }
   0x9 LB: > { %s6474_s22 = sadd.s32 4294967295, %s6357_s21   ;;  %s4759_s23 = sadd.s32 4294967294, %s6357_s21   ;;  %s6357_s21 = sphi %s6459_s21, %s8369_s21   ;;  %s6353_s20 = sphi %s6457_s20, %s8368_s20   ;;  %s6349_s19 = sphi %s6455_s19, %s8367_s19   ;;  %s6345_s18 = sphi %s6453_s18, %s8366_s18  }
   0xa   : > { %s6478_s24 = sadd.s32 1, %s6357_s21   ;;  %s355_s25 = sadd.s32 1, %s6353_s20 }
   0xb   : > { %s352_s26 = ssub.s32 %s6357_s21, %s6478_s24  ;;  %p365_p0 = scmp.ne.s32.totalorder %s6353_s20, %s6349_s19 }
   0xc   : > { %p353_p1 = scmp.eq.s32.totalorder %s352_s26, 0  ;;  %p366_p2 = scmp.eq.s32.totalorder %s6474_s22, 1 }
   0xd   : > { %p371_p3 = scmp.ne.s32.totalorder %s6349_s19, %s6345_s18  ;;  %p372_p4 = scmp.eq.s32.totalorder %s4759_s23, 1 }
   0xe   : > { %s6489_s27 = scalar_select %p353_p1, %s6353_s20, %s355_s25  }
   0xf   : > { %p6491_p5 = por %p366_p2, %p365_p0  ;;  %p6495_p6 = por %p372_p4, %p371_p3 }
  0x10   : > { %p4762_p7 = scmp.ge.s32.totalorder %s6357_s21, 1  ;;  %p441_p8 = scmp.lt.s32.totalorder %s6357_s21, 3 }
  0x12   : > { %p442_p9 = pnand %p4762_p7, %p441_p8 }
  0x14   : > { %445 = sbr.rel (%p442_p9) target bundleno = 1948 (0x79c), region = 80 }
  0x1b   : > { %s4764_s30 = sshll.u32 %s6474_s22, 4  ;;  %v6359_v0 = vmov 0   ;;  %s8341_s0 = sld [smem:[#allocation15_spill]]  ;;  %v6360_v3 = vmov 5   ;;  %v6361_v24 = vmov 1   ;;  %v6362_v25 = vmov 6  }
  0x1c   : > { %6213 = vset.pattern.permute.xlu1 %v6359_v0  ;;  %6211 = vset.pattern.permute.xlu0 %v6359_v0  ;;  %p490_p10 = scmp.lt.s32.totalorder %s4764_s30, 31  ;;  %s8342_s3 = sld [smem:[#allocation18_spill]]  ;;  %v6363_v26 = vmov 2   ;;  %v6364_v34 = vmov 7   ;;  %vm736_vm0 = vcmask 261120   ;;  %vm6370_vm1 = vmmov 0  }
  0x1d   : > { %s8343_s1 = sld [smem:[#allocation16_spill]]  ;;  %s8344_s2 = sld [smem:[#allocation17_spill]]  ;;  %vm8226_vm2 = vmpackc.low %vm736_vm0, %vm736_vm0 }
  0x1e   : > { %s8371_s30 = smov (!%p490_p10, %s4764_s30), 31  ;;  %s8354_s4 = sld [smem:[#allocation19_spill]] }
  0x1f   : > { %s4765_s16 = sshll.u32 %s8371_s30, 3 }
  0x21   : > { %s6507_s25 = scalar_lea.vmem %s8341_s0, %s4765_s16  ;;  %s5064_s16 = sshll.u32 %s6474_s22, 7 }
  0x22   : > { %v6510_v1 = vld [vmem:[%s6507_s25 + $0x8] sm:$0xff]  ;;  %v6513_v2 = vld [vmem:[%s6507_s25] sm:$0xff]  ;;  %v6520_v4 = vld [vmem:[%s6507_s25 + $0x10] sm:$0xff]  ;;  %s6372_s22 = smov [#allocation3]  }
  0x23   : > { %521 = vperm.xlu1 %6213, %v6510_v1   ;;  %516 = vperm.xlu0 %6211, %v6513_v2   ;;  %v1665_v5 = vld [vmem:[%s8342_s3] sm:$0xff]  ;;  %v1666_v6 = vld [vmem:[%s8342_s3 + $0x8] sm:$0xff]  ;;  %v6532_v7 = vld [vmem:[%s6507_s25 + $0x18] sm:$0xff] }
  0x24   : > { %v5859_v8 = vpack.c.bf16 %v1666_v6, %v1665_v5  ;;  %v1667_v9 = vld [vmem:[%s8342_s3 + $0x10] sm:$0xff]  ;;  %v1668_v10 = vld [vmem:[%s8342_s3 + $0x18] sm:$0xff]  ;;  %v6543_v11 = vld [vmem:[%s6507_s25 + $0x20] sm:$0xff]  ;;  %s8276_s3 = scalar_lea.hbm %s8333_s15, %s5064_s16 }
  0x25   : > { %v5863_v12 = vpack.c.bf16 %v1668_v10, %v1667_v9  ;;  %v6548_v13 = vld [vmem:[%s6507_s25 + $0x28] sm:$0xff]  ;;  %v6553_v14 = vld [vmem:[%s6507_s25 + $0x30] sm:$0xff]  ;;  %v6558_v15 = vld [vmem:[%s6507_s25 + $0x38] sm:$0xff] }
  0x26   : > { %5860 = vmatprep.subr.bf16.mxu0 %v5859_v8  ;;  %5931 = vmatprep.subr.bf16.mxu1 %v5859_v8  ;;  %v6563_v16 = vld [vmem:[%s6507_s25 + $0x40] sm:$0xff]  ;;  %v6568_v17 = vld [vmem:[%s6507_s25 + $0x48] sm:$0xff]  ;;  %v6573_v18 = vld [vmem:[%s6507_s25 + $0x50] sm:$0xff] }
  0x27   : > { %6214 = vset.pattern.permute.xlu1 %v6360_v3  ;;  %6212 = vset.pattern.permute.xlu0 %v6360_v3  ;;  %v6578_v19 = vld [vmem:[%s6507_s25 + $0x58] sm:$0xff]  ;;  %v6583_v20 = vld [vmem:[%s6507_s25 + $0x60] sm:$0xff]  ;;  %v6588_v21 = vld [vmem:[%s6507_s25 + $0x68] sm:$0xff] }
  0x28   : > { %619 = vperm.xlu1 %6214, %v6510_v1   ;;  %615 = vperm.xlu0 %6212, %v6513_v2   ;;  %v6593_v22 = vld [vmem:[%s6507_s25 + $0x70] sm:$0xff]  ;;  %v6598_v23 = vld [vmem:[%s6507_s25 + $0x78] sm:$0xff]  ;;  %v6646_v29 = vld [vmem:[%s8343_s1] ss:$0 sm:$0xff] }
  0x29   : > { %5862 = vmatpush3.bf16.msra.mxu0 %v5859_v8  ;;  %5933 = vmatpush3.bf16.msra.mxu1 %v5859_v8  ;;  %v6652_v30 = vld [vmem:[%s8343_s1 + $0x1] ss:$0 sm:$0xff]  ;;  %v6663_v38 = vld [vmem:[%s8344_s2] ss:$0 sm:$0xff] }
  0x2a   : > { %5864 = vmatprep.subr.bf16.mxu0 %v5863_v12  ;;  %5932 = vmatprep.subr.bf16.mxu1 %v5863_v12 }
  0x2c   : > { %6215 = vset.pattern.permute.xlu1 %v6359_v0  ;;  %623 = vperm.xlu0 %6212, %v6520_v4  }
  0x2d   : > { %526 = vperm.xlu1 %6215, %v6520_v4   ;;  %5866 = vmatpush3.bf16.msra.mxu0 %v5863_v12 }
  0x2e   : > { %5934 = vmatpush3.bf16.msra.mxu1 %v5863_v12 }
  0x30   : > { %627 = vperm.xlu0 %6212, %v6532_v7  }
  0x31   : > { %531 = vperm.xlu1 %6215, %v6532_v7  }
  0x34   : > { %631 = vperm.xlu0 %6212, %v6543_v11  }
  0x35   : > { %536 = vperm.xlu1 %6215, %v6543_v11  }
  0x38   : > { %635 = vperm.xlu0 %6212, %v6548_v13  }
  0x39   : > { %541 = vperm.xlu1 %6215, %v6548_v13  }
  0x3c   : > { %639 = vperm.xlu0 %6212, %v6553_v14  }
  0x3d   : > { %546 = vperm.xlu1 %6215, %v6553_v14  }
  0x40   : > { %643 = vperm.xlu0 %6212, %v6558_v15  }
  0x41   : > { %551 = vperm.xlu1 %6215, %v6558_v15  }
  0x44   : > { %647 = vperm.xlu0 %6212, %v6563_v16  }
  0x45   : > { %556 = vperm.xlu1 %6215, %v6563_v16  }
  0x48   : > { %651 = vperm.xlu0 %6212, %v6568_v17  }
  0x49   : > { %561 = vperm.xlu1 %6215, %v6568_v17  }
  0x4c   : > { %655 = vperm.xlu0 %6212, %v6573_v18  }
  0x4d   : > { %566 = vperm.xlu1 %6215, %v6573_v18  }
  0x50   : > { %659 = vperm.xlu0 %6212, %v6578_v19  }
  0x51   : > { %571 = vperm.xlu1 %6215, %v6578_v19  }
  0x54   : > { %663 = vperm.xlu0 %6212, %v6583_v20  }
  0x55   : > { %576 = vperm.xlu1 %6215, %v6583_v20  }
  0x58   : > { %667 = vperm.xlu0 %6212, %v6588_v21  }
  0x59   : > { %581 = vperm.xlu1 %6215, %v6588_v21  }
  0x5c   : > { %671 = vperm.xlu0 %6212, %v6593_v22  }
  0x5d   : > { %586 = vperm.xlu1 %6215, %v6593_v22  }
  0x60   : > { %675 = vperm.xlu0 %6212, %v6598_v23  }
  0x61   : > { %591 = vperm.xlu1 %6215, %v6598_v23  }
  0x64   : > { %6218 = vset.pattern.permute.xlu0 %v6361_v24 }
  0x65   : > { %6216 = vset.pattern.permute.xlu1 %v6361_v24  ;;  %762 = vperm.xlu0 %6218, %v6520_v4  }
  0x66   : > { %754 = vperm.xlu1 %6216, %v6513_v2  }
  0x69   : > { %774 = vperm.xlu0 %6218, %v6548_v13  }
  0x6a   : > { %758 = vperm.xlu1 %6216, %v6510_v1  }
  0x6d   : > { %786 = vperm.xlu0 %6218, %v6563_v16  }
  0x6e   : > { %6217 = vset.pattern.permute.xlu1 %v6362_v25 }
  0x6f   : > { %838 = vperm.xlu1 %6217, %v6510_v1  }
  0x71   : > { %798 = vperm.xlu0 %6218, %v6578_v19  }
  0x73   : > { %842 = vperm.xlu1 %6217, %v6520_v4  }
  0x75   : > { %810 = vperm.xlu0 %6218, %v6593_v22  }
  0x77   : > { %6219 = vset.pattern.permute.xlu1 %v6361_v24 }
  0x78   : > { %766 = vperm.xlu1 %6219, %v6532_v7  }
  0x79   : > { %6227 = vset.pattern.permute.xlu0 %v6362_v25 }
  0x7a   : > { %834 = vperm.xlu0 %6227, %v6513_v2  }
  0x7c   : > { %770 = vperm.xlu1 %6219, %v6543_v11  }
  0x7e   : > { %846 = vperm.xlu0 %6227, %v6532_v7  }
  0x80   : > { %6220 = vset.pattern.permute.xlu1 %v6362_v25 }
  0x81   : > { %850 = vperm.xlu1 %6220, %v6543_v11  }
  0x82   : > { %858 = vperm.xlu0 %6227, %v6553_v14  }
  0x85   : > { %854 = vperm.xlu1 %6220, %v6548_v13  }
  0x86   : > { %870 = vperm.xlu0 %6227, %v6568_v17  }
  0x89   : > { %6221 = vset.pattern.permute.xlu1 %v6361_v24 }
  0x8a   : > { %778 = vperm.xlu1 %6221, %v6553_v14   ;;  %882 = vperm.xlu0 %6227, %v6583_v20  }
  0x8e   : > { %782 = vperm.xlu1 %6221, %v6558_v15   ;;  %894 = vperm.xlu0 %6227, %v6598_v23  }
  0x92   : > { %6222 = vset.pattern.permute.xlu1 %v6362_v25  ;;  %6231 = vset.pattern.permute.xlu0 %v6363_v26 }
  0x93   : > { %862 = vperm.xlu1 %6222, %v6558_v15   ;;  %966 = vperm.xlu0 %6231, %v6510_v1  }
  0x97   : > { %866 = vperm.xlu1 %6222, %v6563_v16   ;;  %978 = vperm.xlu0 %6231, %v6543_v11  }
  0x9b   : > { %6223 = vset.pattern.permute.xlu1 %v6361_v24  ;;  %990 = vperm.xlu0 %6231, %v6558_v15  }
  0x9c   : > { %790 = vperm.xlu1 %6223, %v6568_v17  }
  0x9f   : > { %1002 = vperm.xlu0 %6231, %v6573_v18  }
  0xa0   : > { %794 = vperm.xlu1 %6223, %v6573_v18  }
  0xa2   : > { %v522_v27 = vpop.permute.xlu1 %521  ;;  %v517_v28 = vpop.permute.xlu0 %516 }
  0xa3   : > { %1014 = vperm.xlu0 %6231, %v6588_v21   ;;  %v598_v31 = vmul.f32 %v6646_v29, %v517_v28  ;;  %v599_v35 = vmul.f32 %v6646_v29, %v522_v27  ;;  %v6365_v27 = vmov 8  }
  0xa4   : > { %6224 = vset.pattern.permute.xlu1 %v6362_v25 }
  0xa5   : > { %874 = vperm.xlu1 %6224, %v6573_v18  }
  0xa7   : > { %v620_v32 = vpop.permute.xlu1 %619  ;;  %v616_v33 = vpop.permute.xlu0 %615  ;;  %6240 = vset.pattern.permute.xlu0 %v6364_v34 }
  0xa8   : > { %v683_v36 = vmul.f32 %v6652_v30, %v620_v32  ;;  %v682_v37 = vmul.f32 %v6652_v30, %v616_v33  ;;  %1050 = vperm.xlu0 %6240, %v6520_v4  }
  0xa9   : > { %878 = vperm.xlu1 %6224, %v6578_v19  }
  0xaa   : > { %v699_v39 = vadd.f32 %v683_v36, %v599_v35  ;;  %v698_v40 = vadd.f32 %v682_v37, %v598_v31 }
  0xab   : > { %v624_v41 = vpop.permute.xlu0 %623 }
  0xac   : > { %v721_v42 = vadd.f32 %v6663_v38, %v699_v39  ;;  %v720_v43 = vadd.f32 %v6663_v38, %v698_v40  ;;  %v527_v44 = vpop.permute.xlu1 %526  ;;  %v684_v45 = vmul.f32 %v6652_v30, %v624_v41  ;;  %1062 = vperm.xlu0 %6240, %v6548_v13  }
  0xad   : > { %v600_v46 = vmul.f32 %v6646_v29, %v527_v44  ;;  %6225 = vset.pattern.permute.xlu1 %v6361_v24 }
  0xae   : > { %738 = vst.msk [vmem:[#allocation2 + $0x8] sm:$0xff] %vm736_vm0, %v721_v42  ;;  %737 = vst.msk [vmem:[#allocation2] sm:$0xff] %vm736_vm0, %v720_v43  ;;  %802 = vperm.xlu1 %6225, %v6583_v20  }
  0xaf   : > { %v700_v47 = vadd.f32 %v684_v45, %v600_v46  ;;  %v628_v48 = vpop.permute.xlu0 %627 }
  0xb0   : > { %v532_v49 = vpop.permute.xlu1 %531  ;;  %v685_v50 = vmul.f32 %v6652_v30, %v628_v48  ;;  %1074 = vperm.xlu0 %6240, %v6563_v16  }
  0xb1   : > { %v722_v51 = vadd.f32 %v6663_v38, %v700_v47  ;;  %v601_v52 = vmul.f32 %v6646_v29, %v532_v49 }
  0xb2   : > { %806 = vperm.xlu1 %6225, %v6588_v21  }
  0xb3   : > { %739 = vst.msk [vmem:[#allocation2 + $0x10] sm:$0xff] %vm736_vm0, %v722_v51  ;;  %v701_v53 = vadd.f32 %v685_v50, %v601_v52  ;;  %v632_v54 = vpop.permute.xlu0 %631 }
  0xb4   : > { %v537_v55 = vpop.permute.xlu1 %536  ;;  %v686_v56 = vmul.f32 %v6652_v30, %v632_v54  ;;  %1086 = vperm.xlu0 %6240, %v6578_v19  }
  0xb5   : > { %v723_v57 = vadd.f32 %v6663_v38, %v701_v53  ;;  %v602_v58 = vmul.f32 %v6646_v29, %v537_v55  ;;  %v6685_v59 = vld [vmem:[#allocation2] sm:$0xff]  ;;  %v6687_v60 = vld [vmem:[#allocation2 + $0x8] sm:$0xff] }
  0xb6   : > { %6226 = vset.pattern.permute.xlu1 %v6362_v25  ;;  %5384 = vmatprep.mubr.msk.f32.mxu0 %vm736_vm0, %v6685_v59 }
  0xb7   : > { %740 = vst.msk [vmem:[#allocation2 + $0x18] sm:$0xff] %vm736_vm0, %v723_v57  ;;  %v702_v61 = vadd.f32 %v686_v56, %v602_v58  ;;  %886 = vperm.xlu1 %6226, %v6588_v21   ;;  %5385 = vmatmul.mubr.msk.f32.vlgmr.msra.gmra.mrb[0].mxu0 %vm736_vm0, %v6687_v60  ;;  %v636_v62 = vpop.permute.xlu0 %635 }
  0xb8   : > { %v542_v63 = vpop.permute.xlu1 %541  ;;  %v687_v3 = vmul.f32 %v6652_v30, %v636_v62  ;;  %1098 = vperm.xlu0 %6240, %v6593_v22  }
  0xb9   : > { %v724_v5 = vadd.f32 %v6663_v38, %v702_v61  ;;  %v603_v6 = vmul.f32 %v6646_v29, %v542_v63 }
  0xba   : > { %v6700_v8 = vld [vmem:[#allocation2 + $0x10] sm:$0xff] }
  0xbb   : > { %741 = vst.msk [vmem:[#allocation2 + $0x20] sm:$0xff] %vm736_vm0, %v724_v5  ;;  %v703_v9 = vadd.f32 %v687_v3, %v603_v6  ;;  %890 = vperm.xlu1 %6226, %v6593_v22   ;;  %5387 = vmatprep.mubr.msk.f32.mxu0 %vm736_vm0, %v6700_v8  ;;  %v640_v10 = vpop.permute.xlu0 %639 }
  0xbc   : > { %v547_v12 = vpop.permute.xlu1 %546  ;;  %v688_v25 = vmul.f32 %v6652_v30, %v640_v10  ;;  %6245 = vset.pattern.permute.xlu0 %v6365_v27 }
  0xbd   : > { %v725_v28 = vadd.f32 %v6663_v38, %v703_v9  ;;  %v604_v31 = vmul.f32 %v6646_v29, %v547_v12  ;;  %1254 = vperm.xlu0 %6245, %v6510_v1  }
  0xbe   : > { %v6711_v32 = vld [vmem:[#allocation2 + $0x18] sm:$0xff] }
  0xbf   : > { %742 = vst.msk [vmem:[#allocation2 + $0x28] sm:$0xff] %vm736_vm0, %v725_v28  ;;  %v704_v33 = vadd.f32 %v688_v25, %v604_v31  ;;  %6228 = vset.pattern.permute.xlu1 %v6361_v24  ;;  %5388 = vmatmul.mubr.msk.f32.gmra.mrb[2].mxu0 %vm736_vm0, %v6711_v32  ;;  %v644_v35 = vpop.permute.xlu0 %643  ;;  %v6366_v25 = vmov 3  }
  0xc0   : > { %v552_v36 = vpop.permute.xlu1 %551  ;;  %814 = vperm.xlu1 %6228, %v6598_v23   ;;  %v689_v37 = vmul.f32 %v6652_v30, %v644_v35 }
  0xc1   : > { %v726_v39 = vadd.f32 %v6663_v38, %v704_v33  ;;  %v605_v40 = vmul.f32 %v6646_v29, %v552_v36  ;;  %1266 = vperm.xlu0 %6245, %v6543_v11  }
  0xc2   : > { %v6722_v41 = vld [vmem:[#allocation2 + $0x20] sm:$0xff] }
  0xc3   : > { %743 = vst.msk [vmem:[#allocation2 + $0x30] sm:$0xff] %vm736_vm0, %v726_v39  ;;  %v705_v24 = vadd.f32 %v689_v37, %v605_v40  ;;  %5390 = vmatprep.mubr.msk.f32.mxu0 %vm736_vm0, %v6722_v41  ;;  %v648_v42 = vpop.permute.xlu0 %647 }
  0xc4   : > { %v557_v43 = vpop.permute.xlu1 %556  ;;  %6229 = vset.pattern.permute.xlu1 %v6363_v26  ;;  %v690_v44 = vmul.f32 %v6652_v30, %v648_v42 }
  0xc5   : > { %v727_v45 = vadd.f32 %v6663_v38, %v705_v24  ;;  %v606_v46 = vmul.f32 %v6646_v29, %v557_v43  ;;  %962 = vperm.xlu1 %6229, %v6513_v2   ;;  %1278 = vperm.xlu0 %6245, %v6558_v15  }
  0xc6   : > { %v6733_v47 = vld [vmem:[#allocation2 + $0x28] sm:$0xff] }
  0xc7   : > { %744 = vst.msk [vmem:[#allocation2 + $0x38] sm:$0xff] %vm736_vm0, %v727_v45  ;;  %v706_v48 = vadd.f32 %v690_v44, %v606_v46  ;;  %5391 = vmatmul.mubr.msk.f32.gmra.mrb[4].mxu0 %vm736_vm0, %v6733_v47  ;;  %v652_v49 = vpop.permute.xlu0 %651 }
  0xc8   : > { %v562_v50 = vpop.permute.xlu1 %561  ;;  %v691_v51 = vmul.f32 %v6652_v30, %v652_v49 }
  0xc9   : > { %v728_v52 = vadd.f32 %v6663_v38, %v706_v48  ;;  %v607_v53 = vmul.f32 %v6646_v29, %v562_v50  ;;  %6230 = vset.pattern.permute.xlu1 %v6364_v34  ;;  %1290 = vperm.xlu0 %6245, %v6573_v18  }
  0xca   : > { %1042 = vperm.xlu1 %6230, %v6513_v2   ;;  %v6744_v54 = vld [vmem:[#allocation2 + $0x30] sm:$0xff] }
  0xcb   : > { %745 = vst.msk [vmem:[#allocation2 + $0x40] sm:$0xff] %vm736_vm0, %v728_v52  ;;  %v707_v55 = vadd.f32 %v691_v51, %v607_v53  ;;  %5393 = vmatprep.mubr.msk.f32.mxu0 %vm736_vm0, %v6744_v54  ;;  %v656_v56 = vpop.permute.xlu0 %655 }
  0xcc   : > { %v567_v57 = vpop.permute.xlu1 %566  ;;  %v692_v58 = vmul.f32 %v6652_v30, %v656_v56 }
  0xcd   : > { %v729_v61 = vadd.f32 %v6663_v38, %v707_v55  ;;  %v608_v62 = vmul.f32 %v6646_v29, %v567_v57  ;;  %1302 = vperm.xlu0 %6245, %v6588_v21  }
  0xce   : > { %1046 = vperm.xlu1 %6230, %v6510_v1   ;;  %v6754_v63 = vld [vmem:[#allocation2 + $0x38] sm:$0xff] }
  0xcf   : > { %746 = vst.msk [vmem:[#allocation2 + $0x48] sm:$0xff] %vm736_vm0, %v729_v61  ;;  %v708_v3 = vadd.f32 %v692_v58, %v608_v62  ;;  %5394 = vmatmul.mubr.msk.f32.gmra.mrb[6].mxu0 %vm736_vm0, %v6754_v63  ;;  %v660_v5 = vpop.permute.xlu0 %659 }
  0xd0   : > { %v572_v6 = vpop.permute.xlu1 %571  ;;  %v693_v9 = vmul.f32 %v6652_v30, %v660_v5 }
  0xd1   : > { %v730_v10 = vadd.f32 %v6663_v38, %v708_v3  ;;  %v609_v12 = vmul.f32 %v6646_v29, %v572_v6  ;;  %6254 = vset.pattern.permute.xlu0 %v6366_v25 }
  0xd2   : > { %6232 = vset.pattern.permute.xlu1 %v6363_v26  ;;  %v6764_v28 = vld [vmem:[#allocation2 + $0x40] sm:$0xff]  ;;  %1170 = vperm.xlu0 %6254, %v6513_v2  }
  0xd3   : > { %747 = vst.msk [vmem:[#allocation2 + $0x50] sm:$0xff] %vm736_vm0, %v730_v10  ;;  %v709_v31 = vadd.f32 %v693_v9, %v609_v12  ;;  %970 = vperm.xlu1 %6232, %v6520_v4   ;;  %5396 = vmatprep.mubr.msk.f32.mxu0 %vm736_vm0, %v6764_v28  ;;  %v664_v33 = vpop.permute.xlu0 %663 }
  0xd4   : > { %v577_v35 = vpop.permute.xlu1 %576  ;;  %v694_v36 = vmul.f32 %v6652_v30, %v664_v33 }
  0xd5   : > { %v731_v37 = vadd.f32 %v6663_v38, %v709_v31  ;;  %v610_v39 = vmul.f32 %v6646_v29, %v577_v35 }
  0xd6   : > { %v6774_v40 = vld [vmem:[#allocation2 + $0x48] sm:$0xff]  ;;  %1182 = vperm.xlu0 %6254, %v6532_v7  }
  0xd7   : > { %748 = vst.msk [vmem:[#allocation2 + $0x58] sm:$0xff] %vm736_vm0, %v731_v37  ;;  %v710_v24 = vadd.f32 %v694_v36, %v610_v39  ;;  %974 = vperm.xlu1 %6232, %v6532_v7   ;;  %5397 = vmatmul.mubr.msk.f32.gmra.mrb[8].mxu0 %vm736_vm0, %v6774_v40  ;;  %v668_v42 = vpop.permute.xlu0 %667 }
  0xd8   : > { %v582_v43 = vpop.permute.xlu1 %581  ;;  %v695_v44 = vmul.f32 %v6652_v30, %v668_v42 }
  0xd9   : > { %v732_v45 = vadd.f32 %v6663_v38, %v710_v24  ;;  %v611_v46 = vmul.f32 %v6646_v29, %v582_v43 }
  0xda   : > { %v6784_v48 = vld [vmem:[#allocation2 + $0x50] sm:$0xff]  ;;  %1194 = vperm.xlu0 %6254, %v6553_v14  }
  0xdb   : > { %749 = vst.msk [vmem:[#allocation2 + $0x60] sm:$0xff] %vm736_vm0, %v732_v45  ;;  %v711_v49 = vadd.f32 %v695_v44, %v611_v46  ;;  %6233 = vset.pattern.permute.xlu1 %v6364_v34  ;;  %5399 = vmatprep.mubr.msk.f32.mxu0 %vm736_vm0, %v6784_v48  ;;  %v672_v50 = vpop.permute.xlu0 %671 }
  0xdc   : > { %v587_v51 = vpop.permute.xlu1 %586  ;;  %1054 = vperm.xlu1 %6233, %v6532_v7   ;;  %v696_v52 = vmul.f32 %v6652_v30, %v672_v50 }
  0xdd   : > { %v733_v53 = vadd.f32 %v6663_v38, %v711_v49  ;;  %v612_v55 = vmul.f32 %v6646_v29, %v587_v51 }
  0xde   : > { %v6795_v56 = vld [vmem:[#allocation2 + $0x58] sm:$0xff]  ;;  %1206 = vperm.xlu0 %6254, %v6568_v17  }
  0xdf   : > { %750 = vst.msk [vmem:[#allocation2 + $0x68] sm:$0xff] %vm736_vm0, %v733_v53  ;;  %v712_v57 = vadd.f32 %v696_v52, %v612_v55  ;;  %5400 = vmatmul.mubr.msk.f32.gmra.mrb[10].mxu0 %vm736_vm0, %v6795_v56  ;;  %v676_v58 = vpop.permute.xlu0 %675 }
  0xe0   : > { %v592_v61 = vpop.permute.xlu1 %591  ;;  %1058 = vperm.xlu1 %6233, %v6543_v11   ;;  %v697_v62 = vmul.f32 %v6652_v30, %v676_v58 }
  0xe1   : > { %v734_v3 = vadd.f32 %v6663_v38, %v712_v57  ;;  %v613_v5 = vmul.f32 %v6646_v29, %v592_v61 }
  0xe2   : > { %v6805_v6 = vld [vmem:[#allocation2 + $0x60] sm:$0xff]  ;;  %1218 = vperm.xlu0 %6254, %v6583_v20  }
  0xe3   : > { %751 = vst.msk [vmem:[#allocation2 + $0x70] sm:$0xff] %vm736_vm0, %v734_v3  ;;  %v713_v9 = vadd.f32 %v697_v62, %v613_v5  ;;  %5402 = vmatprep.mubr.msk.f32.mxu0 %vm736_vm0, %v6805_v6 }
  0xe4   : > { %6234 = vset.pattern.permute.xlu1 %v6363_v26  ;;  %v763_v10 = vpop.permute.xlu0 %762 }
  0xe5   : > { %v735_v12 = vadd.f32 %v6663_v38, %v713_v9  ;;  %982 = vperm.xlu1 %6234, %v6548_v13   ;;  %v755_v31 = vpop.permute.xlu1 %754  ;;  %v819_v46 = vmul.f32 %v6646_v29, %v763_v10 }
  0xe6   : > { %v6814_v33 = vld [vmem:[#allocation2 + $0x68] sm:$0xff]  ;;  %1230 = vperm.xlu0 %6254, %v6598_v23   ;;  %v817_v62 = vmul.f32 %v6646_v29, %v755_v31 }
  0xe7   : > { %752 = vst.msk [vmem:[#allocation2 + $0x78] sm:$0xff] %vm736_vm0, %v735_v12  ;;  %5403 = vmatmul.mubr.msk.f32.gmra.mrb[12].mxu0 %vm736_vm0, %v6814_v33 }
  0xe8   : > { %v775_v35 = vpop.permute.xlu0 %774 }
  0xe9   : > { %986 = vperm.xlu1 %6234, %v6553_v14   ;;  %v759_v36 = vpop.permute.xlu1 %758 }
  0xea   : > { %v6821_v37 = vld [vmem:[#allocation2 + $0x70] sm:$0xff]  ;;  %v818_v43 = vmul.f32 %v6646_v29, %v759_v36 }
  0xeb   : > { %5405 = vmatprep.mubr.msk.f32.mxu0 %vm736_vm0, %v6821_v37 }
  0xec   : > { %v6825_v39 = vpop.permute.xlu0 %786 }
  0xed   : > { %6235 = vset.pattern.permute.xlu1 %v6364_v34 }
  0xee   : > { %1066 = vperm.xlu1 %6235, %v6553_v14   ;;  %v839_v24 = vpop.permute.xlu1 %838  ;;  %v6829_v42 = vld [vmem:[#allocation2 + $0x78] sm:$0xff] }
  0xef   : > { %v898_v44 = vmul.f32 %v6652_v30, %v839_v24  ;;  %5406 = vmatmul.mubr.msk.f32.gmra.mrb[14].mxu0 %vm736_vm0, %v6829_v42 }
  0xf0   : > { %v6835_v45 = vpop.permute.xlu0 %798 }
  0xf1   : > { %v914_v49 = vadd.f32 %v898_v44, %v818_v43 }
  0xf2   : > { %1070 = vperm.xlu1 %6235, %v6558_v15   ;;  %v843_v50 = vpop.permute.xlu1 %842 }
  0xf3   : > { %v930_v51 = vadd.f32 %v6663_v38, %v914_v49  ;;  %v899_v52 = vmul.f32 %v6652_v30, %v843_v50  ;;  %v822_v50 = vmul.f32 %v6646_v29, %v775_v35 }
  0xf4   : > { %v6841_v53 = vpop.permute.xlu0 %810 }
  0xf5   : > { %946 = vst.msk [vmem:[#allocation2 + $0x88] sm:$0xff] %vm736_vm0, %v930_v51  ;;  %v915_v55 = vadd.f32 %v899_v52, %v819_v46 }
  0xf6   : > { %6236 = vset.pattern.permute.xlu1 %v6363_v26 }
  0xf7   : > { %v931_v57 = vadd.f32 %v6663_v38, %v915_v55  ;;  %994 = vperm.xlu1 %6236, %v6563_v16   ;;  %v767_v58 = vpop.permute.xlu1 %766 }
  0xf8   : > { %v820_v12 = vmul.f32 %v6646_v29, %v767_v58 }
  0xf9   : > { %947 = vst.msk [vmem:[#allocation2 + $0x90] sm:$0xff] %vm736_vm0, %v931_v57  ;;  %v835_v61 = vpop.permute.xlu0 %834 }
  0xfa   : > { %v897_v3 = vmul.f32 %v6652_v30, %v835_v61 }
  0xfb   : > { %998 = vperm.xlu1 %6236, %v6568_v17   ;;  %v771_v5 = vpop.permute.xlu1 %770 }
  0xfc   : > { %v913_v9 = vadd.f32 %v897_v3, %v817_v62  ;;  %v821_v44 = vmul.f32 %v6646_v29, %v771_v5  ;;  %v6367_v3 = vmov 9  }
  0xfd   : > { %v847_v10 = vpop.permute.xlu0 %846  ;;  %6257 = vset.pattern.permute.xlu0 %v6367_v3 }
  0xfe   : > { %v929_v36 = vadd.f32 %v6663_v38, %v913_v9  ;;  %v900_v24 = vmul.f32 %v6652_v30, %v847_v10  ;;  %1458 = vperm.xlu0 %6257, %v6513_v2  }
  0xff   : > { %6237 = vset.pattern.permute.xlu1 %v6364_v34 }
 0x100   : > { %945 = vst.msk [vmem:[#allocation2 + $0x80] sm:$0xff] %vm736_vm0, %v929_v36  ;;  %v916_v43 = vadd.f32 %v900_v24, %v820_v12  ;;  %1078 = vperm.xlu1 %6237, %v6568_v17   ;;  %v851_v31 = vpop.permute.xlu1 %850  ;;  %v6879_v10 = vld [vmem:[#allocation2 + $0x90] sm:$0xff] }
 0x101   : > { %v901_v46 = vmul.f32 %v6652_v30, %v851_v31  ;;  %v859_v58 = vpop.permute.xlu0 %858 }
 0x102   : > { %v932_v49 = vadd.f32 %v6663_v38, %v916_v43  ;;  %v903_v35 = vmul.f32 %v6652_v30, %v859_v58  ;;  %1470 = vperm.xlu0 %6257, %v6532_v7  }
 0x103   : > { %v917_v51 = vadd.f32 %v901_v46, %v821_v44 }
 0x104   : > { %948 = vst.msk [vmem:[#allocation2 + $0x98] sm:$0xff] %vm736_vm0, %v932_v49  ;;  %1082 = vperm.xlu1 %6237, %v6573_v18   ;;  %v855_v52 = vpop.permute.xlu1 %854  ;;  %v6872_v18 = vld [vmem:[#allocation2 + $0x88] sm:$0xff] }
 0x105   : > { %v933_v55 = vadd.f32 %v6663_v38, %v917_v51  ;;  %v902_v57 = vmul.f32 %v6652_v30, %v855_v52 }
 0x107   : > { %949 = vst.msk [vmem:[#allocation2 + $0xa0] sm:$0xff] %vm736_vm0, %v933_v55  ;;  %v918_v61 = vadd.f32 %v902_v57, %v822_v50  ;;  %v6866_v62 = vld [vmem:[#allocation2 + $0x80] sm:$0xff]  ;;  %v6368_v50 = vmov 4   ;;  %v825_v55 = vmul.f32 %v6646_v29, %v6825_v39 }
 0x108   : > { %6238 = vset.pattern.permute.xlu1 %v6363_v26  ;;  %5408 = vmatprep.mubr.msk.f32.mxu0 %vm736_vm0, %v6866_v62 }
 0x109   : > { %v934_v5 = vadd.f32 %v6663_v38, %v918_v61  ;;  %1006 = vperm.xlu1 %6238, %v6578_v19   ;;  %v779_v9 = vpop.permute.xlu1 %778  ;;  %5409 = vmatmul.mubr.msk.f32.gmra.mrb[16].mxu0 %vm736_vm0, %v6872_v18 }
 0x10a   : > { %v823_v12 = vmul.f32 %v6646_v29, %v779_v9  ;;  %5411 = vmatprep.mubr.msk.f32.mxu0 %vm736_vm0, %v6879_v10  ;;  %6260 = vset.pattern.permute.xlu0 %v6368_v50  ;;  %v871_v9 = vpop.permute.xlu0 %870 }
 0x10b   : > { %950 = vst.msk [vmem:[#allocation2 + $0xa8] sm:$0xff] %vm736_vm0, %v934_v5  ;;  %v6886_v36 = vld [vmem:[#allocation2 + $0x98] sm:$0xff]  ;;  %1386 = vperm.xlu0 %6260, %v6520_v4  }
 0x10c   : > { %v919_v24 = vadd.f32 %v903_v35, %v823_v12 }
 0x10d   : > { %1010 = vperm.xlu1 %6238, %v6583_v20   ;;  %v783_v43 = vpop.permute.xlu1 %782  ;;  %5412 = vmatmul.mubr.msk.f32.gmra.mrb[18].mxu0 %vm736_vm0, %v6886_v36 }
 0x10e   : > { %v935_v31 = vadd.f32 %v6663_v38, %v919_v24  ;;  %v6892_v44 = vld [vmem:[#allocation2 + $0xa0] sm:$0xff]  ;;  %v824_v51 = vmul.f32 %v6646_v29, %v783_v43 }
 0x10f   : > { %5414 = vmatprep.mubr.msk.f32.mxu0 %vm736_vm0, %v6892_v44  ;;  %1398 = vperm.xlu0 %6260, %v6548_v13  }
 0x110   : > { %951 = vst.msk [vmem:[#allocation2 + $0xb0] sm:$0xff] %vm736_vm0, %v935_v31 }
 0x111   : > { %6239 = vset.pattern.permute.xlu1 %v6364_v34 }
 0x112   : > { %1090 = vperm.xlu1 %6239, %v6583_v20   ;;  %v863_v46 = vpop.permute.xlu1 %862  ;;  %v6900_v49 = vld [vmem:[#allocation2 + $0xa8] sm:$0xff] }
 0x113   : > { %v904_v52 = vmul.f32 %v6652_v30, %v863_v46  ;;  %5415 = vmatmul.mubr.msk.f32.gmra.mrb[20].mxu0 %vm736_vm0, %v6900_v49  ;;  %6263 = vset.pattern.permute.xlu0 %v6367_v3 }
 0x114   : > { %1482 = vperm.xlu0 %6263, %v6553_v14  }
 0x115   : > { %v920_v57 = vadd.f32 %v904_v52, %v824_v51 }
 0x116   : > { %1094 = vperm.xlu1 %6239, %v6588_v21   ;;  %v867_v58 = vpop.permute.xlu1 %866  ;;  %v906_v21 = vmul.f32 %v6652_v30, %v871_v9 }
 0x117   : > { %v936_v61 = vadd.f32 %v6663_v38, %v920_v57  ;;  %v905_v35 = vmul.f32 %v6652_v30, %v867_v58  ;;  %v6913_v5 = vld [vmem:[#allocation2 + $0xb0] sm:$0xff] }
 0x118   : > { %5417 = vmatprep.mubr.msk.f32.mxu0 %vm736_vm0, %v6913_v5  ;;  %1494 = vperm.xlu0 %6263, %v6568_v17  }
 0x119   : > { %952 = vst.msk [vmem:[#allocation2 + $0xb8] sm:$0xff] %vm736_vm0, %v936_v61  ;;  %v921_v12 = vadd.f32 %v905_v35, %v825_v55  ;;  %v883_v61 = vpop.permute.xlu0 %882 }
 0x11a   : > { %6241 = vset.pattern.permute.xlu1 %v6363_v26 }
 0x11b   : > { %v937_v39 = vadd.f32 %v6663_v38, %v921_v12  ;;  %1018 = vperm.xlu1 %6241, %v6593_v22   ;;  %v791_v24 = vpop.permute.xlu1 %790 }
 0x11c   : > { %v826_v43 = vmul.f32 %v6646_v29, %v791_v24  ;;  %6266 = vset.pattern.permute.xlu0 %v6368_v50 }
 0x11d   : > { %953 = vst.msk [vmem:[#allocation2 + $0xc0] sm:$0xff] %vm736_vm0, %v937_v39  ;;  %1410 = vperm.xlu0 %6266, %v6563_v16   ;;  %v895_v24 = vpop.permute.xlu0 %894 }
 0x11e   : > { %v922_v31 = vadd.f32 %v906_v21, %v826_v43  ;;  %v909_v43 = vmul.f32 %v6652_v30, %v883_v61 }
 0x11f   : > { %1022 = vperm.xlu1 %6241, %v6598_v23   ;;  %v795_v46 = vpop.permute.xlu1 %794 }
 0x120   : > { %v938_v26 = vadd.f32 %v6663_v38, %v922_v31  ;;  %v6929_v51 = vld [vmem:[#allocation2 + $0xb8] sm:$0xff]  ;;  %v827_v57 = vmul.f32 %v6646_v29, %v795_v46 }
 0x121   : > { %5418 = vmatmul.mubr.msk.f32.gmra.mrb[22].mxu0 %vm736_vm0, %v6929_v51  ;;  %1422 = vperm.xlu0 %6266, %v6578_v19  }
 0x122   : > { %954 = vst.msk [vmem:[#allocation2 + $0xc8] sm:$0xff] %vm736_vm0, %v938_v26  ;;  %v967_v26 = vpop.permute.xlu0 %966 }
 0x123   : > { %6242 = vset.pattern.permute.xlu1 %v6364_v34  ;;  %v828_v34 = vmul.f32 %v6646_v29, %v6835_v45 }
 0x124   : > { %1102 = vperm.xlu1 %6242, %v6598_v23   ;;  %v875_v52 = vpop.permute.xlu1 %874  ;;  %v6937_v55 = vld [vmem:[#allocation2 + $0xc0] sm:$0xff] }
 0x125   : > { %v907_v58 = vmul.f32 %v6652_v30, %v875_v52  ;;  %5420 = vmatprep.mubr.msk.f32.mxu0 %vm736_vm0, %v6937_v55  ;;  %6269 = vset.pattern.permute.xlu0 %v6367_v3 }
 0x126   : > { %1506 = vperm.xlu0 %6269, %v6583_v20   ;;  %v6977_v61 = vpop.permute.xlu0 %978 }
 0x127   : > { %v923_v35 = vadd.f32 %v907_v58, %v827_v57 }
 0x128   : > { %6243 = vset.pattern.permute.xlu1 %v6365_v27  ;;  %v879_v9 = vpop.permute.xlu1 %878 }
 0x129   : > { %v939_v12 = vadd.f32 %v6663_v38, %v923_v35  ;;  %v908_v21 = vmul.f32 %v6652_v30, %v879_v9  ;;  %1250 = vperm.xlu1 %6243, %v6513_v2   ;;  %v6951_v39 = vld [vmem:[#allocation2 + $0xc8] sm:$0xff] }
 0x12a   : > { %5421 = vmatmul.mubr.msk.f32.gmra.mrb[24].mxu0 %vm736_vm0, %v6951_v39  ;;  %6271 = vset.pattern.permute.xlu0 %v6368_v50 }
 0x12b   : > { %955 = vst.msk [vmem:[#allocation2 + $0xd0] sm:$0xff] %vm736_vm0, %v939_v12  ;;  %v924_v45 = vadd.f32 %v908_v21, %v828_v34  ;;  %1434 = vperm.xlu0 %6271, %v6593_v22   ;;  %v831_v22 = vmul.f32 %v6646_v29, %v6841_v53 }
 0x12d   : > { %v940_v31 = vadd.f32 %v6663_v38, %v924_v45  ;;  %6244 = vset.pattern.permute.xlu1 %v6366_v25  ;;  %v803_v46 = vpop.permute.xlu1 %802 }
 0x12e   : > { %v829_v2 = vmul.f32 %v6646_v29, %v803_v46  ;;  %1174 = vperm.xlu1 %6244, %v6510_v1  }
 0x12f   : > { %956 = vst.msk [vmem:[#allocation2 + $0xd8] sm:$0xff] %vm736_vm0, %v940_v31  ;;  %6273 = vset.pattern.permute.xlu0 %v6367_v3 }
 0x130   : > { %v925_v19 = vadd.f32 %v909_v43, %v829_v2  ;;  %1518 = vperm.xlu0 %6273, %v6598_v23   ;;  %v912_v23 = vmul.f32 %v6652_v30, %v895_v24 }
 0x131   : > { %v807_v52 = vpop.permute.xlu1 %806 }
 0x132   : > { %v941_v57 = vadd.f32 %v6663_v38, %v925_v19  ;;  %1178 = vperm.xlu1 %6244, %v6520_v4   ;;  %v6967_v58 = vld [vmem:[#allocation2 + $0xd0] sm:$0xff]  ;;  %v830_v34 = vmul.f32 %v6646_v29, %v807_v52 }
 0x133   : > { %5423 = vmatprep.mubr.msk.f32.mxu0 %vm736_vm0, %v6967_v58 }
 0x134   : > { %957 = vst.msk [vmem:[#allocation2 + $0xe0] sm:$0xff] %vm736_vm0, %v941_v57  ;;  %6275 = vset.pattern.permute.xlu0 %v6359_v0 }
 0x136   : > { %6246 = vset.pattern.permute.xlu1 %v6365_v27  ;;  %v887_v1 = vpop.permute.xlu1 %886  ;;  %v6975_v20 = vld [vmem:[#allocation2 + $0xd8] sm:$0xff] }
 0x137   : > { %v910_v35 = vmul.f32 %v6652_v30, %v887_v1  ;;  %1258 = vperm.xlu1 %6246, %v6520_v4   ;;  %5424 = vmatmul.mubr.msk.f32.gmra.mrb[26].mxu0 %vm736_vm0, %v6975_v20  ;;  %v6995_v4 = vpop.permute.xlu0 %990 }
 0x139   : > { %v926_v9 = vadd.f32 %v910_v35, %v830_v34 }
 0x13a   : > { %v891_v12 = vpop.permute.xlu1 %890 }
 0x13b   : > { %v942_v21 = vadd.f32 %v6663_v38, %v926_v9  ;;  %v911_v45 = vmul.f32 %v6652_v30, %v891_v12  ;;  %1262 = vperm.xlu1 %6246, %v6532_v7   ;;  %v6991_v43 = vld [vmem:[#allocation2 + $0xe0] sm:$0xff]  ;;  %v7005_v19 = vpop.permute.xlu0 %1002  ;;  %v1026_v9 = vmul.f32 %v6646_v29, %v967_v26 }
 0x13c   : > { %5426 = vmatprep.mubr.msk.f32.mxu0 %vm736_vm0, %v6991_v43 }
 0x13d   : > { %958 = vst.msk [vmem:[#allocation2 + $0xe8] sm:$0xff] %vm736_vm0, %v942_v21  ;;  %v927_v53 = vadd.f32 %v911_v45, %v831_v22 }
 0x13f   : > { %v943_v31 = vadd.f32 %v6663_v38, %v927_v53  ;;  %6247 = vset.pattern.permute.xlu1 %v6366_v25  ;;  %v815_v46 = vpop.permute.xlu1 %814  ;;  %v7017_v1 = vpop.permute.xlu0 %1014 }
 0x140   : > { %v832_v7 = vmul.f32 %v6646_v29, %v815_v46  ;;  %1186 = vperm.xlu1 %6247, %v6543_v11  }
 0x141   : > { %959 = vst.msk [vmem:[#allocation2 + $0xf0] sm:$0xff] %vm736_vm0, %v943_v31 }
 0x142   : > { %v928_v2 = vadd.f32 %v912_v23, %v832_v7 }
 0x143   : > { %v1051_v23 = vpop.permute.xlu0 %1050 }
 0x144   : > { %v944_v52 = vadd.f32 %v6663_v38, %v928_v2  ;;  %1190 = vperm.xlu1 %6247, %v6548_v13   ;;  %v963_v57 = vpop.permute.xlu1 %962  ;;  %v7009_v24 = vld [vmem:[#allocation2 + $0xe8] sm:$0xff]  ;;  %v1107_v26 = vmul.f32 %v6652_v30, %v1051_v23 }
 0x145   : > { %5427 = vmatmul.mubr.msk.f32.gmra.mrb[28].mxu0 %vm736_vm0, %v7009_v24  ;;  %v1025_v35 = vmul.f32 %v6646_v29, %v963_v57 }
 0x146   : > { %960 = vst.msk [vmem:[#allocation2 + $0xf8] sm:$0xff] %vm736_vm0, %v944_v52  ;;  %v5945_v52 = vadd.f32 %v6866_v62, %v6685_v59 }
 0x148   : > { %6248 = vset.pattern.permute.xlu1 %v6365_v27  ;;  %v7015_v11 = vld [vmem:[#allocation2 + $0xf0] sm:$0xff] }
 0x149   : > { %1270 = vperm.xlu1 %6248, %v6548_v13   ;;  %v1043_v34 = vpop.permute.xlu1 %1042  ;;  %5429 = vmatprep.mubr.msk.f32.mxu0 %vm736_vm0, %v7015_v11 }
 0x14a   : > { %v1105_v22 = vmul.f32 %v6652_v30, %v1043_v34 }
 0x14c   : > { %v1121_v12 = vadd.f32 %v1105_v22, %v1025_v35 }
 0x14d   : > { %1274 = vperm.xlu1 %6248, %v6553_v14   ;;  %v1047_v21 = vpop.permute.xlu1 %1046  ;;  %v7026_v45 = vld [vmem:[#allocation2 + $0xf8] sm:$0xff] }
 0x14e   : > { %v1137_v53 = vadd.f32 %v6663_v38, %v1121_v12  ;;  %v1106_v13 = vmul.f32 %v6652_v30, %v1047_v21  ;;  %5430 = vmatmul.mubr.msk.f32.gmra.mrb[30].mxu0 %vm736_vm0, %v7026_v45 }
 0x150   : > { %1153 = vst.msk [vmem:[#allocation2 + $0x100] sm:$0xff] %vm736_vm0, %v1137_v53  ;;  %v1122_v31 = vadd.f32 %v1106_v13, %v1026_v9  ;;  %v1029_v53 = vmul.f32 %v6646_v29, %v6977_v61 }
 0x151   : > { %6249 = vset.pattern.permute.xlu1 %v6366_v25 }
 0x152   : > { %v1138_v14 = vadd.f32 %v6663_v38, %v1122_v31  ;;  %1198 = vperm.xlu1 %6249, %v6558_v15   ;;  %v971_v46 = vpop.permute.xlu1 %970  ;;  %v5935_v15 = vadd.f32 %v6872_v18, %v6687_v60  ;;  %v5965_v60 = vadd.f32 %v6879_v10, %v6700_v8  ;;  %v7071_v10 = vld [vmem:[%s6507_s25 + $0x50] sm:$0xff] }
 0x153   : > { %v1027_v7 = vmul.f32 %v6646_v29, %v971_v46 }
 0x154   : > { %1154 = vst.msk [vmem:[#allocation2 + $0x108] sm:$0xff] %vm736_vm0, %v1138_v14 }
 0x155   : > { %v1123_v2 = vadd.f32 %v1107_v26, %v1027_v7  ;;  %v1063_v26 = vpop.permute.xlu0 %1062 }
 0x156   : > { %1202 = vperm.xlu1 %6249, %v6563_v16   ;;  %v975_v57 = vpop.permute.xlu1 %974  ;;  %v1110_v8 = vmul.f32 %v6652_v30, %v1063_v26 }
 0x157   : > { %v1139_v34 = vadd.f32 %v6663_v38, %v1123_v2  ;;  %v1617_v35 = vld [vmem:[#allocation2 + $0x100] sm:$0xff]  ;;  %v1028_v9 = vmul.f32 %v6646_v29, %v975_v57  ;;  %v7079_v57 = vld [vmem:[%s6507_s25 + $0x58] sm:$0xff] }
 0x158   : > { %5432 = vmatprep.mubr.msk.f32.mxu0 %vm736_vm0, %v1617_v35  ;;  %v7044_v22 = vadd.f32 %v5945_v52, %v1617_v35  ;;  %v5955_v52 = vadd.f32 %v6886_v36, %v6711_v32 }
 0x159   : > { %1155 = vst.msk [vmem:[#allocation2 + $0x110] sm:$0xff] %vm736_vm0, %v1139_v34  ;;  %v1075_v26 = vpop.permute.xlu0 %1074 }
 0x15a   : > { %6250 = vset.pattern.permute.xlu1 %v6365_v27 }
 0x15b   : > { %1282 = vperm.xlu1 %6250, %v6563_v16   ;;  %v1055_v59 = vpop.permute.xlu1 %1054  ;;  %v1618_v62 = vld [vmem:[#allocation2 + $0x108] sm:$0xff] }
 0x15c   : > { %v1108_v12 = vmul.f32 %v6652_v30, %v1055_v59  ;;  %5433 = vmatmul.mubr.msk.f32.gmra.mrb[32].mxu0 %vm736_vm0, %v1618_v62  ;;  %v7054_v21 = vadd.f32 %v5935_v15, %v1618_v62  ;;  %v5985_v62 = vadd.f32 %v6892_v44, %v6722_v41  ;;  %v5975_v41 = vadd.f32 %v6900_v49, %v6733_v47  ;;  %v7101_v44 = vld [vmem:[%s6507_s25 + $0x60] sm:$0xff] }
 0x15d   : > { %v1113_v47 = vmul.f32 %v6652_v30, %v1075_v26  ;;  %v6284_v26 = vld [vmem:[%s6507_s25] sm:$0xff] }
 0x15e   : > { %v1124_v13 = vadd.f32 %v1108_v12, %v1028_v9 }
 0x15f   : > { %1286 = vperm.xlu1 %6250, %v6568_v17   ;;  %v1059_v16 = vpop.permute.xlu1 %1058 }
 0x160   : > { %v1140_v18 = vadd.f32 %v6663_v38, %v1124_v13  ;;  %v1109_v23 = vmul.f32 %v6652_v30, %v1059_v16  ;;  %v1619_v31 = vld [vmem:[#allocation2 + $0x110] sm:$0xff]  ;;  %v1032_v13 = vmul.f32 %v6646_v29, %v6995_v4 }
 0x161   : > { %5435 = vmatprep.mubr.msk.f32.mxu0 %vm736_vm0, %v1619_v31  ;;  %v7064_v14 = vadd.f32 %v5965_v60, %v1619_v31 }
 0x162   : > { %1156 = vst.msk [vmem:[#allocation2 + $0x118] sm:$0xff] %vm736_vm0, %v1140_v18  ;;  %v1125_v61 = vadd.f32 %v1109_v23, %v1029_v53 }
 0x163   : > { %6251 = vset.pattern.permute.xlu1 %v6366_v25 }
 0x164   : > { %v1141_v17 = vadd.f32 %v6663_v38, %v1125_v61  ;;  %1210 = vperm.xlu1 %6251, %v7071_v10   ;;  %v983_v46 = vpop.permute.xlu1 %982 }
 0x165   : > { %v1030_v7 = vmul.f32 %v6646_v29, %v983_v46 }
 0x166   : > { %1157 = vst.msk [vmem:[#allocation2 + $0x120] sm:$0xff] %vm736_vm0, %v1141_v17 }
 0x167   : > { %v1126_v2 = vadd.f32 %v1110_v8, %v1030_v7  ;;  %v7114_v8 = vld [vmem:[%s6507_s25 + $0x68] sm:$0xff] }
 0x168   : > { %1214 = vperm.xlu1 %6251, %v7079_v57   ;;  %v987_v34 = vpop.permute.xlu1 %986 }
 0x169   : > { %v1142_v35 = vadd.f32 %v6663_v38, %v1126_v2  ;;  %v1620_v15 = vld [vmem:[#allocation2 + $0x118] sm:$0xff]  ;;  %v1031_v9 = vmul.f32 %v6646_v29, %v987_v34  ;;  %v6005_v2 = vadd.f32 %v6913_v5, %v6744_v54 }
 0x16a   : > { %5436 = vmatmul.mubr.msk.f32.gmra.mrb[34].mxu0 %vm736_vm0, %v1620_v15  ;;  %v7084_v59 = vadd.f32 %v5955_v52, %v1620_v15  ;;  %v7122_v52 = vld [vmem:[%s6507_s25 + $0x70] sm:$0xff] }
 0x16b   : > { %1158 = vst.msk [vmem:[#allocation2 + $0x128] sm:$0xff] %vm736_vm0, %v1142_v35 }
 0x16c   : > { %6252 = vset.pattern.permute.xlu1 %v6365_v27 }
 0x16d   : > { %1294 = vperm.xlu1 %6252, %v7079_v57   ;;  %v1067_v32 = vpop.permute.xlu1 %1066  ;;  %v1621_v36 = vld [vmem:[#allocation2 + $0x120] sm:$0xff] }
 0x16e   : > { %v1111_v12 = vmul.f32 %v6652_v30, %v1067_v32  ;;  %5438 = vmatprep.mubr.msk.f32.mxu0 %vm736_vm0, %v1621_v36  ;;  %v7094_v53 = vadd.f32 %v5985_v62, %v1621_v36  ;;  %v1087_v62 = vpop.permute.xlu0 %1086  ;;  %v5995_v32 = vadd.f32 %v6929_v51, %v6754_v63  ;;  %v7146_v51 = vld [vmem:[%s6507_s25 + $0x78] sm:$0xff] }
 0x170   : > { %v1127_v60 = vadd.f32 %v1111_v12, %v1031_v9 }
 0x171   : > { %1298 = vperm.xlu1 %6252, %v7101_v44   ;;  %v1071_v16 = vpop.permute.xlu1 %1070 }
 0x172   : > { %v1143_v18 = vadd.f32 %v6663_v38, %v1127_v60  ;;  %v1112_v23 = vmul.f32 %v6652_v30, %v1071_v16  ;;  %v1622_v31 = vld [vmem:[#allocation2 + $0x128] sm:$0xff]  ;;  %v1035_v60 = vmul.f32 %v6646_v29, %v7005_v19  ;;  %v7153_v16 = vld [vmem:[%s8343_s1 + $0x1] ss:$0 sm:$0xff] }
 0x173   : > { %5439 = vmatmul.mubr.msk.f32.gmra.mrb[36].mxu0 %vm736_vm0, %v1622_v31  ;;  %v7107_v4 = vadd.f32 %v5975_v41, %v1622_v31 }
 0x174   : > { %1159 = vst.msk [vmem:[#allocation2 + $0x130] sm:$0xff] %vm736_vm0, %v1143_v18  ;;  %v1128_v61 = vadd.f32 %v1112_v23, %v1032_v13  ;;  %v7139_v13 = vpop.permute.xlu0 %1098  ;;  %v7167_v23 = vld [vmem:[%s8344_s2] ss:$0 sm:$0xff] }
 0x175   : > { %6253 = vset.pattern.permute.xlu1 %v6366_v25 }
 0x176   : > { %v1144_v49 = vadd.f32 %v6663_v38, %v1128_v61  ;;  %1222 = vperm.xlu1 %6253, %v7114_v8   ;;  %v995_v17 = vpop.permute.xlu1 %994 }
 0x177   : > { %v1033_v46 = vmul.f32 %v6646_v29, %v995_v17 }
 0x178   : > { %1160 = vst.msk [vmem:[#allocation2 + $0x138] sm:$0xff] %vm736_vm0, %v1144_v49 }
 0x179   : > { %v1129_v7 = vadd.f32 %v1113_v47, %v1033_v46  ;;  %v7174_v47 = vld [vmem:[%s8343_s1] ss:$0 sm:$0xff] }
 0x17a   : > { %1226 = vperm.xlu1 %6253, %v7122_v52   ;;  %v999_v25 = vpop.permute.xlu1 %998 }
 0x17b   : > { %v1145_v34 = vadd.f32 %v6663_v38, %v1129_v7  ;;  %v1623_v35 = vld [vmem:[#allocation2 + $0x130] sm:$0xff]  ;;  %v1034_v36 = vmul.f32 %v6646_v29, %v999_v25  ;;  %v6286_v25 = vld [vmem:[%s6507_s25 + $0x8] sm:$0xff] }
 0x17c   : > { %5441 = vmatprep.mubr.msk.f32.mxu0 %vm736_vm0, %v1623_v35  ;;  %v7127_v15 = vadd.f32 %v6005_v2, %v1623_v35  ;;  %v6015_v2 = vadd.f32 %v6951_v39, %v6774_v40 }
 0x17d   : > { %1161 = vst.msk [vmem:[#allocation2 + $0x140] sm:$0xff] %vm736_vm0, %v1145_v34 }
 0x17e   : > { %6255 = vset.pattern.permute.xlu1 %v6365_v27  ;;  %v6025_v27 = vadd.f32 %v6937_v55, %v6764_v28  ;;  %v7160_v55 = vpop.permute.xlu0 %1254 }
 0x17f   : > { %1306 = vperm.xlu1 %6255, %v7122_v52   ;;  %v1079_v54 = vpop.permute.xlu1 %1078  ;;  %v1624_v5 = vld [vmem:[#allocation2 + $0x138] sm:$0xff] }
 0x180   : > { %v1114_v9 = vmul.f32 %v6652_v30, %v1079_v54  ;;  %5442 = vmatmul.mubr.msk.f32.gmra.mrb[38].mxu0 %vm736_vm0, %v1624_v5  ;;  %v7137_v12 = vadd.f32 %v5995_v32, %v1624_v5  ;;  %v6045_v5 = vadd.f32 %v6967_v58, %v6784_v48  ;;  %v1038_v48 = vmul.f32 %v7174_v47, %v7017_v1 }
 0x182   : > { %v1130_v63 = vadd.f32 %v1114_v9, %v1034_v36  ;;  %v7185_v35 = vpop.permute.xlu0 %1266 }
 0x183   : > { %1310 = vperm.xlu1 %6255, %v7146_v51   ;;  %v1083_v41 = vpop.permute.xlu1 %1082 }
 0x184   : > { %v1146_v30 = vadd.f32 %v6663_v38, %v1130_v63  ;;  %v1115_v18 = vmul.f32 %v7153_v16, %v1083_v41  ;;  %v1625_v29 = vld [vmem:[#allocation2 + $0x140] sm:$0xff]  ;;  %v1116_v38 = vmul.f32 %v7153_v16, %v1087_v62 }
 0x185   : > { %5444 = vmatprep.mubr.msk.f32.mxu0 %vm736_vm0, %v1625_v29  ;;  %v7157_v19 = vadd.f32 %v6025_v27, %v1625_v29 }
 0x186   : > { %1162 = vst.msk [vmem:[#allocation2 + $0x148] sm:$0xff] %vm736_vm0, %v1146_v30  ;;  %v1131_v28 = vadd.f32 %v1115_v18, %v1035_v60  ;;  %v7202_v27 = vpop.permute.xlu0 %1278  ;;  %v6035_v30 = vadd.f32 %v6975_v20, %v6795_v56  ;;  %v6287_v18 = vld [vmem:[%s6507_s25 + $0x10] sm:$0xff]  ;;  %v1119_v56 = vmul.f32 %v7153_v16, %v7139_v13  ;;  %v6289_v13 = vld [vmem:[%s6507_s25 + $0x20] sm:$0xff] }
 0x187   : > { %6256 = vset.pattern.permute.xlu1 %v6368_v50 }
 0x188   : > { %v1147_v31 = vadd.f32 %v7167_v23, %v1131_v28  ;;  %1378 = vperm.xlu1 %6256, %v6284_v26   ;;  %v1007_v61 = vpop.permute.xlu1 %1006 }
 0x189   : > { %v1036_v49 = vmul.f32 %v7174_v47, %v1007_v61 }
 0x18a   : > { %1163 = vst.msk [vmem:[#allocation2 + $0x150] sm:$0xff] %vm736_vm0, %v1147_v31  ;;  %v7178_v17 = vpop.f32.mrb[0].mxu0  ;;  %v7217_v61 = vpop.permute.xlu0 %1290 }
 0x18b   : > { %v1132_v46 = vadd.f32 %v1116_v38, %v1036_v49  ;;  %v7180_v7 = vpop.f32.mrb[1].mxu0  ;;  %v6288_v49 = vld [vmem:[%s6507_s25 + $0x18] sm:$0xff] }
 0x18c   : > { %1382 = vperm.xlu1 %6256, %v6286_v25   ;;  %v1011_v34 = vpop.permute.xlu1 %1010 }
 0x18d   : > { %v1148_v62 = vadd.f32 %v7167_v23, %v1132_v46  ;;  %v1626_v32 = vld [vmem:[#allocation2 + $0x148] sm:$0xff]  ;;  %v1037_v36 = vmul.f32 %v7174_v47, %v1011_v34 }
 0x18e   : > { %5445 = vmatmul.mubr.msk.f32.gmra.mrb[40].mxu0 %vm736_vm0, %v1626_v32  ;;  %v7189_v54 = vadd.f32 %v6015_v2, %v1626_v32  ;;  %v6065_v32 = vadd.f32 %v6991_v43, %v6805_v6 }
 0x18f   : > { %1164 = vst.msk [vmem:[#allocation2 + $0x158] sm:$0xff] %vm736_vm0, %v1148_v62 }
 0x190   : > { %6258 = vset.pattern.permute.xlu1 %v6367_v3 }
 0x191   : > { %1462 = vperm.xlu1 %6258, %v6286_v25   ;;  %v1091_v40 = vpop.permute.xlu1 %1090  ;;  %v1627_v39 = vld [vmem:[#allocation2 + $0x150] sm:$0xff] }
 0x192   : > { %v1117_v9 = vmul.f32 %v7153_v16, %v1091_v40  ;;  %v7197_v60 = vpop.f32.mrb[2].mxu0  ;;  %5447 = vmatprep.mubr.msk.f32.mxu0 %vm736_vm0, %v1627_v39  ;;  %v7200_v63 = vadd.f32 %v6045_v5, %v1627_v39  ;;  %v7233_v40 = vpop.permute.xlu0 %1302 }
 0x193   : > { %v7204_v41 = vpop.f32.mrb[3].mxu0 }
 0x194   : > { %v1133_v58 = vadd.f32 %v1117_v9, %v1037_v36 }
 0x195   : > { %1466 = vperm.xlu1 %6258, %v6287_v18   ;;  %v1095_v29 = vpop.permute.xlu1 %1094 }
 0x196   : > { %v1149_v28 = vadd.f32 %v7167_v23, %v1133_v58  ;;  %v1118_v38 = vmul.f32 %v7153_v16, %v1095_v29  ;;  %v1628_v31 = vld [vmem:[#allocation2 + $0x158] sm:$0xff] }
 0x197   : > { %5448 = vmatmul.mubr.msk.f32.gmra.mrb[42].mxu0 %vm736_vm0, %v1628_v31  ;;  %v7214_v26 = vadd.f32 %v6035_v30, %v1628_v31 }
 0x198   : > { %1165 = vst.msk [vmem:[#allocation2 + $0x160] sm:$0xff] %vm736_vm0, %v1149_v28  ;;  %v1134_v1 = vadd.f32 %v1118_v38, %v1038_v48  ;;  %v6055_v48 = vadd.f32 %v7009_v24, %v6814_v33  ;;  %v1171_v38 = vpop.permute.xlu0 %1170  ;;  %v6085_v33 = vadd.f32 %v7015_v11, %v6821_v37  ;;  %v6290_v24 = vld [vmem:[%s6507_s25 + $0x28] sm:$0xff] }
 0x199   : > { %6259 = vset.pattern.permute.xlu1 %v6368_v50 }
 0x19a   : > { %v1150_v20 = vadd.f32 %v7167_v23, %v1134_v1  ;;  %1390 = vperm.xlu1 %6259, %v6288_v49   ;;  %v1019_v46 = vpop.permute.xlu1 %1018  ;;  %v7224_v2 = vpop.f32.mrb[4].mxu0  ;;  %v1233_v1 = vmul.f32 %v7174_v47, %v1171_v38 }
 0x19b   : > { %v1039_v25 = vmul.f32 %v7174_v47, %v1019_v46  ;;  %v7227_v34 = vpop.f32.mrb[5].mxu0 }
 0x19c   : > { %1166 = vst.msk [vmem:[#allocation2 + $0x168] sm:$0xff] %vm736_vm0, %v1150_v20 }
 0x19d   : > { %v1135_v62 = vadd.f32 %v1119_v56, %v1039_v25 }
 0x19e   : > { %1394 = vperm.xlu1 %6259, %v6289_v13   ;;  %v1023_v5 = vpop.permute.xlu1 %1022 }
 0x19f   : > { %v1151_v39 = vadd.f32 %v7167_v23, %v1135_v62  ;;  %v1629_v36 = vld [vmem:[#allocation2 + $0x160] sm:$0xff]  ;;  %v1040_v18 = vmul.f32 %v7174_v47, %v1023_v5 }
 0x1a0   : > { %5450 = vmatprep.mubr.msk.f32.mxu0 %vm736_vm0, %v1629_v36  ;;  %v7237_v9 = vadd.f32 %v6065_v32, %v1629_v36  ;;  %v1314_v32 = vmul.f32 %v7153_v16, %v7160_v55 }
 0x1a1   : > { %1167 = vst.msk [vmem:[#allocation2 + $0x170] sm:$0xff] %vm736_vm0, %v1151_v39 }
 0x1a2   : > { %6261 = vset.pattern.permute.xlu1 %v6367_v3  ;;  %v7243_v6 = vpop.f32.mrb[6].mxu0 }
 0x1a3   : > { %1474 = vperm.xlu1 %6261, %v6289_v13   ;;  %v1103_v43 = vpop.permute.xlu1 %1102  ;;  %v7245_v58 = vpop.f32.mrb[7].mxu0  ;;  %v1630_v30 = vld [vmem:[#allocation2 + $0x168] sm:$0xff]  ;;  %v6291_v13 = vld [vmem:[%s6507_s25 + $0x30] sm:$0xff] }
 0x1a4   : > { %v1120_v29 = vmul.f32 %v7153_v16, %v1103_v43  ;;  %5451 = vmatmul.mubr.msk.f32.gmra.mrb[44].mxu0 %vm736_vm0, %v1630_v30  ;;  %v7250_v28 = vadd.f32 %v6055_v48, %v1630_v30  ;;  %v6075_v48 = vadd.f32 %v7026_v45, %v6829_v42  ;;  %v6292_v30 = vld [vmem:[%s6507_s25 + $0x38] sm:$0xff] }
 0x1a6   : > { %v1136_v31 = vadd.f32 %v1120_v29, %v1040_v18 }
 0x1a7   : > { %1478 = vperm.xlu1 %6261, %v6290_v24   ;;  %v1183_v24 = vpop.permute.xlu0 %1182 }
 0x1a8   : > { %v1152_v56 = vadd.f32 %v7167_v23, %v1136_v31  ;;  %v1251_v20 = vpop.permute.xlu1 %1250  ;;  %v1631_v49 = vld [vmem:[#allocation2 + $0x170] sm:$0xff] }
 0x1a9   : > { %v1313_v46 = vmul.f32 %v7153_v16, %v1251_v20  ;;  %5453 = vmatprep.mubr.msk.f32.mxu0 %vm736_vm0, %v1631_v49  ;;  %v7259_v25 = vadd.f32 %v6085_v33, %v1631_v49 }
 0x1aa   : > { %1168 = vst.msk [vmem:[#allocation2 + $0x178] sm:$0xff] %vm736_vm0, %v1152_v56  ;;  %v7262_v62 = vpop.f32.mrb[8].mxu0 }
 0x1ab   : > { %v1329_v37 = vadd.f32 %v1313_v46, %v1233_v1  ;;  %6262 = vset.pattern.permute.xlu1 %v6368_v50  ;;  %v7265_v11 = vpop.f32.mrb[9].mxu0  ;;  %v6293_v46 = vld [vmem:[%s6507_s25 + $0x40] sm:$0xff] }
 0x1ac   : > { %1402 = vperm.xlu1 %6262, %v6291_v13  }
 0x1ad   : > { %v1345_v5 = vadd.f32 %v7167_v23, %v1329_v37  ;;  %v1175_v39 = vpop.permute.xlu1 %1174  ;;  %v1236_v37 = vmul.f32 %v7174_v47, %v1183_v24 }
 0x1ae   : > { %v1234_v36 = vmul.f32 %v7174_v47, %v1175_v39 }
 0x1af   : > { %1361 = vst.msk [vmem:[#allocation2 + $0x180] sm:$0xff] %vm736_vm0, %v1345_v5 }
 0x1b0   : > { %v1330_v43 = vadd.f32 %v1314_v32, %v1234_v36  ;;  %1406 = vperm.xlu1 %6262, %v6292_v30  }
 0x1b1   : > { %v1179_v18 = vpop.permute.xlu1 %1178  ;;  %v1632_v29 = vld [vmem:[#allocation2 + $0x178] sm:$0xff] }
 0x1b2   : > { %v1346_v38 = vadd.f32 %v7167_v23, %v1330_v43  ;;  %v7277_v55 = vpop.f32.mrb[10].mxu0  ;;  %5454 = vmatmul.mubr.msk.f32.gmra.mrb[46].mxu0 %vm736_vm0, %v1632_v29  ;;  %v7280_v31 = vadd.f32 %v6075_v48, %v1632_v29  ;;  %v1235_v1 = vmul.f32 %v7174_v47, %v1179_v18  ;;  %v6294_v18 = vld [vmem:[%s6507_s25 + $0x48] sm:$0xff]  ;;  %s486_s25 = sand.u32 1, %s6349_s19  }
 0x1b3   : > { %v7282_v33 = vpop.f32.mrb[11].mxu0  ;;  %s4763_s0 = sshll.u32 %s486_s25, 3  ;;  %s4687_s1 = scalar_lea.sflag [#allocation4], %s486_s25 }
 0x1b4   : > { %1362 = vst.msk [vmem:[#allocation2 + $0x188] sm:$0xff] %vm736_vm0, %v1346_v38  ;;  %6264 = vset.pattern.permute.xlu1 %v6367_v3  ;;  %s488_s17 = scalar_lea.vmem [#allocation3], %s4763_s0  ;;  %s6299_s0 = sshll.u32 %s6372_s22, 4  ;;  %s6300_s0 = int_to_ptr.vmem [resolvable:$false] %s6299_s0 }
 0x1b5   : > { %1486 = vperm.xlu1 %6264, %v6292_v30   ;;  %v1317_v30 = vmul.f32 %v7153_v16, %v7185_v35  ;;  %s4700_s23 = sshll.u32 %s488_s17, 4  ;;  %s8278_s23 = int_to_ptr.vmem [resolvable:$true] %s4700_s23 }
 0x1b6   : > { %v1259_v42 = vpop.permute.xlu1 %1258  ;;  %v1633_v45 = vld [vmem:[#allocation2 + $0x180] sm:$0xff]  ;;  %s6295_s30 = scalar_lea.vmem %s8278_s23, 128  ;;  %p6302_p0 = scmp.lt.s32.totalorder %s8278_s23, %s6300_s0 }
 0x1b7   : > { %v1315_v56 = vmul.f32 %v7153_v16, %v1259_v42  ;;  %5456 = vmatprep.mubr.msk.f32.mxu0 %vm736_vm0, %v1633_v45  ;;  %v7290_v20 = vadd.f32 %v7044_v22, %v1633_v45  ;;  %p6296_p11 = scmp.ne.s32.totalorder %s8278_s23, %s6295_s30 }
 0x1b9   : > { %v1331_v49 = vadd.f32 %v1315_v56, %v1235_v1  ;;  %1490 = vperm.xlu1 %6264, %v6293_v46   ;;  %p6297_p12 = pnand %p6296_p11, %p6491_p5 }
 0x1ba   : > { %v1263_v32 = vpop.permute.xlu1 %1262  ;;  %v7294_v13 = vpop.f32.mrb[12].mxu0 }
 0x1bb   : > { %v1347_v5 = vadd.f32 %v7167_v23, %v1331_v49  ;;  %v1316_v39 = vmul.f32 %v7153_v16, %v1263_v32  ;;  %v7298_v36 = vpop.f32.mrb[13].mxu0  ;;  %v1634_v48 = vld [vmem:[#allocation2 + $0x188] sm:$0xff]  ;;  %v1195_v32 = vpop.permute.xlu0 %1194  ;;  %p6298_p13 = pneg %p6297_p12 }
 0x1bc   : > { %5457 = vmatmul.mubr.msk.f32.gmra.mrb[48].mxu0 %vm736_vm0, %v1634_v48  ;;  %v7302_v22 = vadd.f32 %v7054_v21, %v1634_v48 }
 0x1bd   : > { %1363 = vst.msk [vmem:[#allocation2 + $0x190] sm:$0xff] %vm736_vm0, %v1347_v5  ;;  %v1332_v43 = vadd.f32 %v1316_v39, %v1236_v37  ;;  %6265 = vset.pattern.permute.xlu1 %v6368_v50 }
 0x1be   : > { %1414 = vperm.xlu1 %6265, %v6294_v18  }
 0x1bf   : > { %v1348_v29 = vadd.f32 %v7167_v23, %v1332_v43  ;;  %v1187_v38 = vpop.permute.xlu1 %1186  ;;  %v1239_v43 = vmul.f32 %v7174_v47, %v1195_v32  ;;  %v1207_v32 = vpop.permute.xlu0 %1206 }
 0x1c0   : > { %v1237_v42 = vmul.f32 %v7174_v47, %v1187_v38 }
 0x1c1   : > { %1364 = vst.msk [vmem:[#allocation2 + $0x198] sm:$0xff] %vm736_vm0, %v1348_v29 }
 0x1c2   : > { %v1333_v45 = vadd.f32 %v1317_v30, %v1237_v42  ;;  %1418 = vperm.xlu1 %6265, %v7071_v10   ;;  %v7313_v21 = vpop.f32.mrb[14].mxu0 }
 0x1c3   : > { %v1191_v24 = vpop.permute.xlu1 %1190  ;;  %v7315_v1 = vpop.f32.mrb[15].mxu0 }
 0x1c4   : > { %v1349_v56 = vadd.f32 %v7167_v23, %v1333_v45  ;;  %v1635_v35 = vld [vmem:[#allocation2 + $0x190] sm:$0xff]  ;;  %v1238_v5 = vmul.f32 %v7174_v47, %v1191_v24 }
 0x1c5   : > { %5459 = vmatprep.mubr.msk.f32.mxu0 %vm736_vm0, %v1635_v35  ;;  %v7320_v49 = vadd.f32 %v7064_v14, %v1635_v35 }
 0x1c6   : > { %1365 = vst.msk [vmem:[#allocation2 + $0x1a0] sm:$0xff] %vm736_vm0, %v1349_v56  ;;  %6267 = vset.pattern.permute.xlu1 %v6367_v3 }
 0x1c7   : > { %1498 = vperm.xlu1 %6267, %v7071_v10  }
 0x1c8   : > { %v1271_v46 = vpop.permute.xlu1 %1270  ;;  %v1636_v37 = vld [vmem:[#allocation2 + $0x198] sm:$0xff] }
 0x1c9   : > { %v1318_v39 = vmul.f32 %v7153_v16, %v1271_v46  ;;  %5460 = vmatmul.mubr.msk.f32.gmra.mrb[50].mxu0 %vm736_vm0, %v1636_v37  ;;  %v7329_v48 = vadd.f32 %v7084_v59, %v1636_v37 }
 0x1cb   : > { %v1334_v14 = vadd.f32 %v1318_v39, %v1238_v5  ;;  %1502 = vperm.xlu1 %6267, %v7079_v57   ;;  %v1320_v57 = vmul.f32 %v7153_v16, %v7202_v27 }
 0x1cc   : > { %v1275_v30 = vpop.permute.xlu1 %1274 }
 0x1cd   : > { %v1350_v10 = vadd.f32 %v7167_v23, %v1334_v14  ;;  %v1319_v18 = vmul.f32 %v7153_v16, %v1275_v30  ;;  %v1637_v29 = vld [vmem:[#allocation2 + $0x1a0] sm:$0xff] }
 0x1ce   : > { %5462 = vmatprep.mubr.msk.f32.mxu0 %vm736_vm0, %v1637_v29  ;;  %v7337_v38 = vadd.f32 %v7094_v53, %v1637_v29 }
 0x1cf   : > { %1366 = vst.msk [vmem:[#allocation2 + $0x1a8] sm:$0xff] %vm736_vm0, %v1350_v10  ;;  %v1335_v59 = vadd.f32 %v1319_v18, %v1239_v43  ;;  %6268 = vset.pattern.permute.xlu1 %v6368_v50 }
 0x1d0   : > { %1426 = vperm.xlu1 %6268, %v7101_v44  }
 0x1d1   : > { %v1351_v42 = vadd.f32 %v7167_v23, %v1335_v59  ;;  %v1199_v45 = vpop.permute.xlu1 %1198 }
 0x1d2   : > { %v1240_v24 = vmul.f32 %v7174_v47, %v1199_v45 }
 0x1d3   : > { %1367 = vst.msk [vmem:[#allocation2 + $0x1b0] sm:$0xff] %vm736_vm0, %v1351_v42  ;;  %v1323_v42 = vmul.f32 %v7153_v16, %v7217_v61 }
 0x1d4   : > { %v1336_v56 = vadd.f32 %v1320_v57, %v1240_v24  ;;  %1430 = vperm.xlu1 %6268, %v7114_v8  }
 0x1d5   : > { %v1203_v53 = vpop.permute.xlu1 %1202 }
 0x1d6   : > { %v1352_v35 = vadd.f32 %v7167_v23, %v1336_v56  ;;  %v1638_v46 = vld [vmem:[#allocation2 + $0x1a8] sm:$0xff]  ;;  %v1241_v5 = vmul.f32 %v7174_v47, %v1203_v53 }
 0x1d7   : > { %5463 = vmatmul.mubr.msk.f32.gmra.mrb[52].mxu0 %vm736_vm0, %v1638_v46  ;;  %v7351_v27 = vadd.f32 %v7107_v4, %v1638_v46 }
 0x1d8   : > { %1368 = vst.msk [vmem:[#allocation2 + $0x1b8] sm:$0xff] %vm736_vm0, %v1352_v35  ;;  %6270 = vset.pattern.permute.xlu1 %v6367_v3 }
 0x1d9   : > { %1510 = vperm.xlu1 %6270, %v7114_v8   ;;  %v1242_v8 = vmul.f32 %v7174_v47, %v1207_v32 }
 0x1da   : > { %v1283_v44 = vpop.permute.xlu1 %1282  ;;  %v1639_v37 = vld [vmem:[#allocation2 + $0x1b0] sm:$0xff] }
 0x1db   : > { %v1321_v39 = vmul.f32 %v7153_v16, %v1283_v44  ;;  %5465 = vmatprep.mubr.msk.f32.mxu0 %vm736_vm0, %v1639_v37  ;;  %v7360_v14 = vadd.f32 %v7127_v15, %v1639_v37  ;;  %v2461_v44 = vld [vmem:[%s8323_s5] sm:$0xff]  ;;  %v2462_v37 = vld [vmem:[%s8323_s5 + $0x8] sm:$0xff] }
 0x1dc   : > { %v7362_v4 = vpop.f32.mrb[16].mxu0 }
 0x1dd   : > { %v1337_v43 = vadd.f32 %v1321_v39, %v1241_v5  ;;  %1514 = vperm.xlu1 %6270, %v7122_v52   ;;  %v7365_v3 = vpop.f32.mrb[17].mxu0  ;;  %v1219_v39 = vpop.permute.xlu0 %1218 }
 0x1de   : > { %v1287_v30 = vpop.permute.xlu1 %1286 }
 0x1df   : > { %v1353_v10 = vadd.f32 %v7167_v23, %v1337_v43  ;;  %v1322_v18 = vmul.f32 %v7153_v16, %v1287_v30  ;;  %v1640_v29 = vld [vmem:[#allocation2 + $0x1b8] sm:$0xff] }
 0x1e0   : > { %v7370_v59 = vpop.f32.mrb[18].mxu0  ;;  %5466 = vmatmul.mubr.msk.f32.gmra.mrb[54].mxu0 %vm736_vm0, %v1640_v29  ;;  %v7374_v15 = vadd.f32 %v7137_v12, %v1640_v29 }
 0x1e1   : > { %1369 = vst.msk [vmem:[#allocation2 + $0x1c0] sm:$0xff] %vm736_vm0, %v1353_v10  ;;  %v1338_v52 = vadd.f32 %v1322_v18, %v1242_v8  ;;  %6272 = vset.pattern.permute.xlu1 %v6368_v50  ;;  %v7378_v57 = vpop.f32.mrb[19].mxu0  ;;  %v1245_v10 = vmul.f32 %v7174_v47, %v1219_v39 }
 0x1e2   : > { %1438 = vperm.xlu1 %6272, %v7146_v51  }
 0x1e3   : > { %v1354_v45 = vadd.f32 %v7167_v23, %v1338_v52  ;;  %v1211_v24 = vpop.permute.xlu1 %1210 }
 0x1e4   : > { %v1243_v56 = vmul.f32 %v7174_v47, %v1211_v24 }
 0x1e5   : > { %1370 = vst.msk [vmem:[#allocation2 + $0x1c8] sm:$0xff] %vm736_vm0, %v1354_v45 }
 0x1e6   : > { %v1339_v12 = vadd.f32 %v1323_v42, %v1243_v56  ;;  %v7386_v53 = vpop.f32.mrb[20].mxu0  ;;  %6274 = vset.pattern.permute.xlu1 %v6359_v0  ;;  %v7403_v0 = vpack.c.bf16 %v2462_v37, %v2461_v44 }
 0x1e7   : > { %v1215_v50 = vpop.permute.xlu1 %1214  ;;  %v7389_v35 = vpop.f32.mrb[21].mxu0 }
 0x1e8   : > { %v1355_v46 = vadd.f32 %v7167_v23, %v1339_v12  ;;  %v1641_v61 = vld [vmem:[#allocation2 + $0x1c0] sm:$0xff]  ;;  %5868 = vmatprep.subr.bf16.mxu1 %v7403_v0 }
 0x1e9   : > { %5468 = vmatprep.mubr.msk.f32.mxu0 %vm736_vm0, %v1641_v61  ;;  %v7394_v51 = vadd.f32 %v7157_v19, %v1641_v61  ;;  %v1244_v19 = vmul.f32 %v7174_v47, %v1215_v50 }
 0x1ea   : > { %1371 = vst.msk [vmem:[#allocation2 + $0x1d0] sm:$0xff] %vm736_vm0, %v1355_v46  ;;  %v1326_v46 = vmul.f32 %v7153_v16, %v7233_v40 }
 0x1ec   : > { %v1295_v32 = vpop.permute.xlu1 %1294  ;;  %v1642_v5 = vld [vmem:[#allocation2 + $0x1c8] sm:$0xff] }
 0x1ed   : > { %v1324_v43 = vmul.f32 %v7153_v16, %v1295_v32  ;;  %5469 = vmatmul.mubr.msk.f32.gmra.mrb[56].mxu0 %vm736_vm0, %v1642_v5  ;;  %v7410_v8 = vadd.f32 %v7189_v54, %v1642_v5 }
 0x1ef   : > { %v1340_v30 = vadd.f32 %v1324_v43, %v1244_v19  ;;  %v1231_v19 = vpop.permute.xlu0 %1230 }
 0x1f0   : > { %v1299_v18 = vpop.permute.xlu1 %1298 }
 0x1f1   : > { %v1356_v29 = vadd.f32 %v7167_v23, %v1340_v30  ;;  %v1325_v52 = vmul.f32 %v7153_v16, %v1299_v18  ;;  %v1643_v42 = vld [vmem:[#allocation2 + $0x1d0] sm:$0xff] }
 0x1f2   : > { %5471 = vmatprep.mubr.msk.f32.mxu0 %vm736_vm0, %v1643_v42  ;;  %v7417_v45 = vadd.f32 %v7200_v63, %v1643_v42 }
 0x1f3   : > { %1372 = vst.msk [vmem:[#allocation2 + $0x1d8] sm:$0xff] %vm736_vm0, %v1356_v29  ;;  %v1341_v24 = vadd.f32 %v1325_v52, %v1245_v10  ;;  %v1248_v52 = vmul.f32 %v7174_v47, %v1231_v19 }
 0x1f4   : > { %v7420_v56 = vpop.f32.mrb[22].mxu0 }
 0x1f5   : > { %v1357_v54 = vadd.f32 %v7167_v23, %v1341_v24  ;;  %v1223_v12 = vpop.permute.xlu1 %1222  ;;  %v7423_v50 = vpop.f32.mrb[23].mxu0 }
 0x1f6   : > { %v1246_v61 = vmul.f32 %v7174_v47, %v1223_v12 }
 0x1f7   : > { %1373 = vst.msk [vmem:[#allocation2 + $0x1e0] sm:$0xff] %vm736_vm0, %v1357_v54 }
 0x1f8   : > { %v1342_v44 = vadd.f32 %v1326_v46, %v1246_v61  ;;  %v1459_v46 = vpop.permute.xlu0 %1458 }
 0x1f9   : > { %v1227_v63 = vpop.permute.xlu1 %1226 }
 0x1fa   : > { %v1358_v37 = vadd.f32 %v7167_v23, %v1342_v44  ;;  %v1644_v32 = vld [vmem:[#allocation2 + $0x1d8] sm:$0xff]  ;;  %v1247_v10 = vmul.f32 %v7174_v47, %v1227_v63 }
 0x1fb   : > { %5472 = vmatmul.mubr.msk.f32.gmra.mrb[58].mxu0 %vm736_vm0, %v1644_v32  ;;  %v7432_v5 = vadd.f32 %v7214_v26, %v1644_v32 }
 0x1fc   : > { %1374 = vst.msk [vmem:[#allocation2 + $0x1e8] sm:$0xff] %vm736_vm0, %v1358_v37 }
 0x1fd   : > { %v7435_v39 = vpop.f32.mrb[24].mxu0 }
 0x1fe   : > { %v1307_v40 = vpop.permute.xlu1 %1306  ;;  %v7437_v43 = vpop.f32.mrb[25].mxu0  ;;  %v1645_v30 = vld [vmem:[#allocation2 + $0x1e0] sm:$0xff] }
 0x1ff   : > { %v1327_v18 = vmul.f32 %v7153_v16, %v1307_v40  ;;  %5474 = vmatprep.mubr.msk.f32.mxu0 %vm736_vm0, %v1645_v30  ;;  %v7443_v29 = vadd.f32 %v7237_v9, %v1645_v30  ;;  %v1521_v9 = vmul.f32 %v7153_v16, %v1459_v46  ;;  %v1471_v30 = vpop.permute.xlu0 %1470 }
 0x201   : > { %v1343_v26 = vadd.f32 %v1327_v18, %v1247_v10 }
 0x202   : > { %v1311_v42 = vpop.permute.xlu1 %1310 }
 0x203   : > { %v1359_v24 = vadd.f32 %v7167_v23, %v1343_v26  ;;  %v1328_v54 = vmul.f32 %v7153_v16, %v1311_v42  ;;  %v1646_v12 = vld [vmem:[#allocation2 + $0x1e8] sm:$0xff] }
 0x204   : > { %5475 = vmatmul.mubr.msk.f32.gmra.mrb[60].mxu0 %vm736_vm0, %v1646_v12  ;;  %v7450_v61 = vadd.f32 %v7250_v28, %v1646_v12 }
 0x205   : > { %1375 = vst.msk [vmem:[#allocation2 + $0x1f0] sm:$0xff] %vm736_vm0, %v1359_v24  ;;  %v1344_v44 = vadd.f32 %v1328_v54, %v1248_v52  ;;  %v1387_v54 = vpop.permute.xlu0 %1386 }
 0x207   : > { %v1360_v63 = vadd.f32 %v7167_v23, %v1344_v44  ;;  %v1379_v37 = vpop.permute.xlu1 %1378 }
 0x208   : > { %v1441_v32 = vmul.f32 %v7174_v47, %v1379_v37 }
 0x209   : > { %1376 = vst.msk [vmem:[#allocation2 + $0x1f8] sm:$0xff] %vm736_vm0, %v1360_v63  ;;  %v1443_v63 = vmul.f32 %v7174_v47, %v1387_v54 }
 0x20a   : > { %v1537_v19 = vadd.f32 %v1521_v9, %v1441_v32  ;;  %v7457_v40 = vpop.f32.mrb[26].mxu0 }
 0x20b   : > { %v1383_v10 = vpop.permute.xlu1 %1382  ;;  %v7459_v18 = vpop.f32.mrb[27].mxu0 }
 0x20c   : > { %v1553_v28 = vadd.f32 %v7167_v23, %v1537_v19  ;;  %v1647_v26 = vld [vmem:[#allocation2 + $0x1f0] sm:$0xff]  ;;  %v1442_v12 = vmul.f32 %v7174_v47, %v1383_v10 }
 0x20d   : > { %5477 = vmatprep.mubr.msk.f32.mxu0 %vm736_vm0, %v1647_v26  ;;  %v7464_v52 = vadd.f32 %v7259_v25, %v1647_v26 }
 0x20e   : > { %1569 = vst.msk [vmem:[#allocation2 + $0x200] sm:$0xff] %vm736_vm0, %v1553_v28 }
 0x210   : > { %v1463_v42 = vpop.permute.xlu1 %1462  ;;  %v1648_v24 = vld [vmem:[#allocation2 + $0x1f8] sm:$0xff] }
 0x211   : > { %v1522_v46 = vmul.f32 %v7153_v16, %v1463_v42  ;;  %5478 = vmatmul.mubr.msk.f32.gmra.mrb[62].mxu0 %vm736_vm0, %v1648_v24  ;;  %v7471_v44 = vadd.f32 %v7280_v31, %v1648_v24  ;;  %v1524_v31 = vmul.f32 %v7153_v16, %v1471_v30 }
 0x213   : > { %v1538_v9 = vadd.f32 %v1522_v46, %v1442_v12 }
 0x214   : > { %v1467_v37 = vpop.permute.xlu1 %1466 }
 0x215   : > { %v1554_v25 = vadd.f32 %v7167_v23, %v1538_v9  ;;  %v1523_v32 = vmul.f32 %v7153_v16, %v1467_v37  ;;  %v1649_v19 = vld [vmem:[#allocation2 + $0x200] sm:$0xff] }
 0x216   : > { %5480 = vmatprep.mubr.msk.f32.mxu0 %vm736_vm0, %v1649_v19  ;;  %v7478_v10 = vadd.f32 %v7290_v20, %v1649_v19 }
 0x217   : > { %1570 = vst.msk [vmem:[#allocation2 + $0x208] sm:$0xff] %vm736_vm0, %v1554_v25  ;;  %v1539_v28 = vadd.f32 %v1523_v32, %v1443_v63  ;;  %v1399_v25 = vpop.permute.xlu0 %1398 }
 0x218   : > { %8345 = vst [vmem:[#allocation6_spill] sm:$0xff] %v7478_v10  ;;  %v7482_v26 = vpop.f32.mrb[28].mxu0 }
 0x219   : > { %v1555_v42 = vadd.f32 %v7167_v23, %v1539_v28  ;;  %v1391_v24 = vpop.permute.xlu1 %1390  ;;  %v7485_v54 = vpop.f32.mrb[29].mxu0 }
 0x21a   : > { %v1444_v12 = vmul.f32 %v7174_v47, %v1391_v24 }
 0x21b   : > { %1571 = vst.msk [vmem:[#allocation2 + $0x210] sm:$0xff] %vm736_vm0, %v1555_v42 }
 0x21c   : > { %v1540_v46 = vadd.f32 %v1524_v31, %v1444_v12  ;;  %v2464_v12 = vld [vmem:[%s8323_s5 + $0x18] sm:$0xff] }
 0x21d   : > { %v1395_v9 = vpop.permute.xlu1 %1394 }
 0x21e   : > { %v1556_v20 = vadd.f32 %v7167_v23, %v1540_v46  ;;  %v1650_v37 = vld [vmem:[#allocation2 + $0x208] sm:$0xff]  ;;  %v1445_v31 = vmul.f32 %v7174_v47, %v1395_v9 }
 0x21f   : > { %5481 = vmatmul.mubr.msk.f32.gmra.mrb[64].mxu0 %vm736_vm0, %v1650_v37  ;;  %v7492_v30 = vadd.f32 %v7302_v22, %v1650_v37  ;;  %v2463_v22 = vld [vmem:[%s8323_s5 + $0x10] sm:$0xff] }
 0x220   : > { %1572 = vst.msk [vmem:[#allocation2 + $0x218] sm:$0xff] %vm736_vm0, %v1556_v20  ;;  %v1446_v20 = vmul.f32 %v7174_v47, %v1399_v25  ;;  %v5871_v9 = vpack.c.bf16 %v2464_v12, %v2463_v22 }
 0x221   : > { %8346 = vst [vmem:[#allocation7_spill] sm:$0xff] %v7492_v30  ;;  %v7495_v63 = vpop.f32.mrb[30].mxu0 }
 0x222   : > { %v1475_v32 = vpop.permute.xlu1 %1474  ;;  %v7497_v19 = vpop.f32.mrb[31].mxu0  ;;  %v1651_v28 = vld [vmem:[#allocation2 + $0x210] sm:$0xff] }
 0x223   : > { %v1525_v42 = vmul.f32 %v7153_v16, %v1475_v32  ;;  %5483 = vmatprep.mubr.msk.f32.mxu1 %vm736_vm0, %v1651_v28  ;;  %v7503_v24 = vadd.f32 %v7320_v49, %v1651_v28  ;;  %v1483_v49 = vpop.permute.xlu0 %1482 }
 0x224   : > { %v1527_v25 = vmul.f32 %v7153_v16, %v1483_v49 }
 0x225   : > { %8347 = vst [vmem:[#allocation8_spill] sm:$0xff] %v7503_v24  ;;  %v1541_v46 = vadd.f32 %v1525_v42, %v1445_v31 }
 0x226   : > { %v1479_v37 = vpop.permute.xlu1 %1478 }
 0x227   : > { %v1557_v32 = vadd.f32 %v7167_v23, %v1541_v46  ;;  %v1526_v10 = vmul.f32 %v7153_v16, %v1479_v37  ;;  %v1652_v30 = vld [vmem:[#allocation2 + $0x218] sm:$0xff]  ;;  %v1495_v46 = vpop.permute.xlu0 %1494 }
 0x228   : > { %5484 = vmatmul.mubr.msk.f32.vlgmr.msra.gmra.mrb[0].mxu1 %vm736_vm0, %v1652_v30  ;;  %v7516_v28 = vadd.f32 %v7329_v48, %v1652_v30 }
 0x229   : > { %1573 = vst.msk [vmem:[#allocation2 + $0x220] sm:$0xff] %vm736_vm0, %v1557_v32  ;;  %v1542_v24 = vadd.f32 %v1526_v10, %v1446_v20  ;;  %5870 = vmatpush3.bf16.msra.mxu1 %v7403_v0 }
 0x22a   : > { %5872 = vmatprep.subr.bf16.mxu1 %v5871_v9 }
 0x22b   : > { %v1558_v31 = vadd.f32 %v7167_v23, %v1542_v24  ;;  %v1403_v42 = vpop.permute.xlu1 %1402 }
 0x22c   : > { %v1447_v22 = vmul.f32 %v7174_v47, %v1403_v42 }
 0x22d   : > { %1574 = vst.msk [vmem:[#allocation2 + $0x228] sm:$0xff] %vm736_vm0, %v1558_v31  ;;  %5874 = vmatpush3.bf16.msra.mxu1 %v5871_v9  ;;  %v1411_v9 = vpop.permute.xlu0 %1410 }
 0x22e   : > { %v1543_v12 = vadd.f32 %v1527_v25, %v1447_v22  ;;  %v1449_v22 = vmul.f32 %v7174_v47, %v1411_v9 }
 0x22f   : > { %v1407_v48 = vpop.permute.xlu1 %1406  ;;  %v7524_v30 = vpop.f32.mrb[32].mxu0 }
 0x230   : > { %v1559_v10 = vadd.f32 %v7167_v23, %v1543_v12  ;;  %v7527_v20 = vpop.f32.mrb[33].mxu0  ;;  %v1653_v0 = vld [vmem:[#allocation2 + $0x220] sm:$0xff]  ;;  %v1448_v49 = vmul.f32 %v7174_v47, %v1407_v48 }
 0x231   : > { %5486 = vmatprep.mubr.msk.f32.mxu1 %vm736_vm0, %v1653_v0  ;;  %v7531_v24 = vadd.f32 %v7337_v38, %v1653_v0 }
 0x232   : > { %1575 = vst.msk [vmem:[#allocation2 + $0x230] sm:$0xff] %vm736_vm0, %v1559_v10 }
 0x233   : > { %8348 = vst [vmem:[#allocation9_spill] sm:$0xff] %v7531_v24 }
 0x234   : > { %v1487_v37 = vpop.permute.xlu1 %1486  ;;  %v1654_v32 = vld [vmem:[#allocation2 + $0x228] sm:$0xff] }
 0x235   : > { %v1528_v25 = vmul.f32 %v7153_v16, %v1487_v37  ;;  %5487 = vmatmul.mubr.msk.f32.gmra.mrb[2].mxu1 %vm736_vm0, %v1654_v32  ;;  %v7538_v31 = vadd.f32 %v7351_v27, %v1654_v32  ;;  %v1530_v27 = vmul.f32 %v7153_v16, %v1495_v46 }
 0x237   : > { %8349 = vst [vmem:[#allocation10_spill] sm:$0xff] %v7538_v31  ;;  %v1544_v42 = vadd.f32 %v1528_v25, %v1448_v49 }
 0x238   : > { %v1491_v12 = vpop.permute.xlu1 %1490 }
 0x239   : > { %v1560_v38 = vadd.f32 %v7167_v23, %v1544_v42  ;;  %v1529_v10 = vmul.f32 %v7153_v16, %v1491_v12  ;;  %v1655_v0 = vld [vmem:[#allocation2 + $0x230] sm:$0xff] }
 0x23a   : > { %5489 = vmatprep.mubr.msk.f32.mxu1 %vm736_vm0, %v1655_v0  ;;  %v7545_v48 = vadd.f32 %v7360_v14, %v1655_v0 }
 0x23b   : > { %1576 = vst.msk [vmem:[#allocation2 + $0x238] sm:$0xff] %vm736_vm0, %v1560_v38  ;;  %v1545_v37 = vadd.f32 %v1529_v10, %v1449_v22 }
 0x23c   : > { %8350 = vst [vmem:[#allocation11_spill] sm:$0xff] %v7545_v48 }
 0x23d   : > { %v1561_v32 = vadd.f32 %v7167_v23, %v1545_v37  ;;  %v1415_v49 = vpop.permute.xlu1 %1414  ;;  %v7550_v9 = vpop.f32.mrb[34].mxu0 }
 0x23e   : > { %v1450_v25 = vmul.f32 %v7174_v47, %v1415_v49  ;;  %v7553_v42 = vpop.f32.mrb[35].mxu0 }
 0x23f   : > { %1577 = vst.msk [vmem:[#allocation2 + $0x240] sm:$0xff] %vm736_vm0, %v1561_v32 }
 0x240   : > { %v1546_v12 = vadd.f32 %v1530_v27, %v1450_v25  ;;  %v1423_v25 = vpop.permute.xlu0 %1422 }
 0x241   : > { %v1419_v24 = vpop.permute.xlu1 %1418 }
 0x242   : > { %v1562_v14 = vadd.f32 %v7167_v23, %v1546_v12  ;;  %v1656_v0 = vld [vmem:[#allocation2 + $0x238] sm:$0xff]  ;;  %v1451_v37 = vmul.f32 %v7174_v47, %v1419_v24 }
 0x243   : > { %5490 = vmatmul.mubr.msk.f32.gmra.mrb[4].mxu1 %vm736_vm0, %v1656_v0  ;;  %v7559_v46 = vadd.f32 %v7374_v15, %v1656_v0  ;;  %v1452_v0 = vmul.f32 %v7174_v47, %v1423_v25 }
 0x244   : > { %1578 = vst.msk [vmem:[#allocation2 + $0x248] sm:$0xff] %vm736_vm0, %v1562_v14  ;;  %v1507_v24 = vpop.permute.xlu0 %1506 }
 0x245   : > { %8351 = vst [vmem:[#allocation12_spill] sm:$0xff] %v7559_v46 }
 0x246   : > { %v1499_v22 = vpop.permute.xlu1 %1498  ;;  %v7562_v38 = vpop.f32.mrb[36].mxu0  ;;  %v1657_v10 = vld [vmem:[#allocation2 + $0x240] sm:$0xff] }
 0x247   : > { %v1531_v32 = vmul.f32 %v7153_v16, %v1499_v22  ;;  %v7566_v27 = vpop.f32.mrb[37].mxu0  ;;  %5492 = vmatprep.mubr.msk.f32.mxu1 %vm736_vm0, %v1657_v10  ;;  %v7570_v49 = vadd.f32 %v7394_v51, %v1657_v10  ;;  %v1533_v10 = vmul.f32 %v7153_v16, %v1507_v24 }
 0x249   : > { %8352 = vst [vmem:[#allocation13_spill] sm:$0xff] %v7570_v49  ;;  %v1547_v15 = vadd.f32 %v1531_v32, %v1451_v37 }
 0x24a   : > { %v1503_v12 = vpop.permute.xlu1 %1502 }
 0x24b   : > { %v1563_v14 = vadd.f32 %v7167_v23, %v1547_v15  ;;  %v1532_v48 = vmul.f32 %v7153_v16, %v1503_v12  ;;  %v1658_v46 = vld [vmem:[#allocation2 + $0x248] sm:$0xff] }
 0x24c   : > { %5493 = vmatmul.mubr.msk.f32.gmra.mrb[6].mxu1 %vm736_vm0, %v1658_v46  ;;  %v7577_v22 = vadd.f32 %v7410_v8, %v1658_v46 }
 0x24d   : > { %1579 = vst.msk [vmem:[#allocation2 + $0x250] sm:$0xff] %vm736_vm0, %v1563_v14  ;;  %v1548_v51 = vadd.f32 %v1532_v48, %v1452_v0  ;;  %v1435_v14 = vpop.permute.xlu0 %1434 }
 0x24f   : > { %v1564_v37 = vadd.f32 %v7167_v23, %v1548_v51  ;;  %v1427_v32 = vpop.permute.xlu1 %1426 }
 0x250   : > { %v1453_v15 = vmul.f32 %v7174_v47, %v1427_v32 }
 0x251   : > { %1580 = vst.msk [vmem:[#allocation2 + $0x258] sm:$0xff] %vm736_vm0, %v1564_v37 }
 0x252   : > { %v1549_v25 = vadd.f32 %v1533_v10, %v1453_v15  ;;  %v1455_v15 = vmul.f32 %v7174_v47, %v1435_v14 }
 0x253   : > { %v1431_v12 = vpop.permute.xlu1 %1430  ;;  %v7584_v49 = vpop.f32.mrb[38].mxu0 }
 0x254   : > { %v1565_v31 = vadd.f32 %v7167_v23, %v1549_v25  ;;  %v7587_v8 = vpop.f32.mrb[39].mxu0  ;;  %v1659_v46 = vld [vmem:[#allocation2 + $0x250] sm:$0xff]  ;;  %v1454_v51 = vmul.f32 %v7174_v47, %v1431_v12 }
 0x255   : > { %5495 = vmatprep.mubr.msk.f32.mxu1 %vm736_vm0, %v1659_v46  ;;  %v7591_v48 = vadd.f32 %v7417_v45, %v1659_v46 }
 0x256   : > { %1581 = vst.msk [vmem:[#allocation2 + $0x260] sm:$0xff] %vm736_vm0, %v1565_v31 }
 0x257   : > { %8353 = vst [vmem:[#allocation14_spill] sm:$0xff] %v7591_v48  ;;  %v1519_v48 = vpop.permute.xlu0 %1518 }
 0x258   : > { %v1511_v0 = vpop.permute.xlu1 %1510  ;;  %v1660_v24 = vld [vmem:[#allocation2 + $0x258] sm:$0xff] }
 0x259   : > { %v1534_v10 = vmul.f32 %v7153_v16, %v1511_v0  ;;  %5496 = vmatmul.mubr.msk.f32.gmra.mrb[8].mxu1 %vm736_vm0, %v1660_v24  ;;  %v7598_v37 = vadd.f32 %v7432_v5, %v1660_v24  ;;  %v1536_v5 = vmul.f32 %v7153_v16, %v1519_v48 }
 0x25b   : > { %v1550_v32 = vadd.f32 %v1534_v10, %v1454_v51 }
 0x25c   : > { %v1515_v25 = vpop.permute.xlu1 %1514 }
 0x25d   : > { %v1566_v45 = vadd.f32 %v7167_v23, %v1550_v32  ;;  %v1535_v31 = vmul.f32 %v7153_v16, %v1515_v25  ;;  %v1661_v46 = vld [vmem:[#allocation2 + $0x260] sm:$0xff] }
 0x25e   : > { %5498 = vmatprep.mubr.msk.f32.mxu1 %vm736_vm0, %v1661_v46  ;;  %v7605_v12 = vadd.f32 %v7443_v29, %v1661_v46  ;;  %v7624_v16 = vld [vmem:[%s8354_s4] ss:$0 sm:$0xff]  ;;  %s6301_s4 = scalar_lea.vmem %s6300_s0, 256 }
 0x25f   : > { %1582 = vst.msk [vmem:[#allocation2 + $0x268] sm:$0xff] %vm736_vm0, %v1566_v45  ;;  %v1551_v0 = vadd.f32 %v1535_v31, %v1455_v15  ;;  %v1983_v31 = vadd.f32 %v7624_v16, %v7180_v7  ;;  %p6303_p1 = scmp.lt.s32.totalorder %s6301_s4, %s6295_s30 }
 0x261   : > { %v1567_v24 = vadd.f32 %v7167_v23, %v1551_v0  ;;  %v1439_v14 = vpop.permute.xlu1 %1438  ;;  %v7610_v51 = vpop.f32.mrb[40].mxu0  ;;  %p6304_p2 = por %p6303_p1, %p6302_p0 }
 0x262   : > { %v1456_v10 = vmul.f32 %v7174_v47, %v1439_v14  ;;  %v7613_v32 = vpop.f32.mrb[41].mxu0  ;;  %v3257_v47 = vld [vmem:[%s8325_s7] sm:$0xff]  ;;  %v2381_v14 = vmax.f32 %v1983_v31, 0.0 }
 0x263   : > { %1583 = vst.msk [vmem:[#allocation2 + $0x270] sm:$0xff] %vm736_vm0, %v1567_v24  ;;  %v1988_v24 = vadd.f32 %v7178_v17, %v7624_v16  ;;  %v2003_v17 = vadd.f32 %v7624_v16, %v7227_v34  ;;  %v2018_v34 = vadd.f32 %v7243_v6, %v7624_v16  ;;  %p6305_p3 = pnand %p6304_p2, %p6298_p13 }
 0x264   : > { %v1552_v25 = vadd.f32 %v1536_v5, %v1456_v10  ;;  %v1993_v10 = vadd.f32 %v7624_v16, %v7204_v41 }
 0x266   : > { %v1568_v29 = vadd.f32 %v7167_v23, %v1552_v25  ;;  %v1662_v46 = vld [vmem:[#allocation2 + $0x268] sm:$0xff] }
 0x267   : > { %5499 = vmatmul.mubr.msk.f32.gmra.mrb[10].mxu1 %vm736_vm0, %v1662_v46  ;;  %v7619_v15 = vadd.f32 %v7450_v61, %v1662_v46  ;;  %v3258_v23 = vld [vmem:[%s8325_s7 + $0x8] sm:$0xff]  ;;  %v2383_v46 = vmax.f32 %v1993_v10, 0.0  ;;  %v2033_v10 = vadd.f32 %v7624_v16, %v7282_v33  ;;  %v2048_v33 = vadd.f32 %v7294_v13, %v7624_v16 }
 0x268   : > { %1584 = vst.msk [vmem:[#allocation2 + $0x278] sm:$0xff] %vm736_vm0, %v1568_v29  ;;  %v5875_v48 = vpack.c.bf16 %v3258_v23, %v3257_v47  ;;  %v2382_v29 = vmax.f32 %v1988_v24, 0.0  ;;  %v2008_v47 = vadd.f32 %v7224_v2, %v7624_v16  ;;  %v2013_v23 = vadd.f32 %v7624_v16, %v7245_v58 }
 0x269   : > { %v2023_v2 = vadd.f32 %v7624_v16, %v7265_v11  ;;  %v2388_v58 = vmax.f32 %v2018_v34, 0.0  ;;  %v2028_v24 = vadd.f32 %v7262_v62, %v7624_v16  ;;  %v2038_v11 = vadd.f32 %v7277_v55, %v7624_v16 }
 0x26a   : > { %v7633_v45 = vpop.f32.mrb[42].mxu0  ;;  %v1663_v61 = vld [vmem:[#allocation2 + $0x270] sm:$0xff]  ;;  %5876 = vmatprep.subr.bf16.mxu0 %v5875_v48  ;;  %v2387_v31 = vmax.f32 %v2013_v23, 0.0  ;;  %v2053_v55 = vadd.f32 %v7624_v16, %v7315_v1  ;;  %v2068_v1 = vadd.f32 %v7362_v4, %v7624_v16  ;;  %v2083_v4 = vadd.f32 %v7624_v16, %v7389_v35 }
 0x26b   : > { %v7637_v0 = vpop.f32.mrb[43].mxu0  ;;  %5501 = vmatprep.mubr.msk.f32.mxu1 %vm736_vm0, %v1663_v61  ;;  %v7641_v5 = vadd.f32 %v7464_v52, %v1663_v61  ;;  %5878 = vmatpush3.bf16.msra.mxu0 %v5875_v48  ;;  %v1998_v52 = vadd.f32 %v7197_v60, %v7624_v16  ;;  %v2386_v60 = vmax.f32 %v2008_v47, 0.0  ;;  %v2390_v6 = vmax.f32 %v2028_v24, 0.0 }
 0x26c   : > { %v2392_v62 = vmax.f32 %v2038_v11, 0.0  ;;  %v2395_v47 = vmax.f32 %v2053_v55, 0.0  ;;  %v2401_v24 = vmax.f32 %v2083_v4, 0.0  ;;  %v2098_v35 = vadd.f32 %v7420_v56, %v7624_v16  ;;  %v3259_v55 = vld [vmem:[%s8325_s7 + $0x10] sm:$0xff] }
 0x26d   : > { %v2384_v41 = vmax.f32 %v1998_v52, 0.0  ;;  %v2113_v56 = vadd.f32 %v7624_v16, %v7459_v18  ;;  %v2128_v18 = vadd.f32 %v7482_v26, %v7624_v16  ;;  %v2138_v26 = vadd.f32 %v7495_v63, %v7624_v16 }
 0x26e   : > { %v2153_v63 = vadd.f32 %v7624_v16, %v7553_v42  ;;  %v2163_v4 = vadd.f32 %v7624_v16, %v7566_v27  ;;  %v2168_v42 = vadd.f32 %v7562_v38, %v7624_v16  ;;  %v2178_v27 = vadd.f32 %v7584_v49, %v7624_v16 }
 0x26f   : > { %v1664_v25 = vld [vmem:[#allocation2 + $0x278] sm:$0xff] }
 0x270   : > { %5502 = vmatmul.mubr.msk.f32.gmra.mrb[12].mxu1 %vm736_vm0, %v1664_v25  ;;  %v7649_v7 = vadd.f32 %v7471_v44, %v1664_v25  ;;  %v2385_v44 = vmax.f32 %v2003_v17, 0.0  ;;  %v2391_v25 = vmax.f32 %v2033_v10, 0.0  ;;  %v2420_v38 = vmax.f32 %v2178_v27, 0.0 }
 0x271   : > { %5512 = vmatprep.mubr.msk.f32.mxu1 %vm736_vm0, %v2381_v14  ;;  %v2389_v14 = vmax.f32 %v2023_v2, 0.0 }
 0x274   : > { %5513 = vmatmul.mubr.msk.f32.vlgmr.msra.gmra.mrb[14].mxu1 %vm736_vm0, %v2382_v29  ;;  %v2043_v29 = vadd.f32 %v7624_v16, %v7298_v36  ;;  %v2394_v36 = vmax.f32 %v2048_v33, 0.0  ;;  %v2407_v33 = vmax.f32 %v2113_v56, 0.0 }
 0x275   : > { %5515 = vmatprep.mubr.msk.f32.mxu1 %vm736_vm0, %v2383_v46 }
 0x276   : > { %v2393_v17 = vmax.f32 %v2043_v29, 0.0 }
 0x277   : > { %v7662_v48 = vpop.f32.mrb[44].mxu0 }
 0x278   : > { %v7664_v61 = vpop.f32.mrb[45].mxu0  ;;  %5516 = vmatmul.mubr.msk.f32.gmra.mrb[16].mxu1 %vm736_vm0, %v2384_v41  ;;  %v2058_v41 = vadd.f32 %v7313_v21, %v7624_v16  ;;  %v2398_v21 = vmax.f32 %v2068_v1, 0.0  ;;  %v2143_v1 = vadd.f32 %v7624_v16, %v7527_v20  ;;  %v2158_v20 = vadd.f32 %v7550_v9, %v7624_v16 }
 0x279   : > { %5518 = vmatprep.mubr.msk.f32.mxu1 %vm736_vm0, %v2385_v44  ;;  %v2063_v44 = vadd.f32 %v7624_v16, %v7365_v3  ;;  %v2078_v3 = vadd.f32 %v7370_v59, %v7624_v16  ;;  %v2418_v9 = vmax.f32 %v2168_v42, 0.0  ;;  %v2203_v56 = vadd.f32 %v7624_v16, %v7664_v61 }
 0x27a   : > { %v2396_v13 = vmax.f32 %v2058_v41, 0.0 }
 0x27b   : > { %v2397_v23 = vmax.f32 %v2063_v44, 0.0 }
 0x27c   : > { %5519 = vmatmul.mubr.msk.f32.gmra.mrb[18].mxu1 %vm736_vm0, %v2386_v60  ;;  %v2073_v60 = vadd.f32 %v7624_v16, %v7378_v57  ;;  %v2400_v57 = vmax.f32 %v2078_v3, 0.0 }
 0x27d   : > { %5521 = vmatprep.mubr.msk.f32.mxu1 %vm736_vm0, %v2387_v31 }
 0x27e   : > { %v2399_v2 = vmax.f32 %v2073_v60, 0.0  ;;  %v2148_v60 = vadd.f32 %v7524_v30, %v7624_v16  ;;  %v2416_v30 = vmax.f32 %v2158_v20, 0.0 }
 0x280   : > { %5522 = vmatmul.mubr.msk.f32.gmra.mrb[20].mxu1 %vm736_vm0, %v2388_v58  ;;  %v2088_v58 = vadd.f32 %v7386_v53, %v7624_v16  ;;  %v2414_v3 = vmax.f32 %v2148_v60, 0.0 }
 0x281   : > { %5524 = vmatprep.mubr.msk.f32.mxu1 %vm736_vm0, %v2389_v14  ;;  %v2093_v14 = vadd.f32 %v7624_v16, %v7423_v50  ;;  %v2404_v50 = vmax.f32 %v2098_v35, 0.0  ;;  %v2183_v35 = vadd.f32 %v7624_v16, %v7613_v32  ;;  %v2198_v32 = vadd.f32 %v7633_v45, %v7624_v16 }
 0x282   : > { %v2402_v59 = vmax.f32 %v2088_v58, 0.0 }
 0x283   : > { %v2403_v10 = vmax.f32 %v2093_v14, 0.0  ;;  %v2173_v14 = vadd.f32 %v7624_v16, %v7587_v8  ;;  %v2188_v8 = vadd.f32 %v7610_v51, %v7624_v16  ;;  %v2424_v51 = vmax.f32 %v2198_v32, 0.0 }
 0x284   : > { %5525 = vmatmul.mubr.msk.f32.gmra.mrb[22].mxu1 %vm736_vm0, %v2390_v6  ;;  %v2103_v6 = vadd.f32 %v7624_v16, %v7437_v43 }
 0x285   : > { %v7685_v52 = vpop.f32.mrb[46].mxu0  ;;  %5527 = vmatprep.mubr.msk.f32.mxu1 %vm736_vm0, %v2391_v25  ;;  %v2108_v25 = vadd.f32 %v7435_v39, %v7624_v16 }
 0x286   : > { %v7690_v46 = vpop.f32.mrb[47].mxu0  ;;  %v2405_v29 = vmax.f32 %v2103_v6, 0.0  ;;  %v2193_v6 = vadd.f32 %v7624_v16, %v7637_v0  ;;  %v2208_v0 = vadd.f32 %v7662_v48, %v7624_v16  ;;  %v2218_v61 = vadd.f32 %v7685_v52, %v7624_v16 }
 0x287   : > { %v2406_v43 = vmax.f32 %v2108_v25, 0.0  ;;  %v2422_v25 = vmax.f32 %v2188_v8, 0.0 }
 0x288   : > { %5528 = vmatmul.mubr.msk.f32.gmra.mrb[24].mxu1 %vm736_vm0, %v2392_v62  ;;  %v2118_v62 = vadd.f32 %v7457_v40, %v7624_v16  ;;  %v3260_v40 = vld [vmem:[%s8325_s7 + $0x18] sm:$0xff]  ;;  %v2426_v45 = vmax.f32 %v2208_v0, 0.0  ;;  %v2428_v48 = vmax.f32 %v2218_v61, 0.0 }
 0x289   : > { %5530 = vmatprep.mubr.msk.f32.mxu1 %vm736_vm0, %v2393_v17  ;;  %v2123_v17 = vadd.f32 %v7624_v16, %v7485_v54  ;;  %v2133_v54 = vadd.f32 %v7624_v16, %v7497_v19  ;;  %v5879_v41 = vpack.c.bf16 %v3260_v40, %v3259_v55  ;;  %v2412_v19 = vmax.f32 %v2138_v26, 0.0 }
 0x28a   : > { %v2408_v39 = vmax.f32 %v2118_v62, 0.0  ;;  %v2213_v62 = vadd.f32 %v7624_v16, %v7690_v46 }
 0x28b   : > { %5880 = vmatprep.subr.bf16.mxu0 %v5879_v41 }
 0x28c   : > { %5531 = vmatmul.mubr.msk.f32.gmra.mrb[26].mxu1 %vm736_vm0, %v2394_v36  ;;  %v2409_v36 = vmax.f32 %v2123_v17, 0.0  ;;  %5882 = vmatpush3.bf16.msra.mxu0 %v5879_v41 }
 0x28d   : > { %5533 = vmatprep.mubr.msk.f32.mxu1 %vm736_vm0, %v2395_v47  ;;  %v2410_v47 = vmax.f32 %v2128_v18, 0.0 }
 0x28f   : > { %v7706_v34 = vpop.f32.mrb[48].mxu0 }
 0x290   : > { %v7708_v31 = vpop.f32.mrb[49].mxu0  ;;  %5534 = vmatmul.mubr.msk.f32.gmra.mrb[28].mxu1 %vm736_vm0, %v2396_v13  ;;  %v2411_v13 = vmax.f32 %v2133_v54, 0.0  ;;  %v2228_v46 = vadd.f32 %v7706_v34, %v7624_v16 }
 0x291   : > { %5536 = vmatprep.mubr.msk.f32.mxu1 %vm736_vm0, %v2397_v23  ;;  %v2223_v17 = vadd.f32 %v7624_v16, %v7708_v31 }
 0x292   : > { %v2430_v52 = vmax.f32 %v2228_v46, 0.0 }
 0x293   : > { %v2429_v18 = vmax.f32 %v2223_v17, 0.0 }
 0x294   : > { %5537 = vmatmul.mubr.msk.f32.gmra.mrb[30].mxu1 %vm736_vm0, %v2398_v21  ;;  %v2413_v21 = vmax.f32 %v2143_v1, 0.0 }
 0x295   : > { %5539 = vmatprep.mubr.msk.f32.mxu1 %vm736_vm0, %v2399_v2  ;;  %v2415_v2 = vmax.f32 %v2153_v63, 0.0 }
 0x298   : > { %5540 = vmatmul.mubr.msk.f32.gmra.mrb[32].mxu1 %vm736_vm0, %v2400_v57 }
 0x299   : > { %5542 = vmatprep.mubr.msk.f32.mxu1 %vm736_vm0, %v2401_v24  ;;  %v2417_v24 = vmax.f32 %v2163_v4, 0.0 }
 0x29c   : > { %v7728_v11 = vpop.f32.mrb[50].mxu0  ;;  %5543 = vmatmul.mubr.msk.f32.gmra.mrb[34].mxu1 %vm736_vm0, %v2402_v59  ;;  %v2419_v59 = vmax.f32 %v2173_v14, 0.0 }
 0x29d   : > { %v7731_v53 = vpop.f32.mrb[51].mxu0  ;;  %5545 = vmatprep.mubr.msk.f32.mxu1 %vm736_vm0, %v2403_v10  ;;  %v2421_v10 = vmax.f32 %v2183_v35, 0.0  ;;  %v2238_v31 = vadd.f32 %v7728_v11, %v7624_v16 }
 0x29e   : > { %v2233_v55 = vadd.f32 %v7624_v16, %v7731_v53 }
 0x29f   : > { %v2432_v34 = vmax.f32 %v2238_v31, 0.0 }
 0x2a0   : > { %5546 = vmatmul.mubr.msk.f32.gmra.mrb[36].mxu1 %vm736_vm0, %v2404_v50 }
 0x2a1   : > { %5548 = vmatprep.mubr.msk.f32.mxu1 %vm736_vm0, %v2405_v29  ;;  %v2423_v29 = vmax.f32 %v2193_v6, 0.0 }
 0x2a4   : > { %5549 = vmatmul.mubr.msk.f32.gmra.mrb[38].mxu1 %vm736_vm0, %v2406_v43  ;;  %v2425_v43 = vmax.f32 %v2203_v56, 0.0 }
 0x2a5   : > { %5551 = vmatprep.mubr.msk.f32.mxu1 %vm736_vm0, %v2407_v33  ;;  %v2427_v33 = vmax.f32 %v2213_v62, 0.0 }
 0x2a8   : > { %5552 = vmatmul.mubr.msk.f32.gmra.mrb[40].mxu1 %vm736_vm0, %v2408_v39 }
 0x2a9   : > { %5554 = vmatprep.mubr.msk.f32.mxu1 %vm736_vm0, %v2409_v36  ;;  %v2431_v36 = vmax.f32 %v2233_v55, 0.0 }
 0x2aa   : > { %v7760_v44 = vpop.f32.mrb[52].mxu0 }
 0x2ab   : > { %v7764_v23 = vpop.f32.mrb[53].mxu0  ;;  %v2248_v53 = vadd.f32 %v7760_v44, %v7624_v16 }
 0x2ac   : > { %5555 = vmatmul.mubr.msk.f32.gmra.mrb[42].mxu1 %vm736_vm0, %v2410_v47  ;;  %v2243_v54 = vadd.f32 %v7624_v16, %v7764_v23 }
 0x2ad   : > { %5557 = vmatprep.mubr.msk.f32.mxu1 %vm736_vm0, %v2411_v13  ;;  %v2434_v11 = vmax.f32 %v2248_v53, 0.0 }
 0x2ae   : > { %v2433_v41 = vmax.f32 %v2243_v54, 0.0 }
 0x2b0   : > { %5558 = vmatmul.mubr.msk.f32.gmra.mrb[44].mxu1 %vm736_vm0, %v2412_v19 }
 0x2b1   : > { %5560 = vmatprep.mubr.msk.f32.mxu1 %vm736_vm0, %v2413_v21 }
 0x2b3   : > { %v7778_v57 = vpop.f32.mrb[54].mxu0 }
 0x2b4   : > { %v2252_v58 = vpop.f32.mrb[55].mxu0  ;;  %5561 = vmatmul.mubr.msk.f32.gmra.mrb[46].mxu1 %vm736_vm0, %v2414_v3  ;;  %v2258_v1 = vadd.f32 %v7778_v57, %v7624_v16 }
 0x2b5   : > { %5563 = vmatprep.mubr.msk.f32.mxu1 %vm736_vm0, %v2415_v2  ;;  %v2253_v47 = vadd.f32 %v7624_v16, %v2252_v58 }
 0x2b6   : > { %v2436_v44 = vmax.f32 %v2258_v1, 0.0 }
 0x2b7   : > { %v2435_v23 = vmax.f32 %v2253_v47, 0.0 }
 0x2b8   : > { %5564 = vmatmul.mubr.msk.f32.gmra.mrb[48].mxu1 %vm736_vm0, %v2416_v30 }
 0x2b9   : > { %5566 = vmatprep.mubr.msk.f32.mxu1 %vm736_vm0, %v2417_v24 }
 0x2bc   : > { %5567 = vmatmul.mubr.msk.f32.gmra.mrb[50].mxu1 %vm736_vm0, %v2418_v9 }
 0x2bd   : > { %5569 = vmatprep.mubr.msk.f32.mxu1 %vm736_vm0, %v2419_v59 }
 0x2c0   : > { %v5470_v50 = vpop.f32.mrb[56].mxu0  ;;  %5570 = vmatmul.mubr.msk.f32.gmra.mrb[52].mxu1 %vm736_vm0, %v2420_v38 }
 0x2c1   : > { %v2262_v49 = vpop.f32.mrb[57].mxu0  ;;  %5572 = vmatprep.mubr.msk.f32.mxu1 %vm736_vm0, %v2421_v10  ;;  %v2268_v60 = vadd.f32 %v5470_v50, %v7624_v16 }
 0x2c2   : > { %v2263_v19 = vadd.f32 %v7624_v16, %v2262_v49 }
 0x2c3   : > { %v2438_v3 = vmax.f32 %v2268_v60, 0.0 }
 0x2c4   : > { %5573 = vmatmul.mubr.msk.f32.gmra.mrb[54].mxu1 %vm736_vm0, %v2422_v25  ;;  %v2437_v21 = vmax.f32 %v2263_v19, 0.0 }
 0x2c5   : > { %5575 = vmatprep.mubr.msk.f32.mxu1 %vm736_vm0, %v2423_v29 }
 0x2c8   : > { %5576 = vmatmul.mubr.msk.f32.gmra.mrb[56].mxu1 %vm736_vm0, %v2424_v51 }
 0x2c9   : > { %5578 = vmatprep.mubr.msk.f32.mxu1 %vm736_vm0, %v2425_v43 }
 0x2cc   : > { %5579 = vmatmul.mubr.msk.f32.gmra.mrb[58].mxu1 %vm736_vm0, %v2426_v45 }
 0x2cd   : > { %5581 = vmatprep.mubr.msk.f32.mxu1 %vm736_vm0, %v2427_v33 }
 0x2ce   : > { %v5473_v39 = vpop.f32.mrb[58].mxu0 }
 0x2cf   : > { %v2272_v40 = vpop.f32.mrb[59].mxu0  ;;  %v2278_v20 = vadd.f32 %v5473_v39, %v7624_v16 }
 0x2d0   : > { %5582 = vmatmul.mubr.msk.f32.gmra.mrb[60].mxu1 %vm736_vm0, %v2428_v48  ;;  %v2273_v63 = vadd.f32 %v7624_v16, %v2272_v40 }
 0x2d1   : > { %5584 = vmatprep.mubr.msk.f32.mxu1 %vm736_vm0, %v2429_v18  ;;  %v2440_v30 = vmax.f32 %v2278_v20, 0.0 }
 0x2d2   : > { %v2439_v2 = vmax.f32 %v2273_v63, 0.0 }
 0x2d4   : > { %5585 = vmatmul.mubr.msk.f32.gmra.mrb[62].mxu1 %vm736_vm0, %v2430_v52 }
 0x2d5   : > { %5587 = vmatprep.mubr.msk.f32.mxu1 %vm736_vm0, %v2431_v36 }
 0x2d7   : > { %v5476_v26 = vpop.f32.mrb[60].mxu0 }
 0x2d8   : > { %v2282_v13 = vpop.f32.mrb[61].mxu0  ;;  %5588 = vmatmul.mubr.msk.f32.gmra.mrb[64].mxu1 %vm736_vm0, %v2432_v34  ;;  %v2288_v42 = vadd.f32 %v5476_v26, %v7624_v16 }
 0x2d9   : > { %5590 = vmatprep.mubr.msk.f32.mxu1 %vm736_vm0, %v2433_v41  ;;  %v2283_v4 = vadd.f32 %v7624_v16, %v2282_v13 }
 0x2da   : > { %v2442_v9 = vmax.f32 %v2288_v42, 0.0 }
 0x2db   : > { %v2441_v24 = vmax.f32 %v2283_v4, 0.0 }
 0x2dc   : > { %5591 = vmatmul.mubr.msk.f32.gmra.mrb[66].mxu1 %vm736_vm0, %v2434_v11 }
 0x2dd   : > { %5593 = vmatprep.mubr.msk.f32.mxu1 %vm736_vm0, %v2435_v23 }
 0x2e0   : > { %5594 = vmatmul.mubr.msk.f32.gmra.mrb[68].mxu1 %vm736_vm0, %v2436_v44 }
 0x2e1   : > { %5596 = vmatprep.mubr.msk.f32.mxu1 %vm736_vm0, %v2437_v21 }
 0x2e4   : > { %v5479_v57 = vpop.f32.mrb[62].mxu0  ;;  %5597 = vmatmul.mubr.msk.f32.gmra.mrb[70].mxu1 %vm736_vm0, %v2438_v3 }
 0x2e5   : > { %v2292_v58 = vpop.f32.mrb[63].mxu0  ;;  %5599 = vmatprep.mubr.msk.f32.mxu1 %vm736_vm0, %v2439_v2  ;;  %v2298_v27 = vadd.f32 %v5479_v57, %v7624_v16  ;;  %v7889_v57 = vld [vmem:[%s8324_s6] ss:$0 sm:$0xff] }
 0x2e6   : > { %v2293_v14 = vadd.f32 %v7624_v16, %v2292_v58 }
 0x2e7   : > { %v2444_v35 = vmax.f32 %v2298_v27, 0.0 }
 0x2e8   : > { %5600 = vmatmul.mubr.msk.f32.gmra.mrb[72].mxu1 %vm736_vm0, %v2440_v30  ;;  %v2443_v59 = vmax.f32 %v2293_v14, 0.0 }
 0x2e9   : > { %5602 = vmatprep.mubr.msk.f32.mxu1 %vm736_vm0, %v2441_v24 }
 0x2ec   : > { %5603 = vmatmul.mubr.msk.f32.gmra.mrb[74].mxu1 %vm736_vm0, %v2442_v9 }
 0x2ed   : > { %5605 = vmatprep.mubr.msk.f32.mxu1 %vm736_vm0, %v2443_v59 }
 0x2f0   : > { %5606 = vmatmul.mubr.msk.f32.gmra.mrb[76].mxu1 %vm736_vm0, %v2444_v35 }
 0x2f2   : > { %v5482_v38 = vpop.f32.mrb[64].mxu0 }
 0x2f3   : > { %v2308_v8 = vadd.f32 %v5482_v38, %v7624_v16  ;;  %v2302_v10 = vpop.f32.mrb[65].mxu0 }
 0x2f4   : > { %v2303_v6 = vadd.f32 %v7624_v16, %v2302_v10 }
 0x2f5   : > { %v2446_v49 = vmax.f32 %v2308_v8, 0.0 }
 0x2f6   : > { %v2445_v50 = vmax.f32 %v2303_v6, 0.0 }
 0x2f8   : > { %5608 = vmatprep.mubr.msk.f32.mxu1 %vm736_vm0, %v2445_v50 }
 0x2f9   : > { %5609 = vmatmul.mubr.msk.f32.gmra.mrb[78].mxu1 %vm736_vm0, %v2446_v49 }
 0x2fb   : > { %v5485_v25 = vpop.f32.mrb[0].mxu1 }
 0x2fc   : > { %v2318_v32 = vadd.f32 %v5485_v25, %v7624_v16  ;;  %v2312_v29 = vpop.f32.mrb[1].mxu1 }
 0x2fd   : > { %v2313_v56 = vadd.f32 %v7624_v16, %v2312_v29 }
 0x2fe   : > { %v2448_v0 = vmax.f32 %v2318_v32, 0.0 }
 0x2ff   : > { %v2447_v51 = vmax.f32 %v2313_v56, 0.0 }
 0x301   : > { %5611 = vmatprep.mubr.msk.f32.mxu1 %vm736_vm0, %v2447_v51 }
 0x302   : > { %5612 = vmatmul.mubr.msk.f32.gmra.mrb[80].mxu1 %vm736_vm0, %v2448_v0 }
 0x308   : > { %v5488_v43 = vpop.f32.mrb[2].mxu1 }
 0x309   : > { %v2328_v62 = vadd.f32 %v5488_v43, %v7624_v16  ;;  %v2322_v45 = vpop.f32.mrb[3].mxu1 }
 0x30a   : > { %v2323_v61 = vadd.f32 %v7624_v16, %v2322_v45 }
 0x30b   : > { %v2450_v17 = vmax.f32 %v2328_v62, 0.0 }
 0x30c   : > { %v2449_v33 = vmax.f32 %v2323_v61, 0.0 }
 0x30e   : > { %5614 = vmatprep.mubr.msk.f32.mxu1 %vm736_vm0, %v2449_v33 }
 0x30f   : > { %5615 = vmatmul.mubr.msk.f32.gmra.mrb[82].mxu1 %vm736_vm0, %v2450_v17 }
 0x316   : > { %v5491_v48 = vpop.f32.mrb[4].mxu1 }
 0x317   : > { %v2338_v46 = vadd.f32 %v5491_v48, %v7624_v16  ;;  %v2332_v39 = vpop.f32.mrb[5].mxu1 }
 0x318   : > { %v2333_v18 = vadd.f32 %v7624_v16, %v2332_v39 }
 0x319   : > { %v2452_v40 = vmax.f32 %v2338_v46, 0.0 }
 0x31a   : > { %v2451_v55 = vmax.f32 %v2333_v18, 0.0 }
 0x31c   : > { %5617 = vmatprep.mubr.msk.f32.mxu1 %vm736_vm0, %v2451_v55 }
 0x31d   : > { %5618 = vmatmul.mubr.msk.f32.gmra.mrb[84].mxu1 %vm736_vm0, %v2452_v40 }
 0x31f   : > { %v5494_v52 = vpop.f32.mrb[6].mxu1 }
 0x320   : > { %v2348_v31 = vadd.f32 %v5494_v52, %v7624_v16  ;;  %v2342_v36 = vpop.f32.mrb[7].mxu1 }
 0x321   : > { %v2343_v54 = vadd.f32 %v7624_v16, %v2342_v36 }
 0x322   : > { %v2454_v53 = vmax.f32 %v2348_v31, 0.0 }
 0x323   : > { %v2453_v34 = vmax.f32 %v2343_v54, 0.0 }
 0x325   : > { %5620 = vmatprep.mubr.msk.f32.mxu1 %vm736_vm0, %v2453_v34 }
 0x326   : > { %5621 = vmatmul.mubr.msk.f32.gmra.mrb[86].mxu1 %vm736_vm0, %v2454_v53 }
 0x32c   : > { %v5497_v41 = vpop.f32.mrb[8].mxu1 }
 0x32d   : > { %v2358_v47 = vadd.f32 %v5497_v41, %v7624_v16  ;;  %v2352_v26 = vpop.f32.mrb[9].mxu1 }
 0x32e   : > { %v2353_v13 = vadd.f32 %v7624_v16, %v2352_v26 }
 0x32f   : > { %v2456_v1 = vmax.f32 %v2358_v47, 0.0 }
 0x330   : > { %v2455_v11 = vmax.f32 %v2353_v13, 0.0 }
 0x332   : > { %5623 = vmatprep.mubr.msk.f32.mxu1 %vm736_vm0, %v2455_v11 }
 0x333   : > { %5624 = vmatmul.mubr.msk.f32.gmra.mrb[88].mxu1 %vm736_vm0, %v2456_v1 }
 0x33a   : > { %v5500_v23 = vpop.f32.mrb[10].mxu1 }
 0x33b   : > { %v2368_v19 = vadd.f32 %v5500_v23, %v7624_v16  ;;  %v2362_v44 = vpop.f32.mrb[11].mxu1 }
 0x33c   : > { %v2363_v60 = vadd.f32 %v7624_v16, %v2362_v44 }
 0x33d   : > { %v2458_v63 = vmax.f32 %v2368_v19, 0.0 }
 0x33e   : > { %v2457_v21 = vmax.f32 %v2363_v60, 0.0 }
 0x340   : > { %5626 = vmatprep.mubr.msk.f32.mxu1 %vm736_vm0, %v2457_v21 }
 0x341   : > { %5627 = vmatmul.mubr.msk.f32.gmra.mrb[90].mxu1 %vm736_vm0, %v2458_v63 }
 0x343   : > { %v5503_v3 = vpop.f32.mrb[12].mxu1 }
 0x344   : > { %v2378_v20 = vadd.f32 %v5503_v3, %v7624_v16  ;;  %v2372_v2 = vpop.f32.mrb[13].mxu1 }
 0x345   : > { %v2373_v4 = vadd.f32 %v7624_v16, %v2372_v2 }
 0x346   : > { %v2460_v42 = vmax.f32 %v2378_v20, 0.0 }
 0x347   : > { %v2459_v58 = vmax.f32 %v2373_v4, 0.0  ;;  %v5514_v30 = vpop.f32.mrb[14].mxu1 }
 0x348   : > { %v2784_v24 = vadd.f32 %v5514_v30, %v7889_v57  ;;  %v2778_v14 = vpop.f32.mrb[15].mxu1 }
 0x349   : > { %v2779_v9 = vadd.f32 %v7889_v57, %v2778_v14  ;;  %5629 = vmatprep.mubr.msk.f32.mxu1 %vm736_vm0, %v2459_v58 }
 0x34a   : > { %5630 = vmatmul.mubr.msk.f32.gmra.mrb[92].mxu1 %vm736_vm0, %v2460_v42  ;;  %v3178_v16 = vmax.f32 %v2784_v24, 0.0 }
 0x34b   : > { %v3177_v27 = vmax.f32 %v2779_v9, 0.0  ;;  %v5517_v59 = vpop.f32.mrb[16].mxu1 }
 0x34c   : > { %v2794_v35 = vadd.f32 %v5517_v59, %v7889_v57  ;;  %v2788_v38 = vpop.f32.mrb[17].mxu1 }
 0x34d   : > { %v2789_v8 = vadd.f32 %v7889_v57, %v2788_v38  ;;  %5640 = vmatprep.mubr.msk.f32.mxu0 %vm736_vm0, %v3177_v27 }
 0x34e   : > { %5641 = vmatmul.mubr.msk.f32.vlgmr.msra.gmra.mrb[66].mxu0 %vm736_vm0, %v3178_v16  ;;  %v3180_v50 = vmax.f32 %v2794_v35, 0.0 }
 0x34f   : > { %v3179_v10 = vmax.f32 %v2789_v8, 0.0  ;;  %v5520_v6 = vpop.f32.mrb[18].mxu1 }
 0x350   : > { %v2804_v49 = vadd.f32 %v5520_v6, %v7889_v57  ;;  %v2798_v25 = vpop.f32.mrb[19].mxu1 }
 0x351   : > { %v2799_v32 = vadd.f32 %v7889_v57, %v2798_v25  ;;  %5643 = vmatprep.mubr.msk.f32.mxu0 %vm736_vm0, %v3179_v10 }
 0x352   : > { %5644 = vmatmul.mubr.msk.f32.gmra.mrb[68].mxu0 %vm736_vm0, %v3180_v50  ;;  %v3182_v51 = vmax.f32 %v2804_v49, 0.0 }
 0x353   : > { %v3181_v29 = vmax.f32 %v2799_v32, 0.0  ;;  %v5523_v56 = vpop.f32.mrb[20].mxu1 }
 0x354   : > { %v2814_v0 = vadd.f32 %v5523_v56, %v7889_v57  ;;  %v2808_v43 = vpop.f32.mrb[21].mxu1 }
 0x355   : > { %v2809_v62 = vadd.f32 %v7889_v57, %v2808_v43  ;;  %5646 = vmatprep.mubr.msk.f32.mxu0 %vm736_vm0, %v3181_v29 }
 0x356   : > { %5647 = vmatmul.mubr.msk.f32.gmra.mrb[70].mxu0 %vm736_vm0, %v3182_v51  ;;  %v3184_v33 = vmax.f32 %v2814_v0, 0.0 }
 0x357   : > { %v3183_v45 = vmax.f32 %v2809_v62, 0.0  ;;  %v5526_v61 = vpop.f32.mrb[22].mxu1 }
 0x358   : > { %v2824_v17 = vadd.f32 %v5526_v61, %v7889_v57  ;;  %v2818_v48 = vpop.f32.mrb[23].mxu1 }
 0x359   : > { %v2819_v46 = vadd.f32 %v7889_v57, %v2818_v48  ;;  %5649 = vmatprep.mubr.msk.f32.mxu0 %vm736_vm0, %v3183_v45 }
 0x35a   : > { %5650 = vmatmul.mubr.msk.f32.gmra.mrb[72].mxu0 %vm736_vm0, %v3184_v33  ;;  %v3186_v55 = vmax.f32 %v2824_v17, 0.0 }
 0x35b   : > { %v3185_v39 = vmax.f32 %v2819_v46, 0.0  ;;  %v5529_v18 = vpop.f32.mrb[24].mxu1 }
 0x35c   : > { %v2834_v40 = vadd.f32 %v5529_v18, %v7889_v57  ;;  %v2828_v52 = vpop.f32.mrb[25].mxu1 }
 0x35d   : > { %v2829_v31 = vadd.f32 %v7889_v57, %v2828_v52  ;;  %5652 = vmatprep.mubr.msk.f32.mxu0 %vm736_vm0, %v3185_v39 }
 0x35e   : > { %5653 = vmatmul.mubr.msk.f32.gmra.mrb[74].mxu0 %vm736_vm0, %v3186_v55  ;;  %v3188_v34 = vmax.f32 %v2834_v40, 0.0 }
 0x35f   : > { %v3187_v36 = vmax.f32 %v2829_v31, 0.0  ;;  %v5532_v54 = vpop.f32.mrb[26].mxu1 }
 0x360   : > { %v2844_v53 = vadd.f32 %v5532_v54, %v7889_v57  ;;  %v2838_v41 = vpop.f32.mrb[27].mxu1 }
 0x361   : > { %v2839_v47 = vadd.f32 %v7889_v57, %v2838_v41  ;;  %5655 = vmatprep.mubr.msk.f32.mxu0 %vm736_vm0, %v3187_v36 }
 0x362   : > { %5656 = vmatmul.mubr.msk.f32.gmra.mrb[76].mxu0 %vm736_vm0, %v3188_v34  ;;  %v3190_v11 = vmax.f32 %v2844_v53, 0.0 }
 0x363   : > { %v3189_v26 = vmax.f32 %v2839_v47, 0.0  ;;  %v5535_v13 = vpop.f32.mrb[28].mxu1 }
 0x364   : > { %v2854_v1 = vadd.f32 %v5535_v13, %v7889_v57  ;;  %v2848_v23 = vpop.f32.mrb[29].mxu1 }
 0x365   : > { %v2849_v19 = vadd.f32 %v7889_v57, %v2848_v23  ;;  %5658 = vmatprep.mubr.msk.f32.mxu0 %vm736_vm0, %v3189_v26 }
 0x366   : > { %5659 = vmatmul.mubr.msk.f32.gmra.mrb[78].mxu0 %vm736_vm0, %v3190_v11  ;;  %v3192_v21 = vmax.f32 %v2854_v1, 0.0 }
 0x367   : > { %v3191_v44 = vmax.f32 %v2849_v19, 0.0  ;;  %v5538_v60 = vpop.f32.mrb[30].mxu1 }
 0x368   : > { %v2864_v63 = vadd.f32 %v5538_v60, %v7889_v57  ;;  %v2858_v3 = vpop.f32.mrb[31].mxu1 }
 0x369   : > { %v2859_v20 = vadd.f32 %v7889_v57, %v2858_v3  ;;  %5661 = vmatprep.mubr.msk.f32.mxu0 %vm736_vm0, %v3191_v44 }
 0x36a   : > { %5662 = vmatmul.mubr.msk.f32.gmra.mrb[80].mxu0 %vm736_vm0, %v3192_v21  ;;  %v3194_v58 = vmax.f32 %v2864_v63, 0.0 }
 0x36b   : > { %v3193_v2 = vmax.f32 %v2859_v20, 0.0  ;;  %v5541_v4 = vpop.f32.mrb[32].mxu1 }
 0x36c   : > { %v2874_v30 = vadd.f32 %v5541_v4, %v7889_v57  ;;  %v2868_v42 = vpop.f32.mrb[33].mxu1 }
 0x36d   : > { %v2869_v24 = vadd.f32 %v7889_v57, %v2868_v42  ;;  %5664 = vmatprep.mubr.msk.f32.mxu0 %vm736_vm0, %v3193_v2 }
 0x36e   : > { %5665 = vmatmul.mubr.msk.f32.gmra.mrb[66].mxu0 %vm736_vm0, %v3194_v58  ;;  %v3196_v27 = vmax.f32 %v2874_v30, 0.0 }
 0x36f   : > { %v3195_v14 = vmax.f32 %v2869_v24, 0.0  ;;  %v5544_v9 = vpop.f32.mrb[34].mxu1 }
 0x370   : > { %v2884_v59 = vadd.f32 %v5544_v9, %v7889_v57  ;;  %v2878_v16 = vpop.f32.mrb[35].mxu1 }
 0x371   : > { %v2879_v35 = vadd.f32 %v7889_v57, %v2878_v16  ;;  %5667 = vmatprep.mubr.msk.f32.mxu0 %vm736_vm0, %v3195_v14 }
 0x372   : > { %5668 = vmatmul.mubr.msk.f32.gmra.mrb[68].mxu0 %vm736_vm0, %v3196_v27  ;;  %v3198_v10 = vmax.f32 %v2884_v59, 0.0 }
 0x373   : > { %v3197_v38 = vmax.f32 %v2879_v35, 0.0  ;;  %v5547_v8 = vpop.f32.mrb[36].mxu1 }
 0x374   : > { %v2894_v6 = vadd.f32 %v5547_v8, %v7889_v57  ;;  %v2888_v50 = vpop.f32.mrb[37].mxu1 }
 0x375   : > { %v2889_v49 = vadd.f32 %v7889_v57, %v2888_v50  ;;  %5670 = vmatprep.mubr.msk.f32.mxu0 %vm736_vm0, %v3197_v38 }
 0x376   : > { %5671 = vmatmul.mubr.msk.f32.gmra.mrb[70].mxu0 %vm736_vm0, %v3198_v10  ;;  %v3200_v29 = vmax.f32 %v2894_v6, 0.0 }
 0x377   : > { %v3199_v25 = vmax.f32 %v2889_v49, 0.0  ;;  %v5550_v32 = vpop.f32.mrb[38].mxu1 }
 0x378   : > { %v2904_v56 = vadd.f32 %v5550_v32, %v7889_v57  ;;  %v2898_v51 = vpop.f32.mrb[39].mxu1 }
 0x379   : > { %v2899_v0 = vadd.f32 %v7889_v57, %v2898_v51  ;;  %5673 = vmatprep.mubr.msk.f32.mxu0 %vm736_vm0, %v3199_v25 }
 0x37a   : > { %5674 = vmatmul.mubr.msk.f32.gmra.mrb[72].mxu0 %vm736_vm0, %v3200_v29  ;;  %v3202_v45 = vmax.f32 %v2904_v56, 0.0 }
 0x37b   : > { %v3201_v43 = vmax.f32 %v2899_v0, 0.0  ;;  %v5553_v62 = vpop.f32.mrb[40].mxu1 }
 0x37c   : > { %v2914_v61 = vadd.f32 %v5553_v62, %v7889_v57  ;;  %v2908_v33 = vpop.f32.mrb[41].mxu1 }
 0x37d   : > { %v2909_v17 = vadd.f32 %v7889_v57, %v2908_v33  ;;  %5676 = vmatprep.mubr.msk.f32.mxu0 %vm736_vm0, %v3201_v43 }
 0x37e   : > { %5677 = vmatmul.mubr.msk.f32.gmra.mrb[74].mxu0 %vm736_vm0, %v3202_v45  ;;  %v3204_v39 = vmax.f32 %v2914_v61, 0.0 }
 0x37f   : > { %v3203_v48 = vmax.f32 %v2909_v17, 0.0  ;;  %v5556_v46 = vpop.f32.mrb[42].mxu1 }
 0x380   : > { %v2924_v18 = vadd.f32 %v5556_v46, %v7889_v57  ;;  %v2918_v55 = vpop.f32.mrb[43].mxu1  ;;  %v4118_v46 = vld [vmem:[%s8327_s9 + $0x8] sm:$0xff] }
 0x381   : > { %v2919_v40 = vadd.f32 %v7889_v57, %v2918_v55  ;;  %5679 = vmatprep.mubr.msk.f32.mxu0 %vm736_vm0, %v3203_v48  ;;  %v4117_v48 = vld [vmem:[%s8327_s9] sm:$0xff] }
 0x382   : > { %5680 = vmatmul.mubr.msk.f32.gmra.mrb[76].mxu0 %vm736_vm0, %v3204_v39  ;;  %v3206_v36 = vmax.f32 %v2924_v18, 0.0 }
 0x383   : > { %v3205_v52 = vmax.f32 %v2919_v40, 0.0  ;;  %v5559_v31 = vpop.f32.mrb[44].mxu1  ;;  %v5883_v40 = vpack.c.bf16 %v4118_v46, %v4117_v48 }
 0x384   : > { %v2934_v54 = vadd.f32 %v5559_v31, %v7889_v57  ;;  %v2928_v34 = vpop.f32.mrb[45].mxu1  ;;  %v4120_v31 = vld [vmem:[%s8327_s9 + $0x18] sm:$0xff] }
 0x385   : > { %v2929_v53 = vadd.f32 %v7889_v57, %v2928_v34  ;;  %5682 = vmatprep.mubr.msk.f32.mxu0 %vm736_vm0, %v3205_v52  ;;  %v4119_v52 = vld [vmem:[%s8327_s9 + $0x10] sm:$0xff]  ;;  %5884 = vmatprep.subr.bf16.mxu1 %v5883_v40 }
 0x386   : > { %5683 = vmatmul.mubr.msk.f32.gmra.mrb[78].mxu0 %vm736_vm0, %v3206_v36  ;;  %v3208_v26 = vmax.f32 %v2934_v54, 0.0  ;;  %v5887_v54 = vpack.c.bf16 %v4120_v31, %v4119_v52  ;;  %5886 = vmatpush3.bf16.msra.mxu1 %v5883_v40 }
 0x387   : > { %v3207_v41 = vmax.f32 %v2929_v53, 0.0  ;;  %v5562_v47 = vpop.f32.mrb[46].mxu1 }
 0x388   : > { %v2944_v13 = vadd.f32 %v5562_v47, %v7889_v57  ;;  %v2938_v11 = vpop.f32.mrb[47].mxu1  ;;  %5888 = vmatprep.subr.bf16.mxu1 %v5887_v54 }
 0x389   : > { %v2939_v1 = vadd.f32 %v7889_v57, %v2938_v11  ;;  %5685 = vmatprep.mubr.msk.f32.mxu0 %vm736_vm0, %v3207_v41 }
 0x38a   : > { %5686 = vmatmul.mubr.msk.f32.gmra.mrb[80].mxu0 %vm736_vm0, %v3208_v26  ;;  %v3210_v44 = vmax.f32 %v2944_v13, 0.0  ;;  %5890 = vmatpush3.bf16.msra.mxu1 %v5887_v54 }
 0x38b   : > { %v3209_v23 = vmax.f32 %v2939_v1, 0.0  ;;  %v5565_v19 = vpop.f32.mrb[48].mxu1 }
 0x38c   : > { %v2954_v60 = vadd.f32 %v5565_v19, %v7889_v57  ;;  %v2948_v21 = vpop.f32.mrb[49].mxu1 }
 0x38d   : > { %v2949_v63 = vadd.f32 %v7889_v57, %v2948_v21  ;;  %5688 = vmatprep.mubr.msk.f32.mxu0 %vm736_vm0, %v3209_v23 }
 0x38e   : > { %5689 = vmatmul.mubr.msk.f32.gmra.mrb[66].mxu0 %vm736_vm0, %v3210_v44  ;;  %v3212_v2 = vmax.f32 %v2954_v60, 0.0 }
 0x38f   : > { %v3211_v3 = vmax.f32 %v2949_v63, 0.0  ;;  %v5568_v20 = vpop.f32.mrb[50].mxu1 }
 0x390   : > { %v2964_v4 = vadd.f32 %v5568_v20, %v7889_v57  ;;  %v2958_v58 = vpop.f32.mrb[51].mxu1 }
 0x391   : > { %v2959_v30 = vadd.f32 %v7889_v57, %v2958_v58  ;;  %5691 = vmatprep.mubr.msk.f32.mxu0 %vm736_vm0, %v3211_v3 }
 0x392   : > { %5692 = vmatmul.mubr.msk.f32.gmra.mrb[68].mxu0 %vm736_vm0, %v3212_v2  ;;  %v3214_v14 = vmax.f32 %v2964_v4, 0.0 }
 0x393   : > { %v3213_v42 = vmax.f32 %v2959_v30, 0.0  ;;  %v5571_v24 = vpop.f32.mrb[52].mxu1 }
 0x394   : > { %v2974_v9 = vadd.f32 %v5571_v24, %v7889_v57  ;;  %v2968_v27 = vpop.f32.mrb[53].mxu1 }
 0x395   : > { %v2969_v59 = vadd.f32 %v7889_v57, %v2968_v27  ;;  %5694 = vmatprep.mubr.msk.f32.mxu0 %vm736_vm0, %v3213_v42 }
 0x396   : > { %5695 = vmatmul.mubr.msk.f32.gmra.mrb[70].mxu0 %vm736_vm0, %v3214_v14  ;;  %v3216_v38 = vmax.f32 %v2974_v9, 0.0 }
 0x397   : > { %v3215_v16 = vmax.f32 %v2969_v59, 0.0  ;;  %v5574_v35 = vpop.f32.mrb[54].mxu1 }
 0x398   : > { %v2984_v8 = vadd.f32 %v5574_v35, %v7889_v57  ;;  %v2978_v10 = vpop.f32.mrb[55].mxu1 }
 0x399   : > { %v2979_v6 = vadd.f32 %v7889_v57, %v2978_v10  ;;  %5697 = vmatprep.mubr.msk.f32.mxu0 %vm736_vm0, %v3215_v16 }
 0x39a   : > { %5698 = vmatmul.mubr.msk.f32.gmra.mrb[72].mxu0 %vm736_vm0, %v3216_v38  ;;  %v3218_v25 = vmax.f32 %v2984_v8, 0.0 }
 0x39b   : > { %v3217_v50 = vmax.f32 %v2979_v6, 0.0  ;;  %v5577_v49 = vpop.f32.mrb[56].mxu1 }
 0x39c   : > { %v2994_v32 = vadd.f32 %v5577_v49, %v7889_v57  ;;  %v2988_v29 = vpop.f32.mrb[57].mxu1 }
 0x39d   : > { %v2989_v56 = vadd.f32 %v7889_v57, %v2988_v29  ;;  %5700 = vmatprep.mubr.msk.f32.mxu0 %vm736_vm0, %v3217_v50 }
 0x39e   : > { %5701 = vmatmul.mubr.msk.f32.gmra.mrb[74].mxu0 %vm736_vm0, %v3218_v25  ;;  %v3220_v43 = vmax.f32 %v2994_v32, 0.0 }
 0x39f   : > { %v3219_v51 = vmax.f32 %v2989_v56, 0.0  ;;  %v5580_v0 = vpop.f32.mrb[58].mxu1 }
 0x3a0   : > { %v3004_v62 = vadd.f32 %v5580_v0, %v7889_v57  ;;  %v2998_v45 = vpop.f32.mrb[59].mxu1 }
 0x3a1   : > { %v2999_v61 = vadd.f32 %v7889_v57, %v2998_v45  ;;  %5703 = vmatprep.mubr.msk.f32.mxu0 %vm736_vm0, %v3219_v51 }
 0x3a2   : > { %5704 = vmatmul.mubr.msk.f32.gmra.mrb[76].mxu0 %vm736_vm0, %v3220_v43  ;;  %v3222_v39 = vmax.f32 %v3004_v62, 0.0 }
 0x3a3   : > { %v3221_v33 = vmax.f32 %v2999_v61, 0.0  ;;  %v5583_v17 = vpop.f32.mrb[60].mxu1 }
 0x3a4   : > { %v3014_v18 = vadd.f32 %v5583_v17, %v7889_v57  ;;  %v3008_v55 = vpop.f32.mrb[61].mxu1 }
 0x3a5   : > { %v3009_v36 = vadd.f32 %v7889_v57, %v3008_v55  ;;  %5706 = vmatprep.mubr.msk.f32.mxu0 %vm736_vm0, %v3221_v33 }
 0x3a6   : > { %5707 = vmatmul.mubr.msk.f32.gmra.mrb[78].mxu0 %vm736_vm0, %v3222_v39  ;;  %v3224_v41 = vmax.f32 %v3014_v18, 0.0 }
 0x3a7   : > { %v3223_v34 = vmax.f32 %v3009_v36, 0.0  ;;  %v5586_v53 = vpop.f32.mrb[62].mxu1 }
 0x3a8   : > { %v3024_v47 = vadd.f32 %v5586_v53, %v7889_v57  ;;  %v3018_v26 = vpop.f32.mrb[63].mxu1 }
 0x3a9   : > { %v3019_v13 = vadd.f32 %v7889_v57, %v3018_v26  ;;  %5709 = vmatprep.mubr.msk.f32.mxu0 %vm736_vm0, %v3223_v34 }
 0x3aa   : > { %5710 = vmatmul.mubr.msk.f32.gmra.mrb[80].mxu0 %vm736_vm0, %v3224_v41  ;;  %v3226_v23 = vmax.f32 %v3024_v47, 0.0 }
 0x3ab   : > { %v3225_v11 = vmax.f32 %v3019_v13, 0.0  ;;  %v5589_v1 = vpop.f32.mrb[64].mxu1 }
 0x3ac   : > { %v3034_v19 = vadd.f32 %v5589_v1, %v7889_v57  ;;  %v3028_v44 = vpop.f32.mrb[65].mxu1 }
 0x3ad   : > { %v3029_v60 = vadd.f32 %v7889_v57, %v3028_v44  ;;  %5712 = vmatprep.mubr.msk.f32.mxu0 %vm736_vm0, %v3225_v11 }
 0x3ae   : > { %5713 = vmatmul.mubr.msk.f32.gmra.mrb[66].mxu0 %vm736_vm0, %v3226_v23  ;;  %v3228_v3 = vmax.f32 %v3034_v19, 0.0 }
 0x3af   : > { %v3227_v21 = vmax.f32 %v3029_v60, 0.0  ;;  %v5592_v63 = vpop.f32.mrb[66].mxu1 }
 0x3b0   : > { %v3044_v20 = vadd.f32 %v5592_v63, %v7889_v57  ;;  %v3038_v2 = vpop.f32.mrb[67].mxu1 }
 0x3b1   : > { %v3039_v4 = vadd.f32 %v7889_v57, %v3038_v2  ;;  %5715 = vmatprep.mubr.msk.f32.mxu0 %vm736_vm0, %v3227_v21 }
 0x3b2   : > { %5716 = vmatmul.mubr.msk.f32.gmra.mrb[68].mxu0 %vm736_vm0, %v3228_v3  ;;  %v3230_v42 = vmax.f32 %v3044_v20, 0.0 }
 0x3b3   : > { %v3229_v58 = vmax.f32 %v3039_v4, 0.0  ;;  %v5595_v30 = vpop.f32.mrb[68].mxu1 }
 0x3b4   : > { %v3054_v24 = vadd.f32 %v5595_v30, %v7889_v57  ;;  %v3048_v14 = vpop.f32.mrb[69].mxu1 }
 0x3b5   : > { %v3049_v9 = vadd.f32 %v7889_v57, %v3048_v14  ;;  %5718 = vmatprep.mubr.msk.f32.mxu0 %vm736_vm0, %v3229_v58 }
 0x3b6   : > { %5719 = vmatmul.mubr.msk.f32.gmra.mrb[70].mxu0 %vm736_vm0, %v3230_v42  ;;  %v3232_v16 = vmax.f32 %v3054_v24, 0.0 }
 0x3b7   : > { %v3231_v27 = vmax.f32 %v3049_v9, 0.0  ;;  %v5598_v59 = vpop.f32.mrb[70].mxu1 }
 0x3b8   : > { %v3064_v35 = vadd.f32 %v5598_v59, %v7889_v57  ;;  %v3058_v38 = vpop.f32.mrb[71].mxu1 }
 0x3b9   : > { %v3059_v8 = vadd.f32 %v7889_v57, %v3058_v38  ;;  %5721 = vmatprep.mubr.msk.f32.mxu0 %vm736_vm0, %v3231_v27 }
 0x3ba   : > { %5722 = vmatmul.mubr.msk.f32.gmra.mrb[72].mxu0 %vm736_vm0, %v3232_v16  ;;  %v3234_v50 = vmax.f32 %v3064_v35, 0.0 }
 0x3bb   : > { %v3233_v10 = vmax.f32 %v3059_v8, 0.0  ;;  %v5601_v6 = vpop.f32.mrb[72].mxu1 }
 0x3bc   : > { %v3074_v49 = vadd.f32 %v5601_v6, %v7889_v57  ;;  %v3068_v25 = vpop.f32.mrb[73].mxu1 }
 0x3bd   : > { %v3069_v32 = vadd.f32 %v7889_v57, %v3068_v25  ;;  %5724 = vmatprep.mubr.msk.f32.mxu0 %vm736_vm0, %v3233_v10 }
 0x3be   : > { %5725 = vmatmul.mubr.msk.f32.gmra.mrb[74].mxu0 %vm736_vm0, %v3234_v50  ;;  %v3236_v51 = vmax.f32 %v3074_v49, 0.0 }
 0x3bf   : > { %v3235_v29 = vmax.f32 %v3069_v32, 0.0  ;;  %v5604_v56 = vpop.f32.mrb[74].mxu1 }
 0x3c0   : > { %v3084_v0 = vadd.f32 %v5604_v56, %v7889_v57  ;;  %v3078_v43 = vpop.f32.mrb[75].mxu1 }
 0x3c1   : > { %v3079_v62 = vadd.f32 %v7889_v57, %v3078_v43  ;;  %5727 = vmatprep.mubr.msk.f32.mxu0 %vm736_vm0, %v3235_v29 }
 0x3c2   : > { %5728 = vmatmul.mubr.msk.f32.gmra.mrb[76].mxu0 %vm736_vm0, %v3236_v51  ;;  %v3238_v33 = vmax.f32 %v3084_v0, 0.0 }
 0x3c3   : > { %v3237_v45 = vmax.f32 %v3079_v62, 0.0  ;;  %v5607_v61 = vpop.f32.mrb[76].mxu1 }
 0x3c4   : > { %v3094_v17 = vadd.f32 %v5607_v61, %v7889_v57  ;;  %v3088_v48 = vpop.f32.mrb[77].mxu1  ;;  %v4338_v61 = vld [vmem:[%s8329_s11 + $0x8] sm:$0xff] }
 0x3c5   : > { %v3089_v46 = vadd.f32 %v7889_v57, %v3088_v48  ;;  %5730 = vmatprep.mubr.msk.f32.mxu0 %vm736_vm0, %v3237_v45  ;;  %v4337_v45 = vld [vmem:[%s8329_s11] sm:$0xff] }
 0x3c6   : > { %5731 = vmatmul.mubr.msk.f32.gmra.mrb[78].mxu0 %vm736_vm0, %v3238_v33  ;;  %v3240_v18 = vmax.f32 %v3094_v17, 0.0  ;;  %v5891_v33 = vpack.c.bf16 %v4338_v61, %v4337_v45  ;;  %v8355_v17 = vld [vmem:[#allocation7_spill] sm:$0xff] }
 0x3c7   : > { %v3239_v39 = vmax.f32 %v3089_v46, 0.0  ;;  %v8356_v46 = vld [vmem:[#allocation6_spill] sm:$0xff] }
 0x3c8   : > { %5892 = vmatprep.subr.bf16.mxu1 %v5891_v33 }
 0x3c9   : > { %5733 = vmatprep.mubr.msk.f32.mxu0 %vm736_vm0, %v3239_v39 }
 0x3ca   : > { %5734 = vmatmul.mubr.msk.f32.gmra.mrb[80].mxu0 %vm736_vm0, %v3240_v18 }
 0x3cc   : > { %v5610_v55 = vpop.f32.mrb[78].mxu1 }
 0x3cd   : > { %v3104_v40 = vadd.f32 %v5610_v55, %v7889_v57  ;;  %v3098_v52 = vpop.f32.mrb[79].mxu1 }
 0x3ce   : > { %v3099_v31 = vadd.f32 %v7889_v57, %v3098_v52 }
 0x3cf   : > { %v3242_v54 = vmax.f32 %v3104_v40, 0.0 }
 0x3d0   : > { %v3241_v36 = vmax.f32 %v3099_v31, 0.0 }
 0x3d2   : > { %5736 = vmatprep.mubr.msk.f32.mxu0 %vm736_vm0, %v3241_v36  ;;  %v8357_v36 = vld [vmem:[#allocation8_spill] sm:$0xff] }
 0x3d3   : > { %5737 = vmatmul.mubr.msk.f32.gmra.mrb[66].mxu0 %vm736_vm0, %v3242_v54 }
 0x3d5   : > { %v5613_v34 = vpop.f32.mrb[80].mxu1 }
 0x3d6   : > { %v3114_v53 = vadd.f32 %v5613_v34, %v7889_v57  ;;  %v3108_v41 = vpop.f32.mrb[81].mxu1 }
 0x3d7   : > { %v3109_v47 = vadd.f32 %v7889_v57, %v3108_v41 }
 0x3d8   : > { %v3244_v13 = vmax.f32 %v3114_v53, 0.0 }
 0x3d9   : > { %v3243_v26 = vmax.f32 %v3109_v47, 0.0 }
 0x3db   : > { %5739 = vmatprep.mubr.msk.f32.mxu0 %vm736_vm0, %v3243_v26 }
 0x3dc   : > { %5740 = vmatmul.mubr.msk.f32.gmra.mrb[68].mxu0 %vm736_vm0, %v3244_v13 }
 0x3e2   : > { %v5616_v11 = vpop.f32.mrb[82].mxu1 }
 0x3e3   : > { %v3124_v1 = vadd.f32 %v5616_v11, %v7889_v57  ;;  %v3118_v23 = vpop.f32.mrb[83].mxu1 }
 0x3e4   : > { %v3119_v19 = vadd.f32 %v7889_v57, %v3118_v23 }
 0x3e5   : > { %v3246_v60 = vmax.f32 %v3124_v1, 0.0 }
 0x3e6   : > { %v3245_v44 = vmax.f32 %v3119_v19, 0.0 }
 0x3e8   : > { %5742 = vmatprep.mubr.msk.f32.mxu0 %vm736_vm0, %v3245_v44 }
 0x3e9   : > { %5743 = vmatmul.mubr.msk.f32.gmra.mrb[70].mxu0 %vm736_vm0, %v3246_v60 }
 0x3f0   : > { %v5619_v21 = vpop.f32.mrb[84].mxu1 }
 0x3f1   : > { %v3134_v63 = vadd.f32 %v5619_v21, %v7889_v57  ;;  %v3128_v3 = vpop.f32.mrb[85].mxu1  ;;  %v8358_v21 = vld [vmem:[#allocation10_spill] sm:$0xff] }
 0x3f2   : > { %v3129_v20 = vadd.f32 %v7889_v57, %v3128_v3 }
 0x3f3   : > { %v3248_v4 = vmax.f32 %v3134_v63, 0.0 }
 0x3f4   : > { %v3247_v2 = vmax.f32 %v3129_v20, 0.0  ;;  %v8359_v20 = vld [vmem:[#allocation9_spill] sm:$0xff] }
 0x3f6   : > { %5745 = vmatprep.mubr.msk.f32.mxu0 %vm736_vm0, %v3247_v2 }
 0x3f7   : > { %5746 = vmatmul.mubr.msk.f32.gmra.mrb[72].mxu0 %vm736_vm0, %v3248_v4 }
 0x3f9   : > { %v5622_v58 = vpop.f32.mrb[86].mxu1 }
 0x3fa   : > { %v3144_v30 = vadd.f32 %v5622_v58, %v7889_v57  ;;  %v3138_v42 = vpop.f32.mrb[87].mxu1 }
 0x3fb   : > { %v3139_v24 = vadd.f32 %v7889_v57, %v3138_v42 }
 0x3fc   : > { %v3250_v9 = vmax.f32 %v3144_v30, 0.0 }
 0x3fd   : > { %v3249_v14 = vmax.f32 %v3139_v24, 0.0 }
 0x3ff   : > { %5748 = vmatprep.mubr.msk.f32.mxu0 %vm736_vm0, %v3249_v14 }
 0x400   : > { %5749 = vmatmul.mubr.msk.f32.gmra.mrb[74].mxu0 %vm736_vm0, %v3250_v9 }
 0x406   : > { %v5625_v27 = vpop.f32.mrb[88].mxu1 }
 0x407   : > { %v3154_v59 = vadd.f32 %v5625_v27, %v7889_v57  ;;  %v3148_v16 = vpop.f32.mrb[89].mxu1 }
 0x408   : > { %v3149_v35 = vadd.f32 %v7889_v57, %v3148_v16 }
 0x409   : > { %v3252_v8 = vmax.f32 %v3154_v59, 0.0 }
 0x40a   : > { %v3251_v38 = vmax.f32 %v3149_v35, 0.0 }
 0x40c   : > { %5751 = vmatprep.mubr.msk.f32.mxu0 %vm736_vm0, %v3251_v38 }
 0x40d   : > { %5752 = vmatmul.mubr.msk.f32.gmra.mrb[76].mxu0 %vm736_vm0, %v3252_v8  ;;  %v8360_v8 = vld [vmem:[#allocation12_spill] sm:$0xff] }
 0x414   : > { %v5628_v10 = vpop.f32.mrb[90].mxu1 }
 0x415   : > { %v3164_v6 = vadd.f32 %v5628_v10, %v7889_v57  ;;  %v3158_v50 = vpop.f32.mrb[91].mxu1 }
 0x416   : > { %v3159_v49 = vadd.f32 %v7889_v57, %v3158_v50 }
 0x417   : > { %v3254_v32 = vmax.f32 %v3164_v6, 0.0  ;;  %v8361_v6 = vld [vmem:[#allocation11_spill] sm:$0xff] }
 0x418   : > { %v3253_v25 = vmax.f32 %v3159_v49, 0.0 }
 0x41a   : > { %5754 = vmatprep.mubr.msk.f32.mxu0 %vm736_vm0, %v3253_v25 }
 0x41b   : > { %5755 = vmatmul.mubr.msk.f32.gmra.mrb[78].mxu0 %vm736_vm0, %v3254_v32 }
 0x41d   : > { %v5631_v29 = vpop.f32.mrb[92].mxu1 }
 0x41e   : > { %v3174_v56 = vadd.f32 %v5631_v29, %v7889_v57  ;;  %v3168_v51 = vpop.f32.mrb[93].mxu1 }
 0x41f   : > { %v3169_v0 = vadd.f32 %v7889_v57, %v3168_v51  ;;  %v8074_v57 = vld [vmem:[%s8326_s8] ss:$0 sm:$0xff] }
 0x420   : > { %v3256_v62 = vmax.f32 %v3174_v56, 0.0  ;;  %v5939_v48 = vadd.f32 %v8355_v17, %v8074_v57  ;;  %v5949_v39 = vadd.f32 %v8356_v46, %v8074_v57  ;;  %v5959_v52 = vadd.f32 %v7516_v28, %v8074_v57 }
 0x421   : > { %v3255_v43 = vmax.f32 %v3169_v0, 0.0  ;;  %v5969_v54 = vadd.f32 %v8357_v36, %v8074_v57  ;;  %v5979_v63 = vadd.f32 %v8358_v21, %v8074_v57  ;;  %v5989_v2 = vadd.f32 %v8359_v20, %v8074_v57 }
 0x422   : > { %v5940_v18 = vadd.f32 %v5939_v48, %v8074_v57  ;;  %v5950_v55 = vadd.f32 %v5949_v39, %v8074_v57  ;;  %v5960_v41 = vadd.f32 %v5959_v52, %v8074_v57  ;;  %v5999_v10 = vadd.f32 %v8360_v8, %v8074_v57 }
 0x423   : > { %5757 = vmatprep.mubr.msk.f32.mxu0 %vm736_vm0, %v3255_v43  ;;  %v5970_v47 = vadd.f32 %v5969_v54, %v8074_v57  ;;  %v5980_v42 = vadd.f32 %v5979_v63, %v8074_v57  ;;  %v5990_v9 = vadd.f32 %v5989_v2, %v8074_v57  ;;  %v6009_v50 = vadd.f32 %v8361_v6, %v8074_v57 }
 0x424   : > { %5758 = vmatmul.mubr.msk.f32.gmra.mrb[80].mxu0 %vm736_vm0, %v3256_v62  ;;  %v5941_v40 = vadd.f32 %v5940_v18, %v8074_v57  ;;  %v5951_v31 = vadd.f32 %v5950_v55, %v8074_v57  ;;  %v5961_v28 = vadd.f32 %v5960_v41, %v8074_v57  ;;  %v6000_v51 = vadd.f32 %v5999_v10, %v8074_v57 }
 0x425   : > { %v5971_v19 = vadd.f32 %v5970_v47, %v8074_v57  ;;  %v5981_v59 = vadd.f32 %v5980_v42, %v8074_v57  ;;  %v5991_v16 = vadd.f32 %v5990_v9, %v8074_v57  ;;  %v6010_v43 = vadd.f32 %v6009_v50, %v8074_v57 }
 0x426   : > { %v5942_v34 = vadd.f32 %v5941_v40, %v8074_v57  ;;  %v5952_v53 = vadd.f32 %v5951_v31, %v8074_v57  ;;  %v5962_v60 = vadd.f32 %v5961_v28, %v8074_v57  ;;  %v6001_v62 = vadd.f32 %v6000_v51, %v8074_v57 }
 0x427   : > { %v5972_v3 = vadd.f32 %v5971_v19, %v8074_v57  ;;  %v5982_v35 = vadd.f32 %v5981_v59, %v8074_v57  ;;  %v5992_v38 = vadd.f32 %v5991_v16, %v8074_v57  ;;  %v6019_v45 = vadd.f32 %v7577_v22, %v8074_v57 }
 0x428   : > { %v5943_v26 = vadd.f32 %v5942_v34, %v8074_v57  ;;  %v5953_v11 = vadd.f32 %v5952_v53, %v8074_v57  ;;  %v5963_v4 = vadd.f32 %v5962_v60, %v8074_v57  ;;  %v6011_v61 = vadd.f32 %v6010_v43, %v8074_v57 }
 0x429   : > { %v5973_v30 = vadd.f32 %v5972_v3, %v8074_v57  ;;  %v5983_v49 = vadd.f32 %v5982_v35, %v8074_v57  ;;  %v5993_v32 = vadd.f32 %v5992_v38, %v8074_v57  ;;  %v6002_v48 = vadd.f32 %v6001_v62, %v8074_v57 }
 0x42a   : > { %v6012_v46 = vadd.f32 %v6011_v61, %v8074_v57  ;;  %v6020_v39 = vadd.f32 %v6019_v45, %v8074_v57  ;;  %v6039_v41 = vadd.f32 %v7598_v37, %v8074_v57  ;;  %v6059_v2 = vadd.f32 %v7619_v15, %v8074_v57 }
 0x42b   : > { %v6003_v55 = vadd.f32 %v6002_v48, %v8074_v57  ;;  %v6089_v35 = vadd.f32 %v7641_v5, %v8074_v57  ;;  %v4339_v48 = vld [vmem:[%s8329_s11 + $0x10] sm:$0xff] }
 0x42c   : > { %v6013_v52 = vadd.f32 %v6012_v46, %v8074_v57  ;;  %v6021_v22 = vadd.f32 %v6020_v39, %v8074_v57  ;;  %v6060_v9 = vadd.f32 %v6059_v2, %v8074_v57  ;;  %v4340_v46 = vld [vmem:[%s8329_s11 + $0x18] sm:$0xff] }
 0x42d   : > { %v6090_v6 = vadd.f32 %v6089_v35, %v8074_v57  ;;  %v5895_v39 = vpack.c.bf16 %v4340_v46, %v4339_v48 }
 0x42e   : > { %v6022_v53 = vadd.f32 %v6021_v22, %v8074_v57  ;;  %v6061_v15 = vadd.f32 %v6060_v9, %v8074_v57 }
 0x430   : > { %v6062_v38 = vadd.f32 %v6061_v15, %v8074_v57 }
 0x432   : > { %v6063_v50 = vadd.f32 %v6062_v38, %v8074_v57 }
 0x4a6   : > { %v5738_v13 = vpop.f32.mrb[66].mxu0 }
 0x4a7   : > { %v5944_v1 = vadd.f32 %v5943_v26, %v5738_v13  ;;  %v3894_v23 = vpop.f32.mrb[67].mxu0  ;;  %v8363_v26 = vld [vmem:[#allocation14_spill] sm:$0xff] }
 0x4a8   : > { %v5954_v44 = vadd.f32 %v5953_v11, %v3894_v23  ;;  %v6049_v13 = vadd.f32 %v8363_v26, %v8074_v57  ;;  %v6023_v11 = vadd.f32 %v6022_v53, %v8074_v57  ;;  %v6040_v23 = vadd.f32 %v6039_v41, %v8074_v57 }
 0x4aa   : > { %5768 = vmatprep.mubr.msk.f32.mxu1 %vm736_vm0, %v5954_v44  ;;  %v6050_v60 = vadd.f32 %v6049_v13, %v8074_v57  ;;  %v6041_v37 = vadd.f32 %v6040_v23, %v8074_v57 }
 0x4ab   : > { %5769 = vmatmul.mubr.msk.f32.vlgmr.msra.gmra.mrb[94].mxu1 %vm736_vm0, %v5944_v1 }
 0x4ac   : > { %5894 = vmatpush3.bf16.msra.mxu1 %v5891_v33  ;;  %v8362_v33 = vld [vmem:[#allocation13_spill] sm:$0xff]  ;;  %v6051_v63 = vadd.f32 %v6050_v60, %v8074_v57  ;;  %v6042_v3 = vadd.f32 %v6041_v37, %v8074_v57 }
 0x4ad   : > { %v6029_v17 = vadd.f32 %v8362_v33, %v8074_v57  ;;  %5896 = vmatprep.subr.bf16.mxu1 %v5895_v39 }
 0x4ae   : > { %v6052_v20 = vadd.f32 %v6051_v63, %v8074_v57 }
 0x4af   : > { %v5741_v58 = vpop.f32.mrb[68].mxu0  ;;  %v6030_v18 = vadd.f32 %v6029_v17, %v8074_v57 }
 0x4b0   : > { %v5964_v24 = vadd.f32 %v5963_v4, %v5741_v58  ;;  %v3904_v14 = vpop.f32.mrb[69].mxu0  ;;  %v6069_v4 = vadd.f32 %v7605_v12, %v8074_v57  ;;  %v6043_v58 = vadd.f32 %v6042_v3, %v8074_v57  ;;  %v6053_v42 = vadd.f32 %v6052_v20, %v8074_v57  ;;  %5898 = vmatpush3.bf16.msra.mxu1 %v5895_v39 }
 0x4b1   : > { %v5974_v27 = vadd.f32 %v5973_v30, %v3904_v14  ;;  %v6031_v54 = vadd.f32 %v6030_v18, %v8074_v57  ;;  %v6079_v12 = vadd.f32 %v7649_v7, %v8074_v57 }
 0x4b2   : > { %v6070_v59 = vadd.f32 %v6069_v4, %v8074_v57 }
 0x4b3   : > { %5771 = vmatprep.mubr.msk.f32.mxu1 %vm736_vm0, %v5974_v27  ;;  %v6032_v47 = vadd.f32 %v6031_v54, %v8074_v57  ;;  %v6080_v10 = vadd.f32 %v6079_v12, %v8074_v57 }
 0x4b4   : > { %5772 = vmatmul.mubr.msk.f32.gmra.mrb[96].mxu1 %vm736_vm0, %v5964_v24  ;;  %v6071_v16 = vadd.f32 %v6070_v59, %v8074_v57 }
 0x4b5   : > { %v6033_v1 = vadd.f32 %v6032_v47, %v8074_v57  ;;  %v6081_v7 = vadd.f32 %v6080_v10, %v8074_v57 }
 0x4b6   : > { %v6072_v8 = vadd.f32 %v6071_v16, %v8074_v57 }
 0x4b7   : > { %v6082_v51 = vadd.f32 %v6081_v7, %v8074_v57 }
 0x4b9   : > { %v6083_v43 = vadd.f32 %v6082_v51, %v8074_v57 }
 0x4bc   : > { %v5744_v25 = vpop.f32.mrb[70].mxu0 }
 0x4bd   : > { %v5984_v29 = vadd.f32 %v5983_v49, %v5744_v25  ;;  %v3914_v56 = vpop.f32.mrb[71].mxu0  ;;  %v6073_v25 = vadd.f32 %v6072_v8, %v8074_v57 }
 0x4be   : > { %v5994_v0 = vadd.f32 %v5993_v32, %v3914_v56  ;;  %v6091_v56 = vadd.f32 %v6090_v6, %v8074_v57 }
 0x4c0   : > { %5774 = vmatprep.mubr.msk.f32.mxu1 %vm736_vm0, %v5994_v0  ;;  %v6092_v0 = vadd.f32 %v6091_v56, %v8074_v57  ;;  %v4558_v56 = vld [vmem:[%s8332_s14] sm:$0xff] }
 0x4c1   : > { %5775 = vmatmul.mubr.msk.f32.gmra.mrb[98].mxu1 %vm736_vm0, %v5984_v29  ;;  %4561 = vperm.xlu1 %6274, %v4558_v56  }
 0x4c2   : > { %v6093_v45 = vadd.f32 %v6092_v0, %v8074_v57  ;;  %v5012_v57 = vld [vmem:[%s8328_s10] ss:$0 sm:$0xff] }
 0x4ca   : > { %v5747_v40 = vpop.f32.mrb[72].mxu0 }
 0x4cb   : > { %v6004_v31 = vadd.f32 %v6003_v55, %v5747_v40  ;;  %v3924_v36 = vpop.f32.mrb[73].mxu0 }
 0x4cc   : > { %v6014_v34 = vadd.f32 %v6013_v52, %v3924_v36 }
 0x4ce   : > { %5777 = vmatprep.mubr.msk.f32.mxu1 %vm736_vm0, %v6014_v34 }
 0x4cf   : > { %5778 = vmatmul.mubr.msk.f32.gmra.mrb[100].mxu1 %vm736_vm0, %v6004_v31 }
 0x4d3   : > { %v5750_v28 = vpop.f32.mrb[74].mxu0 }
 0x4d4   : > { %v6024_v19 = vadd.f32 %v6023_v11, %v5750_v28  ;;  %v3934_v44 = vpop.f32.mrb[75].mxu0 }
 0x4d5   : > { %v6034_v21 = vadd.f32 %v6033_v1, %v3934_v44 }
 0x4d7   : > { %5780 = vmatprep.mubr.msk.f32.mxu1 %vm736_vm0, %v6034_v21 }
 0x4d8   : > { %5781 = vmatmul.mubr.msk.f32.gmra.mrb[102].mxu1 %vm736_vm0, %v6024_v19 }
 0x4e0   : > { %v5753_v30 = vpop.f32.mrb[76].mxu0 }
 0x4e1   : > { %v6044_v24 = vadd.f32 %v6043_v58, %v5753_v30  ;;  %v3944_v14 = vpop.f32.mrb[77].mxu0 }
 0x4e2   : > { %v6054_v27 = vadd.f32 %v6053_v42, %v3944_v14 }
 0x4e4   : > { %5783 = vmatprep.mubr.msk.f32.mxu1 %vm736_vm0, %v6054_v27 }
 0x4e5   : > { %5784 = vmatmul.mubr.msk.f32.gmra.mrb[104].mxu1 %vm736_vm0, %v6044_v24 }
 0x4ee   : > { %v5756_v49 = vpop.f32.mrb[78].mxu0 }
 0x4ef   : > { %v6064_v32 = vadd.f32 %v6063_v50, %v5756_v49  ;;  %v3954_v29 = vpop.f32.mrb[79].mxu0 }
 0x4f0   : > { %v6074_v5 = vadd.f32 %v6073_v25, %v3954_v29  ;;  %v6371_v29 = vmov 0.0  }
 0x4f2   : > { %5786 = vmatprep.mubr.msk.f32.mxu1 %vm736_vm0, %v6074_v5  ;;  %v8220_v5 = vld [vmem:[%s8330_s12] ss:$0 sm:$0xff] }
 0x4f3   : > { %5787 = vmatmul.mubr.msk.f32.gmra.mrb[106].mxu1 %vm736_vm0, %v6064_v32  ;;  %v6369_v32 = vmov 0.0|0.0  }
 0x4f4   : > { %5899 = vmatprep.subr.bf16.mxu1 %v6369_v32 }
 0x4f7   : > { %v5759_v62 = vpop.f32.mrb[80].mxu0 }
 0x4f8   : > { %v6084_v61 = vadd.f32 %v6083_v43, %v5759_v62  ;;  %v3964_v33 = vpop.f32.mrb[81].mxu0 }
 0x4f9   : > { %v6094_v17 = vadd.f32 %v6093_v45, %v3964_v33 }
 0x4fb   : > { %5789 = vmatprep.mubr.msk.f32.mxu1 %vm736_vm0, %v6094_v17 }
 0x4fc   : > { %5790 = vmatmul.mubr.msk.f32.gmra.mrb[108].mxu1 %vm736_vm0, %v6084_v61 }
 0x57e   : > { %v5770_v18 = vpop.f32.mrb[94].mxu1 }
 0x57f   : > { %v4248_v55 = vadd.f32 %v5770_v18, %v5012_v57  ;;  %v4242_v40 = vpop.f32.mrb[95].mxu1 }
 0x580   : > { %v4243_v52 = vadd.f32 %v5012_v57, %v4242_v40 }
 0x581   : > { %v4322_v31 = vmax.f32 %v4248_v55, 0.0 }
 0x582   : > { %v4321_v22 = vmax.f32 %v4243_v52, 0.0 }
 0x584   : > { %5800 = vmatprep.mubr.msk.f32.mxu1 %vm736_vm0, %v4321_v22 }
 0x585   : > { %5801 = vmatmul.mubr.msk.f32.vlgmr.msra.gmra.mrb[110].mxu1 %vm736_vm0, %v4322_v31 }
 0x587   : > { %v5773_v36 = vpop.f32.mrb[96].mxu1 }
 0x588   : > { %v4258_v54 = vadd.f32 %v5773_v36, %v5012_v57  ;;  %v4252_v34 = vpop.f32.mrb[97].mxu1 }
 0x589   : > { %v4253_v53 = vadd.f32 %v5012_v57, %v4252_v34 }
 0x58a   : > { %v4324_v47 = vmax.f32 %v4258_v54, 0.0 }
 0x58b   : > { %v4323_v41 = vmax.f32 %v4253_v53, 0.0 }
 0x58d   : > { %5803 = vmatprep.mubr.msk.f32.mxu1 %vm736_vm0, %v4323_v41 }
 0x58e   : > { %5804 = vmatmul.mubr.msk.f32.gmra.mrb[112].mxu1 %vm736_vm0, %v4324_v47 }
 0x594   : > { %v5776_v26 = vpop.f32.mrb[98].mxu1 }
 0x595   : > { %v4268_v13 = vadd.f32 %v5776_v26, %v5012_v57  ;;  %v4262_v11 = vpop.f32.mrb[99].mxu1 }
 0x596   : > { %v4263_v28 = vadd.f32 %v5012_v57, %v4262_v11 }
 0x597   : > { %v4326_v23 = vmax.f32 %v4268_v13, 0.0 }
 0x598   : > { %v4325_v1 = vmax.f32 %v4263_v28, 0.0 }
 0x59a   : > { %5806 = vmatprep.mubr.msk.f32.mxu1 %vm736_vm0, %v4325_v1 }
 0x59b   : > { %5807 = vmatmul.mubr.msk.f32.gmra.mrb[114].mxu1 %vm736_vm0, %v4326_v23 }
 0x5a2   : > { %v5779_v19 = vpop.f32.mrb[100].mxu1 }
 0x5a3   : > { %v4278_v44 = vadd.f32 %v5779_v19, %v5012_v57  ;;  %v4272_v60 = vpop.f32.mrb[101].mxu1 }
 0x5a4   : > { %v4273_v21 = vadd.f32 %v5012_v57, %v4272_v60 }
 0x5a5   : > { %v4328_v63 = vmax.f32 %v4278_v44, 0.0 }
 0x5a6   : > { %v4327_v37 = vmax.f32 %v4273_v21, 0.0 }
 0x5a8   : > { %5809 = vmatprep.mubr.msk.f32.mxu1 %vm736_vm0, %v4327_v37 }
 0x5a9   : > { %5810 = vmatmul.mubr.msk.f32.gmra.mrb[116].mxu1 %vm736_vm0, %v4328_v63 }
 0x5ab   : > { %v5782_v3 = vpop.f32.mrb[102].mxu1 }
 0x5ac   : > { %v4288_v20 = vadd.f32 %v5782_v3, %v5012_v57  ;;  %v4282_v2 = vpop.f32.mrb[103].mxu1 }
 0x5ad   : > { %v4283_v4 = vadd.f32 %v5012_v57, %v4282_v2 }
 0x5ae   : > { %v4330_v30 = vmax.f32 %v4288_v20, 0.0 }
 0x5af   : > { %v4329_v58 = vmax.f32 %v4283_v4, 0.0 }
 0x5b1   : > { %5812 = vmatprep.mubr.msk.f32.mxu1 %vm736_vm0, %v4329_v58 }
 0x5b2   : > { %5813 = vmatmul.mubr.msk.f32.gmra.mrb[118].mxu1 %vm736_vm0, %v4330_v30 }
 0x5b8   : > { %v5785_v42 = vpop.f32.mrb[104].mxu1 }
 0x5b9   : > { %v4298_v24 = vadd.f32 %v5785_v42, %v5012_v57  ;;  %v4292_v14 = vpop.f32.mrb[105].mxu1 }
 0x5ba   : > { %v4293_v9 = vadd.f32 %v5012_v57, %v4292_v14 }
 0x5bb   : > { %v4332_v59 = vmax.f32 %v4298_v24, 0.0 }
 0x5bc   : > { %v4331_v27 = vmax.f32 %v4293_v9, 0.0 }
 0x5be   : > { %5815 = vmatprep.mubr.msk.f32.mxu1 %vm736_vm0, %v4331_v27 }
 0x5bf   : > { %5816 = vmatmul.mubr.msk.f32.gmra.mrb[120].mxu1 %vm736_vm0, %v4332_v59 }
 0x5c6   : > { %v5788_v15 = vpop.f32.mrb[106].mxu1 }
 0x5c7   : > { %v4308_v12 = vadd.f32 %v5788_v15, %v5012_v57  ;;  %v4302_v16 = vpop.f32.mrb[107].mxu1 }
 0x5c8   : > { %v4303_v35 = vadd.f32 %v5012_v57, %v4302_v16 }
 0x5c9   : > { %v4334_v8 = vmax.f32 %v4308_v12, 0.0 }
 0x5ca   : > { %v4333_v38 = vmax.f32 %v4303_v35, 0.0 }
 0x5cc   : > { %5818 = vmatprep.mubr.msk.f32.mxu1 %vm736_vm0, %v4333_v38 }
 0x5cd   : > { %5819 = vmatmul.mubr.msk.f32.gmra.mrb[122].mxu1 %vm736_vm0, %v4334_v8 }
 0x5cf   : > { %v5791_v10 = vpop.f32.mrb[108].mxu1 }
 0x5d0   : > { %v4318_v6 = vadd.f32 %v5791_v10, %v5012_v57  ;;  %v4312_v50 = vpop.f32.mrb[109].mxu1 }
 0x5d1   : > { %v4313_v49 = vadd.f32 %v5012_v57, %v4312_v50 }
 0x5d2   : > { %v4336_v7 = vmax.f32 %v4318_v6, 0.0 }
 0x5d3   : > { %v4335_v25 = vmax.f32 %v4313_v49, 0.0  ;;  %v4557_v49 = vld [vmem:[%s8331_s13] sm:$0xff] }
 0x5d5   : > { %5821 = vmatprep.mubr.msk.f32.mxu1 %vm736_vm0, %v4335_v25  ;;  %v4562_v25 = vpop.permute.xlu1 %4561 }
 0x5d6   : > { %5822 = vmatmul.mubr.msk.f32.gmra.mrb[124].mxu1 %vm736_vm0, %v4336_v7 }
 0x5d7   : > { %5856 = vmatprep.mubr.msk.f32.mxu1 %vm6370_vm1, %v6371_v29 }
 0x658   : > { %v5802_v51 = vpop.f32.mrb[110].mxu1 }
 0x659   : > { %v4468_v0 = vadd.f32 %v5802_v51, %v8220_v5  ;;  %v4462_v43 = vpop.f32.mrb[111].mxu1 }
 0x65a   : > { %v4463_v62 = vadd.f32 %v8220_v5, %v4462_v43 }
 0x65b   : > { %v4542_v45 = vmax.f32 %v4468_v0, 0.0 }
 0x65c   : > { %v4541_v61 = vmax.f32 %v4463_v62, 0.0 }
 0x65e   : > { %v5900_v17 = vpack.c.bf16 %v4542_v45, %v4541_v61 }
 0x660   : > { %5902 = vmatpush3.bf16.xpose.msk.msra.mxu1 %vm8226_vm2, %v5900_v17 }
 0x661   : > { %v5805_v48 = vpop.f32.mrb[112].mxu1  ;;  %5903 = vmatprep.subr.bf16.mxu1 %v6369_v32 }
 0x662   : > { %v4478_v46 = vadd.f32 %v5805_v48, %v8220_v5  ;;  %v4472_v39 = vpop.f32.mrb[113].mxu1 }
 0x663   : > { %v4473_v57 = vadd.f32 %v8220_v5, %v4472_v39 }
 0x664   : > { %v4544_v18 = vmax.f32 %v4478_v46, 0.0 }
 0x665   : > { %v4543_v55 = vmax.f32 %v4473_v57, 0.0 }
 0x667   : > { %v5904_v40 = vpack.c.bf16 %v4544_v18, %v4543_v55 }
 0x669   : > { %5906 = vmatpush3.bf16.xpose.msk.msra.mxu1 %vm8226_vm2, %v5904_v40 }
 0x66a   : > { %5907 = vmatprep.subr.bf16.mxu1 %v6369_v32 }
 0x66e   : > { %v5808_v52 = vpop.f32.mrb[114].mxu1 }
 0x66f   : > { %v4488_v22 = vadd.f32 %v5808_v52, %v8220_v5  ;;  %v4482_v31 = vpop.f32.mrb[115].mxu1 }
 0x670   : > { %v4483_v36 = vadd.f32 %v8220_v5, %v4482_v31 }
 0x671   : > { %v4546_v54 = vmax.f32 %v4488_v22, 0.0 }
 0x672   : > { %v4545_v34 = vmax.f32 %v4483_v36, 0.0 }
 0x674   : > { %v5908_v53 = vpack.c.bf16 %v4546_v54, %v4545_v34 }
 0x676   : > { %5910 = vmatpush3.bf16.xpose.msk.msra.mxu1 %vm8226_vm2, %v5908_v53 }
 0x677   : > { %5911 = vmatprep.subr.bf16.mxu1 %v6369_v32 }
 0x67c   : > { %v5811_v41 = vpop.f32.mrb[116].mxu1 }
 0x67d   : > { %v4498_v47 = vadd.f32 %v5811_v41, %v8220_v5  ;;  %v4492_v26 = vpop.f32.mrb[117].mxu1 }
 0x67e   : > { %v4493_v13 = vadd.f32 %v8220_v5, %v4492_v26 }
 0x67f   : > { %v4548_v11 = vmax.f32 %v4498_v47, 0.0 }
 0x680   : > { %v4547_v28 = vmax.f32 %v4493_v13, 0.0 }
 0x682   : > { %v5912_v1 = vpack.c.bf16 %v4548_v11, %v4547_v28 }
 0x684   : > { %5914 = vmatpush3.bf16.xpose.msk.msra.mxu1 %vm8226_vm2, %v5912_v1 }
 0x685   : > { %v5814_v23 = vpop.f32.mrb[118].mxu1  ;;  %5915 = vmatprep.subr.bf16.mxu1 %v6369_v32 }
 0x686   : > { %v4508_v19 = vadd.f32 %v5814_v23, %v8220_v5  ;;  %v4502_v44 = vpop.f32.mrb[119].mxu1 }
 0x687   : > { %v4503_v60 = vadd.f32 %v8220_v5, %v4502_v44 }
 0x688   : > { %v4550_v21 = vmax.f32 %v4508_v19, 0.0 }
 0x689   : > { %v4549_v37 = vmax.f32 %v4503_v60, 0.0 }
 0x68b   : > { %v5916_v63 = vpack.c.bf16 %v4550_v21, %v4549_v37 }
 0x68d   : > { %5918 = vmatpush3.bf16.xpose.msk.msra.mxu1 %vm8226_vm2, %v5916_v63 }
 0x68e   : > { %5919 = vmatprep.subr.bf16.mxu1 %v6369_v32 }
 0x692   : > { %v5817_v3 = vpop.f32.mrb[120].mxu1 }
 0x693   : > { %v4518_v20 = vadd.f32 %v5817_v3, %v8220_v5  ;;  %v4512_v2 = vpop.f32.mrb[121].mxu1 }
 0x694   : > { %v4513_v4 = vadd.f32 %v8220_v5, %v4512_v2 }
 0x695   : > { %v4552_v58 = vmax.f32 %v4518_v20, 0.0 }
 0x696   : > { %v4551_v30 = vmax.f32 %v4513_v4, 0.0 }
 0x698   : > { %v5920_v42 = vpack.c.bf16 %v4552_v58, %v4551_v30 }
 0x69a   : > { %5922 = vmatpush3.bf16.xpose.msk.msra.mxu1 %vm8226_vm2, %v5920_v42 }
 0x69b   : > { %5923 = vmatprep.subr.bf16.mxu1 %v6369_v32 }
 0x6a0   : > { %v5820_v24 = vpop.f32.mrb[122].mxu1 }
 0x6a1   : > { %v4528_v14 = vadd.f32 %v5820_v24, %v8220_v5  ;;  %v4522_v9 = vpop.f32.mrb[123].mxu1 }
 0x6a2   : > { %v4523_v27 = vadd.f32 %v8220_v5, %v4522_v9 }
 0x6a3   : > { %v4554_v59 = vmax.f32 %v4528_v14, 0.0 }
 0x6a4   : > { %v4553_v15 = vmax.f32 %v4523_v27, 0.0 }
 0x6a6   : > { %v5924_v12 = vpack.c.bf16 %v4554_v59, %v4553_v15 }
 0x6a8   : > { %5926 = vmatpush3.bf16.xpose.msk.msra.mxu1 %vm8226_vm2, %v5924_v12 }
 0x6a9   : > { %v5823_v16 = vpop.f32.mrb[124].mxu1  ;;  %5927 = vmatprep.subr.bf16.mxu1 %v6369_v32 }
 0x6aa   : > { %v4538_v35 = vadd.f32 %v5823_v16, %v8220_v5  ;;  %v4532_v38 = vpop.f32.mrb[125].mxu1 }
 0x6ab   : > { %v4533_v8 = vadd.f32 %v8220_v5, %v4532_v38 }
 0x6ac   : > { %v4556_v10 = vmax.f32 %v4538_v35, 0.0 }
 0x6ad   : > { %v4555_v6 = vmax.f32 %v4533_v8, 0.0 }
 0x6af   : > { %v5928_v50 = vpack.c.bf16 %v4556_v10, %v4555_v6 }
 0x6b1   : > { %5930 = vmatpush3.bf16.xpose.msk.msra.mxu1 %vm8226_vm2, %v5928_v50 }
 0x6b8   : > { %5857 = vmatmul.mubr.msk.f32.vlgmr.msra.gmra.mrb[126].mxu1 %vm736_vm0, %v4557_v49 }
 0x78b   : > { %v4681_v7 = vpop.f32.mrb[126].mxu1 }
 0x78c   : > { %v4682_v32 = vadd.f32 %v4681_v7, %v4562_v25  ;;  %v5858_v29 = vpop.f32.mrb[127].mxu1 }
 0x78e   : > { %4685 = vst [vmem:[%s488_s17] sm:$0xff] %v4682_v32 }
 0x78f   : > { %6308 = shalt.err (!%p6305_p3)
}
 0x790   : > { %s6309_s2 = scalar_lea.hbm %s8276_s3, 128  ;;  %s6313_s17 = scalar_lea.hbm %s8333_s15, 256 }
 0x791   : > { %p6310_p4 = scmp.ne.s32.totalorder %s8276_s3, %s6309_s2  ;;  %p6314_p9 = scmp.lt.u32.totalorder %s8276_s3, %s8333_s15 }
 0x792   : > { %p6315_p10 = scmp.lt.u32.totalorder %s6313_s17, %s6309_s2  ;;  %p6317_p12 = scmp.lt.u32.totalorder %s6309_s2, %s8276_s3 }
 0x793   : > { %p6311_p7 = pnand %p6310_p4, %p6491_p5 }
 0x794   : > { %p6316_p11 = por %p6315_p10, %p6314_p9 }
 0x795   : > { %p6312_p8 = pneg %p6311_p7 }
 0x796   : > { %p6318_p13 = por %p6317_p12, %p6316_p11 }
 0x798   : > { %p6319_p0 = pnand %p6318_p13, %p6312_p8 }
 0x79a   : > { %6322 = shalt.err (!%p6319_p0)
}
 0x79b   : > { %6159 = dma.vmem_to_hbm [thread:$0]  (%p6491_p5), %s8278_s23, 128, %s8276_s3, %s4687_s1  }
 0x79c PF: > { %p6165_p1 = scmp.ge.s32.totalorder %s6357_s21, 2  ;;  %s4712_s4 = sand.u32 1, %s6345_s18  }
 0x79d   : > { %s4713_s30 = scalar_lea.sflag [#allocation4], %s4712_s4 }
 0x79e   : > { %p6162_p2 = pnand %p6165_p1, %p6495_p6 }
 0x7a0   : > { %6340 = dma.done.wait (!%p6162_p2), %s4713_s30, 128  }
 0x7a1   : > { %6342 = vsyncadd (!%p6162_p2), %s4713_s30, 4294967168  ;;  %p25_p3 = scmp.ge.s32.totalorder %s6478_s24, 4   ;;  %s8366_s18 = smov %s6349_s19 }
 0x7a2   : > { %s8367_s19 = smov %s6353_s20  ;;  %s8368_s20 = smov %s6489_s27 }
 0x7a3   : > { %s8369_s21 = smov %s6478_s24  ;;  %27 = sbr.rel (!%p25_p3) target bundleno = 9 (0x9), region = 115 }
 0x7aa   :  { %4718 = vsyncpa [#allocation4], 1 }
 0x7ab   :  { %4720 = vsyncpa [#allocation4 + $0x1], 1 }

</bundles_post_ra>
